<compile_context>
chip_gen: v5e
topology: v5e:2x2
jax: 0.10.0
libtpu: 0.0.40
codegen_flags: <defaults>
</compile_context>

<pallas_src>
import functools

import jax
import jax.numpy as jnp
from jax.experimental import pallas as pl
from jax.experimental.pallas import tpu as pltpu


# ----------------------------------------------------------------------------
# Per-generation tuning (VMEM budget / default M tile).
# ----------------------------------------------------------------------------
def _detect_vmem_capacity_bytes():
    try:
        cap = getattr(pltpu.get_tpu_info(), "vmem_capacity_bytes", None)
        if cap:
            return int(cap)
    except Exception:
        pass
    return 64 * 1024 * 1024            # conservative (v7x per-core) fallback


_VMEM_CAPACITY_BYTES = _detect_vmem_capacity_bytes()
if _VMEM_CAPACITY_BYTES >= 96 * 1024 * 1024:       # v5e / v6e: 128 MiB per core
    _VMEM_LIMIT_BYTES = 96 * 1024 * 1024
    _DEFAULT_TILE_M = 512
else:                                              # v7x: 64 MiB per core
    _VMEM_LIMIT_BYTES = 48 * 1024 * 1024
    _DEFAULT_TILE_M = 256


def _block_spec(shape, index_map, *, buffers=None):
    """BlockSpec with an optional deeper pipeline on the streamed operand."""
    if buffers is not None and hasattr(pl, "Buffered"):
        try:
            return pl.BlockSpec(shape, index_map, pipeline_mode=pl.Buffered(buffers))
        except TypeError:              # older jax without pipeline_mode kwarg
            pass
    return pl.BlockSpec(shape, index_map)


# ----------------------------------------------------------------------------
# Tiled matmul + bias + (optional) ReLU kernel.  Weights arrive in bf16.
# ----------------------------------------------------------------------------
def _matmul_bias_act_kernel(x_ref, w_ref, b_ref, o_ref, *, apply_relu):
    x = x_ref[...].astype(jnp.bfloat16)                     # no-op if already bf16
    y = jnp.dot(x, w_ref[...], preferred_element_type=jnp.float32)   # MXU, f32 acc
    y = y + b_ref[...]
    if apply_relu:
        y = jnp.maximum(y, 0.0)
    o_ref[...] = y.astype(o_ref.dtype)


def matmul_bias_act(x, w, b, *, apply_relu, out_dtype, tile_m=None):
    """o = act(x @ w + b); x:(M,K), w:(K,N) bf16, b:(N,).  M tiled/pipelined."""
    M, K = x.shape
    Kw, N = w.shape
    assert K == Kw and b.shape == (N,)
    if tile_m is None:
        tile_m = _DEFAULT_TILE_M

    if M <= tile_m:
        tm = M                                    # single full-extent block (legal)
    else:
        tm = max(8, (tile_m // 8) * 8)            # (8,128) rule on the tiled dim
    grid_m = (M + tm - 1) // tm                   # ragged last block masked by Pallas

    x_spec = _block_spec((tm, K), lambda i: (i, 0),
                         buffers=3 if grid_m >= 3 else None)

    return pl.pallas_call(
        functools.partial(_matmul_bias_act_kernel, apply_relu=apply_relu),
        out_shape=jax.ShapeDtypeStruct((M, N), out_dtype),
        grid=(grid_m,),
        in_specs=[
            x_spec,
            pl.BlockSpec((K, N), lambda i: (0, 0)),
            pl.BlockSpec((1, N), lambda i: (0, 0)),
        ],
        out_specs=pl.BlockSpec((tm, N), lambda i: (i, 0)),
        compiler_params=pltpu.CompilerParams(
            dimension_semantics=("parallel",),
            vmem_limit_bytes=_VMEM_LIMIT_BYTES),
    )(x, w, b.reshape(1, N))


# ----------------------------------------------------------------------------
# Fused fc + dueling head kernel:
#   x -> ReLU(x @ Wfc + bfc) -> ReLU(h @ W1 + b1) -> h' @ W2 + b2
# W1 = [w1v || w1a] (512,512); W2 is block-diagonal (512, 1+A) so value and
# advantage come out of one matmul: [value | advantage].
# ----------------------------------------------------------------------------
def _fc_dueling_kernel(x_ref, wfc_ref, bfc_ref, w1_ref, b1_ref, w2_ref, b2_ref,
                       q_ref, *, num_actions):
    x = x_ref[...].astype(jnp.bfloat16)
    h = jnp.dot(x, wfc_ref[...], preferred_element_type=jnp.float32) + bfc_ref[...]
    h = jnp.maximum(h, 0.0)                                          # (TB, 512)
    g = jnp.dot(h.astype(jnp.bfloat16), w1_ref[...],
                preferred_element_type=jnp.float32) + b1_ref[...]
    g = jnp.maximum(g, 0.0)                                          # (TB, 512)
    va = jnp.dot(g.astype(jnp.bfloat16), w2_ref[...],
                 preferred_element_type=jnp.float32) + b2_ref[...]   # (TB, 1+A)
    value = va[:, 0:1]
    adv = va[:, 1:1 + num_actions]
    adv_mean = jnp.mean(adv, axis=1, keepdims=True)
    q_ref[...] = (value + adv - adv_mean).astype(q_ref.dtype)


def fc_dueling_pallas(x, p, *, tile_b=None):
    B, F = x.shape
    A = int(p["head_b2"].shape[0]) - 1
    if tile_b is None:
        tile_b = _DEFAULT_TILE_M

    if B > tile_b:
        tb = max(8, (tile_b // 8) * 8)
    elif B >= 16:
        # split into >=2 blocks so the "parallel" axis can use both TCs on v7x
        tb = ((B + 15) // 16) * 8
    else:
        tb = B
    grid_b = (B + tb - 1) // tb

    in_specs = [
        pl.BlockSpec((tb, F), lambda i: (i, 0)),
        pl.BlockSpec((F, 512), lambda i: (0, 0)),
        pl.BlockSpec((1, 512), lambda i: (0, 0)),
        pl.BlockSpec((512, 512), lambda i: (0, 0)),
        pl.BlockSpec((1, 512), lambda i: (0, 0)),
        pl.BlockSpec((512, A + 1), lambda i: (0, 0)),
        pl.BlockSpec((1, A + 1), lambda i: (0, 0)),
    ]
    return pl.pallas_call(
        functools.partial(_fc_dueling_kernel, num_actions=A),
        out_shape=jax.ShapeDtypeStruct((B, A), jnp.float32),
        grid=(grid_b,),
        in_specs=in_specs,
        out_specs=pl.BlockSpec((tb, A), lambda i: (i, 0)),
        compiler_params=pltpu.CompilerParams(
            dimension_semantics=("parallel",),
            vmem_limit_bytes=_VMEM_LIMIT_BYTES),
    )(x, p["fc_w"], p["fc_b"].reshape(1, 512),
      p["head_w1"], p["head_b1"].reshape(1, 512),
      p["head_w2"], p["head_b2"].reshape(1, A + 1))


# ----------------------------------------------------------------------------
# Conv = im2col (JAX slicing glue, bf16) + Pallas matmul against a
# block-diagonal weight so the kernel writes lane-dense (g*Cout)-wide slabs.
# ----------------------------------------------------------------------------
def _pick_row_group(ow, cout, max_lanes=256):
    """Largest divisor g of OW with g*Cout <= max_lanes (lane-dense stores)."""
    g = 1
    for cand in range(1, ow + 1):
        if ow % cand == 0 and cand * cout <= max_lanes:
            g = cand
    return g


def _block_diag(w_mat, g):
    """(K,N) -> block-diagonal (g*K, g*N): row-group g outputs in one matmul."""
    if g == 1:
        return w_mat
    k, n = w_mat.shape
    wbd = jnp.zeros((g * k, g * n), w_mat.dtype)
    for i in range(g):
        wbd = wbd.at[i * k:(i + 1) * k, i * n:(i + 1) * n].set(w_mat)
    return wbd


def _space_to_depth(x_nhwc, block=4):
    n, h, w, c = x_nhwc.shape
    x = x_nhwc.reshape(n, h // block, block, w // block, block, c)
    x = jnp.transpose(x, (0, 1, 3, 2, 4, 5))
    return x.reshape(n, h // block, w // block, block * block * c)


def conv2d_relu(x_nhwc, w_bd, b_bd, *, cout, ksize, stride):
    """w_bd: block-diagonal (g*KH*KW*C, g*cout) bf16; b_bd: (g*cout,) f32."""
    N, H, W, C = x_nhwc.shape
    KH, KW = ksize
    OH = (H - KH) // stride + 1
    OW = (W - KW) // stride + 1
    g = w_bd.shape[1] // cout
    assert w_bd.shape[0] == g * KH * KW * C and (N * OH * OW) % g == 0

    cols = []
    for kh in range(KH):
        for kw in range(KW):
            cols.append(
                x_nhwc[:, kh:kh + (OH - 1) * stride + 1:stride,
                          kw:kw + (OW - 1) * stride + 1:stride, :])   # (N,OH,OW,C)
    # (N*OH*OW, K) -> (N*OH*OW/g, g*K) is a contiguous (free) reshape.
    patches = jnp.concatenate(cols, axis=-1).reshape(N * OH * OW // g, g * KH * KW * C)
    y = matmul_bias_act(patches, w_bd, b_bd, apply_relu=True, out_dtype=jnp.bfloat16)
    return y.reshape(N, OH, OW, cout)      # (M/g, g*Cout) slab -> NHWC, free


# ----------------------------------------------------------------------------
# DQN module (parameters + forward)
# ----------------------------------------------------------------------------
def conv_out_dims(input_h, input_w):
    h1, w1 = (input_h - 8) // 4 + 1, (input_w - 8) // 4 + 1
    h2, w2 = (h1 - 4) // 2 + 1, (w1 - 4) // 2 + 1
    h3, w3 = (h2 - 3) // 1 + 1, (w2 - 3) // 1 + 1
    return (h1, w1), (h2, w2), (h3, w3)


def init_dqn_params(key, input_h, input_w, num_actions):
    (h1, w1), (h2, w2), (h3, w3) = conv_out_dims(input_h, input_w)
    flattened = 64 * h3 * w3
    bf16 = jnp.bfloat16

    def dense(key, fan_in, shape):
        bound = 1.0 / jnp.sqrt(jnp.float32(fan_in))
        return jax.random.uniform(key, shape, jnp.float32, -bound, bound)

    keys = jax.random.split(key, 16)

    # ----- conv weights (HWIO), then pre-packed into bf16 matmul matrices ----
    conv1_w = dense(keys[0], 3 * 8 * 8, (8, 8, 3, 32))
    conv1_b = dense(keys[1], 3 * 8 * 8, (32,))
    conv2_w = dense(keys[2], 32 * 4 * 4, (4, 4, 32, 64))
    conv2_b = dense(keys[3], 32 * 4 * 4, (64,))
    conv3_w = dense(keys[4], 64 * 3 * 3, (3, 3, 64, 64))
    conv3_b = dense(keys[5], 64 * 3 * 3, (64,))

    use_s2d = (input_h % 4 == 0) and (input_w % 4 == 0)
    if use_s2d:
        # 8x8/4 conv over 3ch == 2x2/1 conv over 48ch of space-to-depth input.
        base1 = conv1_w.reshape(2, 4, 2, 4, 3, 32).transpose(0, 2, 1, 3, 4, 5)
        base1 = base1.reshape(2 * 2 * 48, 32)
    else:
        base1 = conv1_w.reshape(8 * 8 * 3, 32)

    g1 = _pick_row_group(w1, 32)
    g2 = _pick_row_group(w2, 64)
    g3 = _pick_row_group(w3, 64)

    # ----- fused dueling head (per-stream layers, PyTorch-equivalent) --------
    w1v = dense(keys[8], 512, (512, 256));  b1v = dense(keys[9], 512, (256,))
    w2v = dense(keys[10], 256, (256, 1));   b2v = dense(keys[11], 256, (1,))
    w1a = dense(keys[12], 512, (512, 256)); b1a = dense(keys[13], 512, (256,))
    w2a = dense(keys[14], 256, (256, num_actions))
    b2a = dense(keys[15], 256, (num_actions,))

    head_w1 = jnp.concatenate([w1v, w1a], axis=1)             # (512, 512)
    head_b1 = jnp.concatenate([b1v, b1a], axis=0)             # (512,)
    head_w2 = jnp.zeros((512, 1 + num_actions), jnp.float32)  # block-diagonal
    head_w2 = head_w2.at[:256, 0:1].set(w2v)
    head_w2 = head_w2.at[256:, 1:].set(w2a)
    head_b2 = jnp.concatenate([b2v, b2a], axis=0)             # (1+A,)

    p = {
        # conv weights: bf16 block-diagonal matmul matrices + tiled f32 biases
        "conv1_wmat": _block_diag(base1.astype(bf16), g1),
        "conv1_b": jnp.tile(conv1_b, g1),
        "conv2_wmat": _block_diag(conv2_w.reshape(4 * 4 * 32, 64).astype(bf16), g2),
        "conv2_b": jnp.tile(conv2_b, g2),
        "conv3_wmat": _block_diag(conv3_w.reshape(3 * 3 * 64, 64).astype(bf16), g3),
        "conv3_b": jnp.tile(conv3_b, g3),
        # fc rows are in NHWC flatten order (h, w, c); converting real PyTorch
        # (NCHW-flatten) weights needs a one-time row permutation here.
        "fc_w": dense(keys[6], flattened, (flattened, 512)).astype(bf16),
        "fc_b": dense(keys[7], flattened, (512,)),
        # fused dueling head (weights bf16, biases f32)
        "head_w1": head_w1.astype(bf16), "head_b1": head_b1,
        "head_w2": head_w2.astype(bf16), "head_b2": head_b2,
    }
    return p, flattened


def dqn_forward(params, x_nchw):
    """x_nchw: (N, 3, H, W) float32 -> Q-values (N, num_actions) float32.

    Input H, W must match the sizes used at init (same requirement as the
    PyTorch module, whose fc size is derived from a dummy forward).
    """
    p = params
    x = jnp.transpose(x_nchw, (0, 2, 3, 1)).astype(jnp.bfloat16)  # NCHW->NHWC once
    _, H, W, _ = x.shape
    if H % 4 == 0 and W % 4 == 0:          # same decision as init (s2d conv1)
        x = _space_to_depth(x, 4)
        x = conv2d_relu(x, p["conv1_wmat"], p["conv1_b"], cout=32, ksize=(2, 2), stride=1)
    else:
        x = conv2d_relu(x, p["conv1_wmat"], p["conv1_b"], cout=32, ksize=(8, 8), stride=4)
    x = conv2d_relu(x, p["conv2_wmat"], p["conv2_b"], cout=64, ksize=(4, 4), stride=2)
    x = conv2d_relu(x, p["conv3_wmat"], p["conv3_b"], cout=64, ksize=(3, 3), stride=1)
    n = x.shape[0]
    x = x.reshape(n, -1)                    # NHWC flatten (fc_w rows match)
    return fc_dueling_pallas(x, p)          # fused fc + dueling head


# ----------------------------------------------------------------------------
if __name__ == "__main__":
    INPUT_H = INPUT_W = 36       # small: conv stack reduces 36 -> 8 -> 3 -> 1
    BATCH = 2
    NUM_ACTIONS = 6

    key = jax.random.PRNGKey(0)
    pkey, xkey = jax.random.split(key)
    params, flattened = init_dqn_params(pkey, INPUT_H, INPUT_W, NUM_ACTIONS)

    x = jax.random.normal(xkey, (BATCH, 3, INPUT_H, INPUT_W), jnp.float32)

    q_vals = jax.jit(dqn_forward)(params, x)
    q_vals = jax.block_until_ready(q_vals)

    assert q_vals.shape == (BATCH, NUM_ACTIONS)
    assert q_vals.dtype == jnp.float32
    assert bool(jnp.all(jnp.isfinite(q_vals)))
    print("KERNEL_OK")
</pallas_src>

<mosaic_0001>
module attributes {stable_mosaic.version = 11 : i64} {
  func.func @_matmul_bias_act_kernel(%arg0: i32, %arg1: memref<16x1536xbf16, #tpu.memory_space<vmem>>, %arg2: memref<1536x256xbf16, #tpu.memory_space<vmem>>, %arg3: memref<1x256xf32, #tpu.memory_space<vmem>>, %arg4: memref<16x256xbf16, #tpu.memory_space<vmem>>) attributes {dimension_semantics = [#tpu.dimension_semantics<parallel>], iteration_bounds = array<i64: 1>, scalar_prefetch = 0 : i64, scratch_operands = 0 : i64, tpu.core_type = #tpu.core_type<tc>, window_params = [{transform_indices = @transform_0, window_bounds = array<i64: 16, 1536>}, {pipeline_mode = #tpu.pipeline_mode<synchronous>, transform_indices = @transform_1, window_bounds = array<i64: 1536, 256>}, {pipeline_mode = #tpu.pipeline_mode<synchronous>, transform_indices = @transform_2, window_bounds = array<i64: 1, 256>}, {transform_indices = @transform_3, window_bounds = array<i64: 16, 256>}]} {
    %c0 = arith.constant 0 : index
    %c0_0 = arith.constant 0 : index
    %0 = vector.load %arg1[%c0, %c0_0] : memref<16x1536xbf16, #tpu.memory_space<vmem>>, vector<16x1536xbf16>
    %c0_1 = arith.constant 0 : index
    %c0_2 = arith.constant 0 : index
    %1 = vector.load %arg2[%c0_1, %c0_2] : memref<1536x256xbf16, #tpu.memory_space<vmem>>, vector<1536x256xbf16>
    %cst = arith.constant dense<0.000000e+00> : vector<16x256xf32>
    %2 = tpu.matmul %0, %1, %cst {dimension_numbers = #tpu.dot_dimension_numbers<[1], [0], [0], [1], [0, 0, 1, 1], [], []>} : vector<16x1536xbf16>, vector<1536x256xbf16>, vector<16x256xf32> -> vector<16x256xf32>
    %c0_3 = arith.constant 0 : index
    %c0_4 = arith.constant 0 : index
    %3 = vector.load %arg3[%c0_3, %c0_4] : memref<1x256xf32, #tpu.memory_space<vmem>>, vector<1x256xf32>
    %4 = vector.broadcast %3 : vector<1x256xf32> to vector<16x256xf32>
    %5 = arith.addf %2, %4 : vector<16x256xf32>
    %cst_5 = arith.constant 0.000000e+00 : f32
    %6 = vector.broadcast %cst_5 : f32 to vector<16x256xf32>
    %7 = arith.maximumf %5, %6 : vector<16x256xf32>
    %8 = arith.truncf %7 : vector<16x256xf32> to vector<16x256xbf16>
    %c0_6 = arith.constant 0 : index
    %c0_7 = arith.constant 0 : index
    %9 = vector.load %arg4[%c0_6, %c0_7] : memref<16x256xbf16, #tpu.memory_space<vmem>>, vector<16x256xbf16>
    tpu.vector_store %arg4[%c0_6, %c0_7], %8 {strides = array<i32>} : memref<16x256xbf16, #tpu.memory_space<vmem>>, vector<16x256xbf16>,
    return
  }
  func.func @transform_0(%arg0: i32) -> (i32, i32) {
    %c0_i32 = arith.constant 0 : i32
    %c0_i32_0 = arith.constant 0 : i32
    return %arg0, %c0_i32 : i32, i32
  }
  func.func @transform_1(%arg0: i32) -> (i32, i32) {
    %c0_i32 = arith.constant 0 : i32
    %c0_i32_0 = arith.constant 0 : i32
    %c0_i32_1 = arith.constant 0 : i32
    return %c0_i32, %c0_i32_0 : i32, i32
  }
  func.func @transform_2(%arg0: i32) -> (i32, i32) {
    %c0_i32 = arith.constant 0 : i32
    %c0_i32_0 = arith.constant 0 : i32
    %c0_i32_1 = arith.constant 0 : i32
    return %c0_i32, %c0_i32_0 : i32, i32
  }
  func.func @transform_3(%arg0: i32) -> (i32, i32) {
    %c0_i32 = arith.constant 0 : i32
    %c0_i32_0 = arith.constant 0 : i32
    return %arg0, %c0_i32 : i32, i32
  }
}

module attributes {stable_mosaic.version = 11 : i64} {
  func.func @_matmul_bias_act_kernel(%arg0: i32, %arg1: memref<6x1536xbf16, #tpu.memory_space<vmem>>, %arg2: memref<1536x192xbf16, #tpu.memory_space<vmem>>, %arg3: memref<1x192xf32, #tpu.memory_space<vmem>>, %arg4: memref<6x192xbf16, #tpu.memory_space<vmem>>) attributes {dimension_semantics = [#tpu.dimension_semantics<parallel>], iteration_bounds = array<i64: 1>, scalar_prefetch = 0 : i64, scratch_operands = 0 : i64, tpu.core_type = #tpu.core_type<tc>, window_params = [{transform_indices = @transform_0, window_bounds = array<i64: 6, 1536>}, {pipeline_mode = #tpu.pipeline_mode<synchronous>, transform_indices = @transform_1, window_bounds = array<i64: 1536, 192>}, {pipeline_mode = #tpu.pipeline_mode<synchronous>, transform_indices = @transform_2, window_bounds = array<i64: 1, 192>}, {transform_indices = @transform_3, window_bounds = array<i64: 6, 192>}]} {
    %c0 = arith.constant 0 : index
    %c0_0 = arith.constant 0 : index
    %0 = vector.load %arg1[%c0, %c0_0] : memref<6x1536xbf16, #tpu.memory_space<vmem>>, vector<6x1536xbf16>
    %c0_1 = arith.constant 0 : index
    %c0_2 = arith.constant 0 : index
    %1 = vector.load %arg2[%c0_1, %c0_2] : memref<1536x192xbf16, #tpu.memory_space<vmem>>, vector<1536x192xbf16>
    %cst = arith.constant dense<0.000000e+00> : vector<6x192xf32>
    %2 = tpu.matmul %0, %1, %cst {dimension_numbers = #tpu.dot_dimension_numbers<[1], [0], [0], [1], [0, 0, 1, 1], [], []>} : vector<6x1536xbf16>, vector<1536x192xbf16>, vector<6x192xf32> -> vector<6x192xf32>
    %c0_3 = arith.constant 0 : index
    %c0_4 = arith.constant 0 : index
    %3 = vector.load %arg3[%c0_3, %c0_4] : memref<1x192xf32, #tpu.memory_space<vmem>>, vector<1x192xf32>
    %4 = vector.broadcast %3 : vector<1x192xf32> to vector<6x192xf32>
    %5 = arith.addf %2, %4 : vector<6x192xf32>
    %cst_5 = arith.constant 0.000000e+00 : f32
    %6 = vector.broadcast %cst_5 : f32 to vector<6x192xf32>
    %7 = arith.maximumf %5, %6 : vector<6x192xf32>
    %8 = arith.truncf %7 : vector<6x192xf32> to vector<6x192xbf16>
    %c0_6 = arith.constant 0 : index
    %c0_7 = arith.constant 0 : index
    %9 = vector.load %arg4[%c0_6, %c0_7] : memref<6x192xbf16, #tpu.memory_space<vmem>>, vector<6x192xbf16>
    tpu.vector_store %arg4[%c0_6, %c0_7], %8 {strides = array<i32>} : memref<6x192xbf16, #tpu.memory_space<vmem>>, vector<6x192xbf16>,
    return
  }
  func.func @transform_0(%arg0: i32) -> (i32, i32) {
    %c0_i32 = arith.constant 0 : i32
    %c0_i32_0 = arith.constant 0 : i32
    return %arg0, %c0_i32 : i32, i32
  }
  func.func @transform_1(%arg0: i32) -> (i32, i32) {
    %c0_i32 = arith.constant 0 : i32
    %c0_i32_0 = arith.constant 0 : i32
    %c0_i32_1 = arith.constant 0 : i32
    return %c0_i32, %c0_i32_0 : i32, i32
  }
  func.func @transform_2(%arg0: i32) -> (i32, i32) {
    %c0_i32 = arith.constant 0 : i32
    %c0_i32_0 = arith.constant 0 : i32
    %c0_i32_1 = arith.constant 0 : i32
    return %c0_i32, %c0_i32_0 : i32, i32
  }
  func.func @transform_3(%arg0: i32) -> (i32, i32) {
    %c0_i32 = arith.constant 0 : i32
    %c0_i32_0 = arith.constant 0 : i32
    return %arg0, %c0_i32 : i32, i32
  }
}

module attributes {stable_mosaic.version = 11 : i64} {
  func.func @_matmul_bias_act_kernel(%arg0: i32, %arg1: memref<2x576xbf16, #tpu.memory_space<vmem>>, %arg2: memref<576x64xbf16, #tpu.memory_space<vmem>>, %arg3: memref<1x64xf32, #tpu.memory_space<vmem>>, %arg4: memref<2x64xbf16, #tpu.memory_space<vmem>>) attributes {dimension_semantics = [#tpu.dimension_semantics<parallel>], iteration_bounds = array<i64: 1>, scalar_prefetch = 0 : i64, scratch_operands = 0 : i64, tpu.core_type = #tpu.core_type<tc>, window_params = [{transform_indices = @transform_0, window_bounds = array<i64: 2, 576>}, {pipeline_mode = #tpu.pipeline_mode<synchronous>, transform_indices = @transform_1, window_bounds = array<i64: 576, 64>}, {pipeline_mode = #tpu.pipeline_mode<synchronous>, transform_indices = @transform_2, window_bounds = array<i64: 1, 64>}, {transform_indices = @transform_3, window_bounds = array<i64: 2, 64>}]} {
    %c0 = arith.constant 0 : index
    %c0_0 = arith.constant 0 : index
    %0 = vector.load %arg1[%c0, %c0_0] : memref<2x576xbf16, #tpu.memory_space<vmem>>, vector<2x576xbf16>
    %c0_1 = arith.constant 0 : index
    %c0_2 = arith.constant 0 : index
    %1 = vector.load %arg2[%c0_1, %c0_2] : memref<576x64xbf16, #tpu.memory_space<vmem>>, vector<576x64xbf16>
    %cst = arith.constant dense<0.000000e+00> : vector<2x64xf32>
    %2 = tpu.matmul %0, %1, %cst {dimension_numbers = #tpu.dot_dimension_numbers<[1], [0], [0], [1], [0, 0, 1, 1], [], []>} : vector<2x576xbf16>, vector<576x64xbf16>, vector<2x64xf32> -> vector<2x64xf32>
    %c0_3 = arith.constant 0 : index
    %c0_4 = arith.constant 0 : index
    %3 = vector.load %arg3[%c0_3, %c0_4] : memref<1x64xf32, #tpu.memory_space<vmem>>, vector<1x64xf32>
    %4 = vector.broadcast %3 : vector<1x64xf32> to vector<2x64xf32>
    %5 = arith.addf %2, %4 : vector<2x64xf32>
    %cst_5 = arith.constant 0.000000e+00 : f32
    %6 = vector.broadcast %cst_5 : f32 to vector<2x64xf32>
    %7 = arith.maximumf %5, %6 : vector<2x64xf32>
    %8 = arith.truncf %7 : vector<2x64xf32> to vector<2x64xbf16>
    %c0_6 = arith.constant 0 : index
    %c0_7 = arith.constant 0 : index
    %9 = vector.load %arg4[%c0_6, %c0_7] : memref<2x64xbf16, #tpu.memory_space<vmem>>, vector<2x64xbf16>
    tpu.vector_store %arg4[%c0_6, %c0_7], %8 {strides = array<i32>} : memref<2x64xbf16, #tpu.memory_space<vmem>>, vector<2x64xbf16>,
    return
  }
  func.func @transform_0(%arg0: i32) -> (i32, i32) {
    %c0_i32 = arith.constant 0 : i32
    %c0_i32_0 = arith.constant 0 : i32
    return %arg0, %c0_i32 : i32, i32
  }
  func.func @transform_1(%arg0: i32) -> (i32, i32) {
    %c0_i32 = arith.constant 0 : i32
    %c0_i32_0 = arith.constant 0 : i32
    %c0_i32_1 = arith.constant 0 : i32
    return %c0_i32, %c0_i32_0 : i32, i32
  }
  func.func @transform_2(%arg0: i32) -> (i32, i32) {
    %c0_i32 = arith.constant 0 : i32
    %c0_i32_0 = arith.constant 0 : i32
    %c0_i32_1 = arith.constant 0 : i32
    return %c0_i32, %c0_i32_0 : i32, i32
  }
  func.func @transform_3(%arg0: i32) -> (i32, i32) {
    %c0_i32 = arith.constant 0 : i32
    %c0_i32_0 = arith.constant 0 : i32
    return %arg0, %c0_i32 : i32, i32
  }
}

module attributes {stable_mosaic.version = 11 : i64} {
  func.func @_fc_dueling_kernel(%arg0: i32, %arg1: memref<2x64xbf16, #tpu.memory_space<vmem>>, %arg2: memref<64x512xbf16, #tpu.memory_space<vmem>>, %arg3: memref<1x512xf32, #tpu.memory_space<vmem>>, %arg4: memref<512x512xbf16, #tpu.memory_space<vmem>>, %arg5: memref<1x512xf32, #tpu.memory_space<vmem>>, %arg6: memref<512x7xbf16, #tpu.memory_space<vmem>>, %arg7: memref<1x7xf32, #tpu.memory_space<vmem>>, %arg8: memref<2x6xf32, #tpu.memory_space<vmem>>) attributes {dimension_semantics = [#tpu.dimension_semantics<parallel>], iteration_bounds = array<i64: 1>, scalar_prefetch = 0 : i64, scratch_operands = 0 : i64, tpu.core_type = #tpu.core_type<tc>, window_params = [{transform_indices = @transform_0, window_bounds = array<i64: 2, 64>}, {pipeline_mode = #tpu.pipeline_mode<synchronous>, transform_indices = @transform_1, window_bounds = array<i64: 64, 512>}, {pipeline_mode = #tpu.pipeline_mode<synchronous>, transform_indices = @transform_2, window_bounds = array<i64: 1, 512>}, {pipeline_mode = #tpu.pipeline_mode<synchronous>, transform_indices = @transform_3, window_bounds = array<i64: 512, 512>}, {pipeline_mode = #tpu.pipeline_mode<synchronous>, transform_indices = @transform_4, window_bounds = array<i64: 1, 512>}, {pipeline_mode = #tpu.pipeline_mode<synchronous>, transform_indices = @transform_5, window_bounds = array<i64: 512, 7>}, {pipeline_mode = #tpu.pipeline_mode<synchronous>, transform_indices = @transform_6, window_bounds = array<i64: 1, 7>}, {transform_indices = @transform_7, window_bounds = array<i64: 2, 6>}]} {
    %c0 = arith.constant 0 : index
    %c0_0 = arith.constant 0 : index
    %0 = vector.load %arg1[%c0, %c0_0] : memref<2x64xbf16, #tpu.memory_space<vmem>>, vector<2x64xbf16>
    %c0_1 = arith.constant 0 : index
    %c0_2 = arith.constant 0 : index
    %1 = vector.load %arg2[%c0_1, %c0_2] : memref<64x512xbf16, #tpu.memory_space<vmem>>, vector<64x512xbf16>
    %cst = arith.constant dense<0.000000e+00> : vector<2x512xf32>
    %2 = tpu.matmul %0, %1, %cst {dimension_numbers = #tpu.dot_dimension_numbers<[1], [0], [0], [1], [0, 0, 1, 1], [], []>} : vector<2x64xbf16>, vector<64x512xbf16>, vector<2x512xf32> -> vector<2x512xf32>
    %c0_3 = arith.constant 0 : index
    %c0_4 = arith.constant 0 : index
    %3 = vector.load %arg3[%c0_3, %c0_4] : memref<1x512xf32, #tpu.memory_space<vmem>>, vector<1x512xf32>
    %4 = vector.broadcast %3 : vector<1x512xf32> to vector<2x512xf32>
    %5 = arith.addf %2, %4 : vector<2x512xf32>
    %cst_5 = arith.constant 0.000000e+00 : f32
    %6 = vector.broadcast %cst_5 : f32 to vector<2x512xf32>
    %7 = arith.maximumf %5, %6 : vector<2x512xf32>
    %8 = arith.truncf %7 : vector<2x512xf32> to vector<2x512xbf16>
    %c0_6 = arith.constant 0 : index
    %c0_7 = arith.constant 0 : index
    %9 = vector.load %arg4[%c0_6, %c0_7] : memref<512x512xbf16, #tpu.memory_space<vmem>>, vector<512x512xbf16>
    %cst_8 = arith.constant dense<0.000000e+00> : vector<2x512xf32>
    %10 = tpu.matmul %8, %9, %cst_8 {dimension_numbers = #tpu.dot_dimension_numbers<[1], [0], [0], [1], [0, 0, 1, 1], [], []>} : vector<2x512xbf16>, vector<512x512xbf16>, vector<2x512xf32> -> vector<2x512xf32>
    %c0_9 = arith.constant 0 : index
    %c0_10 = arith.constant 0 : index
    %11 = vector.load %arg5[%c0_9, %c0_10] : memref<1x512xf32, #tpu.memory_space<vmem>>, vector<1x512xf32>
    %12 = vector.broadcast %11 : vector<1x512xf32> to vector<2x512xf32>
    %13 = arith.addf %10, %12 : vector<2x512xf32>
    %cst_11 = arith.constant 0.000000e+00 : f32
    %14 = vector.broadcast %cst_11 : f32 to vector<2x512xf32>
    %15 = arith.maximumf %13, %14 : vector<2x512xf32>
    %16 = arith.truncf %15 : vector<2x512xf32> to vector<2x512xbf16>
    %c0_12 = arith.constant 0 : index
    %c0_13 = arith.constant 0 : index
    %17 = vector.load %arg6[%c0_12, %c0_13] : memref<512x7xbf16, #tpu.memory_space<vmem>>, vector<512x7xbf16>
    %cst_14 = arith.constant dense<0.000000e+00> : vector<2x7xf32>
    %18 = tpu.matmul %16, %17, %cst_14 {dimension_numbers = #tpu.dot_dimension_numbers<[1], [0], [0], [1], [0, 0, 1, 1], [], []>} : vector<2x512xbf16>, vector<512x7xbf16>, vector<2x7xf32> -> vector<2x7xf32>
    %c0_15 = arith.constant 0 : index
    %c0_16 = arith.constant 0 : index
    %19 = vector.load %arg7[%c0_15, %c0_16] : memref<1x7xf32, #tpu.memory_space<vmem>>, vector<1x7xf32>
    %20 = vector.broadcast %19 : vector<1x7xf32> to vector<2x7xf32>
    %21 = arith.addf %18, %20 : vector<2x7xf32>
    %22 = vector.extract_strided_slice %21 {offsets = [0, 0], sizes = [2, 1], strides = [1, 1]} : vector<2x7xf32> to vector<2x1xf32>
    %23 = vector.extract_strided_slice %21 {offsets = [0, 1], sizes = [2, 6], strides = [1, 1]} : vector<2x7xf32> to vector<2x6xf32>
    %cst_17 = arith.constant dense<0.000000e+00> : vector<2xf32>
    %24 = vector.multi_reduction <add>, %23, %cst_17 [1] : vector<2x6xf32> to vector<2xf32>
    %25 = vector.shape_cast %24 : vector<2xf32> to vector<2x1xf32>
    %cst_18 = arith.constant 6.000000e+00 : f32
    %26 = vector.broadcast %cst_18 : f32 to vector<2x1xf32>
    %27 = arith.divf %25, %26 : vector<2x1xf32>
    %28 = vector.broadcast %22 : vector<2x1xf32> to vector<2x6xf32>
    %29 = arith.addf %28, %23 : vector<2x6xf32>
    %30 = vector.broadcast %27 : vector<2x1xf32> to vector<2x6xf32>
    %31 = arith.subf %29, %30 : vector<2x6xf32>
    %c0_19 = arith.constant 0 : index
    %c0_20 = arith.constant 0 : index
    %32 = vector.load %arg8[%c0_19, %c0_20] : memref<2x6xf32, #tpu.memory_space<vmem>>, vector<2x6xf32>
    tpu.vector_store %arg8[%c0_19, %c0_20], %31 {strides = array<i32>} : memref<2x6xf32, #tpu.memory_space<vmem>>, vector<2x6xf32>,
    return
  }
  func.func @transform_0(%arg0: i32) -> (i32, i32) {
    %c0_i32 = arith.constant 0 : i32
    %c0_i32_0 = arith.constant 0 : i32
    return %arg0, %c0_i32 : i32, i32
  }
  func.func @transform_1(%arg0: i32) -> (i32, i32) {
    %c0_i32 = arith.constant 0 : i32
    %c0_i32_0 = arith.constant 0 : i32
    %c0_i32_1 = arith.constant 0 : i32
    return %c0_i32, %c0_i32_0 : i32, i32
  }
  func.func @transform_2(%arg0: i32) -> (i32, i32) {
    %c0_i32 = arith.constant 0 : i32
    %c0_i32_0 = arith.constant 0 : i32
    %c0_i32_1 = arith.constant 0 : i32
    return %c0_i32, %c0_i32_0 : i32, i32
  }
  func.func @transform_3(%arg0: i32) -> (i32, i32) {
    %c0_i32 = arith.constant 0 : i32
    %c0_i32_0 = arith.constant 0 : i32
    %c0_i32_1 = arith.constant 0 : i32
    return %c0_i32, %c0_i32_0 : i32, i32
  }
  func.func @transform_4(%arg0: i32) -> (i32, i32) {
    %c0_i32 = arith.constant 0 : i32
    %c0_i32_0 = arith.constant 0 : i32
    %c0_i32_1 = arith.constant 0 : i32
    return %c0_i32, %c0_i32_0 : i32, i32
  }
  func.func @transform_5(%arg0: i32) -> (i32, i32) {
    %c0_i32 = arith.constant 0 : i32
    %c0_i32_0 = arith.constant 0 : i32
    %c0_i32_1 = arith.constant 0 : i32
    return %c0_i32, %c0_i32_0 : i32, i32
  }
  func.func @transform_6(%arg0: i32) -> (i32, i32) {
    %c0_i32 = arith.constant 0 : i32
    %c0_i32_0 = arith.constant 0 : i32
    %c0_i32_1 = arith.constant 0 : i32
    return %c0_i32, %c0_i32_0 : i32, i32
  }
  func.func @transform_7(%arg0: i32) -> (i32, i32) {
    %c0_i32 = arith.constant 0 : i32
    %c0_i32_0 = arith.constant 0 : i32
    return %arg0, %c0_i32 : i32, i32
  }
}

</mosaic_0001>

<bundles_post_ra>
// kernel: dqn_forward.4
= control target key start
LH: loop header
LB: loop body
LE: loop exit
PB: predicated region body
PF: predicated region fallthrough
CT: control target
= control target key end

     0   :  { %s3923_s1 = inlined_call_operand.vmem [shape: bf16[1536,256], index: 1, kind: input, shape index: {}]   ;;  %s3924_s0 = inlined_call_operand.vmem [shape: bf16[16,1536], index: 0, kind: input, shape index: {}]   ;;  %s3925_s2 = inlined_call_operand.vmem [shape: f32[1,256], index: 2, kind: input, shape index: {}]   ;;  %s3926_s3 = inlined_call_operand.vmem [shape: bf16[16,256], index: 3, kind: output, shape index: {}]  }
   0x1   :  { %v1698_v0 = vld [vmem:[%s3923_s1 + $0x70] sm:$0xf]  ;;  %v2435_v1 = vld [vmem:[%s3923_s1 + $0x74] sm:$0xf0]  ;;  %v1690_v11 = vld [vmem:[%s3923_s1 + $0x60] sm:$0xf] }
   0x2   :  { %v1762_v2 = vld [vmem:[%s3923_s1 + $0xf0] sm:$0xf]  ;;  %v1699_v3 = vor.u32 %v2435_v1, %v1698_v0  ;;  %v2451_v4 = vld [vmem:[%s3923_s1 + $0xf4] sm:$0xf0]  ;;  %v2433_v13 = vld [vmem:[%s3923_s1 + $0x64] sm:$0xf0] }
   0x3   :  { %v1826_v5 = vld [vmem:[%s3923_s1 + $0x170] sm:$0xf]  ;;  %v2467_v6 = vld [vmem:[%s3923_s1 + $0x174] sm:$0xf0]  ;;  %v1763_v7 = vor.u32 %v2451_v4, %v1762_v2  ;;  %v1754_v14 = vld [vmem:[%s3923_s1 + $0xe0] sm:$0xf]  ;;  %v1691_v16 = vor.u32 %v2433_v13, %v1690_v11 }
   0x4   :  { %v1827_v8 = vor.u32 %v2467_v6, %v1826_v5  ;;  %v1890_v9 = vld [vmem:[%s3923_s1 + $0x1f0] sm:$0xf]  ;;  %v2483_v10 = vld [vmem:[%s3923_s1 + $0x1f4] sm:$0xf0]  ;;  %1244 = vmatpush.bf16.msra.mxu0 %v1699_v3  ;;  %v2449_v15 = vld [vmem:[%s3923_s1 + $0xe4] sm:$0xf0] }
   0x5   :  { %v1891_v12 = vor.u32 %v2483_v10, %v1890_v9  ;;  %1258 = vmatpush.bf16.msra.mxu1 %v1763_v7  ;;  %v1755_v17 = vor.u32 %v2449_v15, %v1754_v14  ;;  %v1818_v18 = vld [vmem:[%s3923_s1 + $0x160] sm:$0xf]  ;;  %v2465_v19 = vld [vmem:[%s3923_s1 + $0x164] sm:$0xf0]  ;;  %v1682_v23 = vld [vmem:[%s3923_s1 + $0x50] sm:$0xf] }
   0x6   :  { %1272 = vmatpush.bf16.msra.mxu2 %v1827_v8  ;;  %v1882_v20 = vld [vmem:[%s3923_s1 + $0x1e0] sm:$0xf]  ;;  %v1819_v21 = vor.u32 %v2465_v19, %v1818_v18  ;;  %v2481_v22 = vld [vmem:[%s3923_s1 + $0x1e4] sm:$0xf0]  ;;  %v2431_v24 = vld [vmem:[%s3923_s1 + $0x54] sm:$0xf0] }
   0x7   :  { %1286 = vmatpush.bf16.msra.mxu3 %v1891_v12  ;;  %v1883_v25 = vor.u32 %v2481_v22, %v1882_v20  ;;  %v1746_v26 = vld [vmem:[%s3923_s1 + $0xd0] sm:$0xf]  ;;  %v2447_v27 = vld [vmem:[%s3923_s1 + $0xd4] sm:$0xf0]  ;;  %v1683_v29 = vor.u32 %v2431_v24, %v1682_v23  ;;  %v1674_v35 = vld [vmem:[%s3923_s1 + $0x40] sm:$0xf] }
   0x8   :  { %v1810_v28 = vld [vmem:[%s3923_s1 + $0x150] sm:$0xf]  ;;  %1245 = vmatpush.bf16.msra.mxu0 %v1691_v16  ;;  %v2463_v30 = vld [vmem:[%s3923_s1 + $0x154] sm:$0xf0]  ;;  %v1747_v33 = vor.u32 %v2447_v27, %v1746_v26  ;;  %v2429_v36 = vld [vmem:[%s3923_s1 + $0x44] sm:$0xf0] }
   0x9   :  { %v1874_v31 = vld [vmem:[%s3923_s1 + $0x1d0] sm:$0xf]  ;;  %v2479_v32 = vld [vmem:[%s3923_s1 + $0x1d4] sm:$0xf0]  ;;  %1259 = vmatpush.bf16.msra.mxu1 %v1755_v17  ;;  %v1811_v34 = vor.u32 %v2463_v30, %v1810_v28  ;;  %v1738_v37 = vld [vmem:[%s3923_s1 + $0xc0] sm:$0xf]  ;;  %v1675_v44 = vor.u32 %v2429_v36, %v1674_v35 }
   0xa   :  { %1273 = vmatpush.bf16.msra.mxu2 %v1819_v21  ;;  %v1875_v38 = vor.u32 %v2479_v32, %v1874_v31  ;;  %v2445_v39 = vld [vmem:[%s3923_s1 + $0xc4] sm:$0xf0]  ;;  %v1802_v40 = vld [vmem:[%s3923_s1 + $0x140] sm:$0xf]  ;;  %v1666_v47 = vld [vmem:[%s3923_s1 + $0x30] sm:$0xf] }
   0xb   :  { %1287 = vmatpush.bf16.msra.mxu3 %v1883_v25  ;;  %v2461_v41 = vld [vmem:[%s3923_s1 + $0x144] sm:$0xf0]  ;;  %v1866_v42 = vld [vmem:[%s3923_s1 + $0x1c0] sm:$0xf]  ;;  %v1739_v45 = vor.u32 %v2445_v39, %v1738_v37  ;;  %v2427_v48 = vld [vmem:[%s3923_s1 + $0x34] sm:$0xf0] }
   0xc   :  { %v2477_v43 = vld [vmem:[%s3923_s1 + $0x1c4] sm:$0xf0]  ;;  %1246 = vmatpush.bf16.msra.mxu0 %v1683_v29  ;;  %v1803_v46 = vor.u32 %v2461_v41, %v1802_v40  ;;  %v1730_v49 = vld [vmem:[%s3923_s1 + $0xb0] sm:$0xf]  ;;  %v2443_v51 = vld [vmem:[%s3923_s1 + $0xb4] sm:$0xf0]  ;;  %v1667_v56 = vor.u32 %v2427_v48, %v1666_v47 }
   0xd   :  { %1260 = vmatpush.bf16.msra.mxu1 %v1747_v33  ;;  %v1867_v50 = vor.u32 %v2477_v43, %v1866_v42  ;;  %v1794_v52 = vld [vmem:[%s3923_s1 + $0x130] sm:$0xf]  ;;  %v2459_v53 = vld [vmem:[%s3923_s1 + $0x134] sm:$0xf0]  ;;  %v1731_v57 = vor.u32 %v2443_v51, %v1730_v49  ;;  %v1658_v59 = vld [vmem:[%s3923_s1 + $0x20] sm:$0xf] }
   0xe   :  { %1274 = vmatpush.bf16.msra.mxu2 %v1811_v34  ;;  %v1858_v54 = vld [vmem:[%s3923_s1 + $0x1b0] sm:$0xf]  ;;  %v2475_v55 = vld [vmem:[%s3923_s1 + $0x1b4] sm:$0xf0]  ;;  %v1795_v58 = vor.u32 %v2459_v53, %v1794_v52  ;;  %v2425_v60 = vld [vmem:[%s3923_s1 + $0x24] sm:$0xf0] }
   0xf   :  { %1288 = vmatpush.bf16.msra.mxu3 %v1875_v38  ;;  %v1722_v61 = vld [vmem:[%s3923_s1 + $0xa0] sm:$0xf]  ;;  %v1859_v62 = vor.u32 %v2475_v55, %v1858_v54  ;;  %v2441_v63 = vld [vmem:[%s3923_s1 + $0xa4] sm:$0xf0]  ;;  %v1659_v4 = vor.u32 %v2425_v60, %v1658_v59  ;;  %v1650_v7 = vld [vmem:[%s3923_s1 + $0x10] sm:$0xf] }
  0x10   :  { %1247 = vmatpush.bf16.msra.mxu0 %v1675_v44  ;;  %v1786_v0 = vld [vmem:[%s3923_s1 + $0x120] sm:$0xf]  ;;  %v2457_v1 = vld [vmem:[%s3923_s1 + $0x124] sm:$0xf0]  ;;  %v1723_v5 = vor.u32 %v2441_v63, %v1722_v61  ;;  %v2423_v8 = vld [vmem:[%s3923_s1 + $0x14] sm:$0xf0] }
  0x11   :  { %1261 = vmatpush.bf16.msra.mxu1 %v1739_v45  ;;  %v1850_v2 = vld [vmem:[%s3923_s1 + $0x1a0] sm:$0xf]  ;;  %v2473_v3 = vld [vmem:[%s3923_s1 + $0x1a4] sm:$0xf0]  ;;  %v1787_v6 = vor.u32 %v2457_v1, %v1786_v0  ;;  %v1714_v9 = vld [vmem:[%s3923_s1 + $0x90] sm:$0xf]  ;;  %v1651_v16 = vor.u32 %v2423_v8, %v1650_v7 }
  0x12   :  { %1275 = vmatpush.bf16.msra.mxu2 %v1803_v46  ;;  %v1851_v10 = vor.u32 %v2473_v3, %v1850_v2  ;;  %v2439_v11 = vld [vmem:[%s3923_s1 + $0x94] sm:$0xf0]  ;;  %v1778_v12 = vld [vmem:[%s3923_s1 + $0x110] sm:$0xf]  ;;  %v1642_v17 = vld [vmem:[%s3923_s1] sm:$0xf] }
  0x13   :  { %1289 = vmatpush.bf16.msra.mxu3 %v1867_v50  ;;  %v2455_v13 = vld [vmem:[%s3923_s1 + $0x114] sm:$0xf0]  ;;  %v1842_v14 = vld [vmem:[%s3923_s1 + $0x190] sm:$0xf]  ;;  %v2421_v18 = vld [vmem:[%s3923_s1 + $0x4] sm:$0xf0]  ;;  %v1715_v19 = vor.u32 %v2439_v11, %v1714_v9 }
  0x14   :  { %1248 = vmatpush.bf16.msra.mxu0 %v1667_v56  ;;  %v2471_v15 = vld [vmem:[%s3923_s1 + $0x194] sm:$0xf0]  ;;  %v1779_v20 = vor.u32 %v2455_v13, %v1778_v12  ;;  %v1706_v21 = vld [vmem:[%s3923_s1 + $0x80] sm:$0xf]  ;;  %v2437_v22 = vld [vmem:[%s3923_s1 + $0x84] sm:$0xf0]  ;;  %v1643_v31 = vor.u32 %v2421_v18, %v1642_v17 }
  0x15   :  { %1262 = vmatpush.bf16.msra.mxu1 %v1731_v57  ;;  %v1770_v23 = vld [vmem:[%s3923_s1 + $0x100] sm:$0xf]  ;;  %v1843_v24 = vor.u32 %v2471_v15, %v1842_v14  ;;  %v2453_v25 = vld [vmem:[%s3923_s1 + $0x104] sm:$0xf0]  ;;  %v1954_v28 = vld [vmem:[%s3923_s1 + $0x270] sm:$0xf]  ;;  %v1707_v35 = vor.u32 %v2437_v22, %v1706_v21 }
  0x16   :  { %1276 = vmatpush.bf16.msra.mxu2 %v1795_v58  ;;  %v1834_v26 = vld [vmem:[%s3923_s1 + $0x180] sm:$0xf]  ;;  %v2469_v27 = vld [vmem:[%s3923_s1 + $0x184] sm:$0xf0]  ;;  %v2499_v29 = vld [vmem:[%s3923_s1 + $0x274] sm:$0xf0]  ;;  %v1771_v36 = vor.u32 %v2453_v25, %v1770_v23 }
  0x17   :  { %1290 = vmatpush.bf16.msra.mxu3 %v1859_v62  ;;  %v2018_v30 = vld [vmem:[%s3923_s1 + $0x2f0] sm:$0xf]  ;;  %v2515_v32 = vld [vmem:[%s3923_s1 + $0x2f4] sm:$0xf0]  ;;  %v1835_v39 = vor.u32 %v2469_v27, %v1834_v26  ;;  %v1955_v40 = vor.u32 %v2499_v29, %v1954_v28  ;;  %v1946_v41 = vld [vmem:[%s3923_s1 + $0x260] sm:$0xf] }
  0x18   :  { %1249 = vmatpush.bf16.msra.mxu0 %v1659_v4  ;;  %v2082_v33 = vld [vmem:[%s3923_s1 + $0x370] sm:$0xf]  ;;  %v2531_v34 = vld [vmem:[%s3923_s1 + $0x374] sm:$0xf0]  ;;  %v2497_v42 = vld [vmem:[%s3923_s1 + $0x264] sm:$0xf0]  ;;  %v2019_v43 = vor.u32 %v2515_v32, %v2018_v30 }
  0x19   :  { %1263 = vmatpush.bf16.msra.mxu1 %v1723_v5  ;;  %v2146_v37 = vld [vmem:[%s3923_s1 + $0x3f0] sm:$0xf]  ;;  %v2547_v38 = vld [vmem:[%s3923_s1 + $0x3f4] sm:$0xf0]  ;;  %v2083_v44 = vor.u32 %v2531_v34, %v2082_v33  ;;  %v2010_v45 = vld [vmem:[%s3923_s1 + $0x2e0] sm:$0xf]  ;;  %v1947_v55 = vor.u32 %v2497_v42, %v1946_v41 }
  0x1a   :  { %1277 = vmatpush.bf16.msra.mxu2 %v1787_v6  ;;  %v2513_v46 = vld [vmem:[%s3923_s1 + $0x2e4] sm:$0xf0]  ;;  %v2074_v47 = vld [vmem:[%s3923_s1 + $0x360] sm:$0xf]  ;;  %v2147_v48 = vor.u32 %v2547_v38, %v2146_v37  ;;  %v2414_v53 = vld [vmem:[%s3924_s0 + $0x2c] sm:$0xf0] }
  0x1b   :  { %1291 = vmatpush.bf16.msra.mxu3 %v1851_v10  ;;  %v2529_v49 = vld [vmem:[%s3923_s1 + $0x364] sm:$0xf0]  ;;  %v2138_v50 = vld [vmem:[%s3923_s1 + $0x3e0] sm:$0xf]  ;;  %v1938_v56 = vld [vmem:[%s3923_s1 + $0x250] sm:$0xf]  ;;  %v2011_v60 = vor.u32 %v2513_v46, %v2010_v45 }
  0x1c   :  { %1250 = vmatpush.bf16.msra.mxu0 %v1651_v16  ;;  %v2545_v51 = vld [vmem:[%s3923_s1 + $0x3e4] sm:$0xf0]  ;;  %v1594_v52 = vld [vmem:[%s3924_s0] sm:$0xf]  ;;  %v2495_v57 = vld [vmem:[%s3923_s1 + $0x254] sm:$0xf0]  ;;  %v2075_v61 = vor.u32 %v2529_v49, %v2074_v47 }
  0x1d   :  { %1264 = vmatpush.bf16.msra.mxu1 %v1715_v19  ;;  %v1602_v54 = vld [vmem:[%s3924_s0 + $0x8] sm:$0xf]  ;;  %v2887_v58 = vor.u32 %v2414_v53, %v1594_v52  ;;  %v2415_v59 = vld [vmem:[%s3924_s0 + $0x34] sm:$0xf0]  ;;  %v2002_v62 = vld [vmem:[%s3923_s1 + $0x2d0] sm:$0xf]  ;;  %v2139_v2 = vor.u32 %v2545_v51, %v2138_v50  ;;  %v1939_v9 = vor.u32 %v2495_v57, %v1938_v56 }
  0x1e   :  { %1278 = vmatpush.bf16.msra.mxu2 %v1779_v20  ;;  %v2511_v63 = vld [vmem:[%s3923_s1 + $0x2d4] sm:$0xf0]  ;;  %v2066_v0 = vld [vmem:[%s3923_s1 + $0x350] sm:$0xf]  ;;  %v2901_v1 = vor.u32 %v2415_v59, %v1602_v54  ;;  %v2408_v6 = vld [vmem:[%s3924_s0 + $0x4] sm:$0xf] }
  0x1f   :  { %1292 = vmatpush.bf16.msra.mxu3 %v1843_v24  ;;  %v2527_v3 = vld [vmem:[%s3923_s1 + $0x354] sm:$0xf0]  ;;  %v2130_v4 = vld [vmem:[%s3923_s1 + $0x3d0] sm:$0xf]  ;;  %v1596_v7 = vld [vmem:[%s3924_s0 + $0x30] sm:$0xf0]  ;;  %v2003_v12 = vor.u32 %v2511_v63, %v2002_v62 }
  0x20   :  { %1251 = vmatpush.bf16.msra.mxu0 %v1643_v31  ;;  %v2543_v5 = vld [vmem:[%s3923_s1 + $0x3d4] sm:$0xf0]  ;;  %v2409_v8 = vld [vmem:[%s3924_s0 + $0xc] sm:$0xf]  ;;  %v2923_v10 = vor.u32 %v2408_v6, %v1596_v7  ;;  %v1604_v11 = vld [vmem:[%s3924_s0 + $0x38] sm:$0xf0]  ;;  %v2067_v13 = vor.u32 %v2527_v3, %v2066_v0 }
  0x21   :  { %1265 = vmatpush.bf16.msra.mxu1 %v1707_v35  ;;  %v1930_v14 = vld [vmem:[%s3923_s1 + $0x240] sm:$0xf]  ;;  %v2493_v15 = vld [vmem:[%s3923_s1 + $0x244] sm:$0xf0]  ;;  %v2937_v17 = vor.u32 %v2409_v8, %v1604_v11  ;;  %v2131_v18 = vor.u32 %v2543_v5, %v2130_v4  ;;  %v1922_v27 = vld [vmem:[%s3923_s1 + $0x230] sm:$0xf] }
  0x22   :  { %1279 = vmatpush.bf16.msra.mxu2 %v1771_v36  ;;  %v1994_v16 = vld [vmem:[%s3923_s1 + $0x2c0] sm:$0xf]  ;;  %v2509_v19 = vld [vmem:[%s3923_s1 + $0x2c4] sm:$0xf0]  ;;  %v1931_v24 = vor.u32 %v2493_v15, %v1930_v14  ;;  %v2491_v28 = vld [vmem:[%s3923_s1 + $0x234] sm:$0xf0] }
  0x23   :  { %1293 = vmatpush.bf16.msra.mxu3 %v1835_v39  ;;  %1252 = vmatmul.bf16.vlgmr.msra.gmra.mxu0 %v2887_v58  ;;  %v2058_v20 = vld [vmem:[%s3923_s1 + $0x340] sm:$0xf]  ;;  %v2525_v21 = vld [vmem:[%s3923_s1 + $0x344] sm:$0xf0]  ;;  %v1995_v25 = vor.u32 %v2509_v19, %v1994_v16  ;;  %v1986_v29 = vld [vmem:[%s3923_s1 + $0x2b0] sm:$0xf]  ;;  %v1923_v36 = vor.u32 %v2491_v28, %v1922_v27 }
  0x24   :  { %1300 = vmatpush.bf16.msrb.mxu0 %v1955_v40  ;;  %1266 = vmatmul.bf16.vlgmr.msra.gmra.mxu1 %v2923_v10  ;;  %v2122_v22 = vld [vmem:[%s3923_s1 + $0x3c0] sm:$0xf]  ;;  %v2541_v23 = vld [vmem:[%s3923_s1 + $0x3c4] sm:$0xf0]  ;;  %v2059_v26 = vor.u32 %v2525_v21, %v2058_v20  ;;  %v2507_v31 = vld [vmem:[%s3923_s1 + $0x2b4] sm:$0xf0] }
  0x25   :  { %1314 = vmatpush.bf16.msrb.mxu1 %v2019_v43  ;;  %1280 = vmatmul.bf16.vlgmr.msra.gmra.mxu2 %v2901_v1  ;;  %v2123_v30 = vor.u32 %v2541_v23, %v2122_v22  ;;  %v2050_v32 = vld [vmem:[%s3923_s1 + $0x330] sm:$0xf]  ;;  %v2523_v33 = vld [vmem:[%s3923_s1 + $0x334] sm:$0xf0]  ;;  %v1987_v37 = vor.u32 %v2507_v31, %v1986_v29  ;;  %v1914_v39 = vld [vmem:[%s3923_s1 + $0x220] sm:$0xf] }
  0x26   :  { %1328 = vmatpush.bf16.msrb.mxu2 %v2083_v44  ;;  %1294 = vmatmul.bf16.vlgmr.msra.gmra.mxu3 %v2937_v17  ;;  %v2114_v34 = vld [vmem:[%s3923_s1 + $0x3b0] sm:$0xf]  ;;  %v2539_v35 = vld [vmem:[%s3923_s1 + $0x3b4] sm:$0xf0]  ;;  %v2051_v38 = vor.u32 %v2523_v33, %v2050_v32  ;;  %v2489_v40 = vld [vmem:[%s3923_s1 + $0x224] sm:$0xf0] }
  0x27   :  { %1342 = vmatpush.bf16.msrb.mxu3 %v2147_v48  ;;  %v1978_v41 = vld [vmem:[%s3923_s1 + $0x2a0] sm:$0xf]  ;;  %v2115_v42 = vor.u32 %v2539_v35, %v2114_v34  ;;  %v2505_v43 = vld [vmem:[%s3923_s1 + $0x2a4] sm:$0xf0]  ;;  %v1915_v48 = vor.u32 %v2489_v40, %v1914_v39  ;;  %v1906_v49 = vld [vmem:[%s3923_s1 + $0x210] sm:$0xf] }
  0x28   :  { %1301 = vmatpush.bf16.msrb.mxu0 %v1947_v55  ;;  %v2042_v44 = vld [vmem:[%s3923_s1 + $0x320] sm:$0xf]  ;;  %v2521_v45 = vld [vmem:[%s3923_s1 + $0x324] sm:$0xf0]  ;;  %v1979_v50 = vor.u32 %v2505_v43, %v1978_v41  ;;  %v2487_v52 = vld [vmem:[%s3923_s1 + $0x214] sm:$0xf0] }
  0x29   :  { %1315 = vmatpush.bf16.msrb.mxu1 %v2011_v60  ;;  %v2106_v46 = vld [vmem:[%s3923_s1 + $0x3a0] sm:$0xf]  ;;  %v2537_v47 = vld [vmem:[%s3923_s1 + $0x3a4] sm:$0xf0]  ;;  %v2043_v51 = vor.u32 %v2521_v45, %v2042_v44  ;;  %v1970_v53 = vld [vmem:[%s3923_s1 + $0x290] sm:$0xf]  ;;  %v1907_v63 = vor.u32 %v2487_v52, %v1906_v49 }
  0x2a   :  { %1329 = vmatpush.bf16.msrb.mxu2 %v2075_v61  ;;  %v2503_v54 = vld [vmem:[%s3923_s1 + $0x294] sm:$0xf0]  ;;  %v2107_v55 = vor.u32 %v2537_v47, %v2106_v46  ;;  %v2034_v56 = vld [vmem:[%s3923_s1 + $0x310] sm:$0xf]  ;;  %v1898_v61 = vld [vmem:[%s3923_s1 + $0x200] sm:$0xf] }
  0x2b   :  { %1343 = vmatpush.bf16.msrb.mxu3 %v2139_v2  ;;  %v2519_v57 = vld [vmem:[%s3923_s1 + $0x314] sm:$0xf0]  ;;  %v2098_v59 = vld [vmem:[%s3923_s1 + $0x390] sm:$0xf]  ;;  %v2485_v62 = vld [vmem:[%s3923_s1 + $0x204] sm:$0xf0]  ;;  %v1971_v5 = vor.u32 %v2503_v54, %v1970_v53 }
  0x2c   :  { %1302 = vmatpush.bf16.msrb.mxu0 %v1939_v9  ;;  %v2535_v60 = vld [vmem:[%s3923_s1 + $0x394] sm:$0xf0]  ;;  %v1962_v0 = vld [vmem:[%s3923_s1 + $0x280] sm:$0xf]  ;;  %v2501_v2 = vld [vmem:[%s3923_s1 + $0x284] sm:$0xf0]  ;;  %v2035_v6 = vor.u32 %v2519_v57, %v2034_v56  ;;  %v1899_v19 = vor.u32 %v2485_v62, %v1898_v61 }
  0x2d   :  { %1316 = vmatpush.bf16.msrb.mxu1 %v2003_v12  ;;  %v2026_v3 = vld [vmem:[%s3923_s1 + $0x300] sm:$0xf]  ;;  %v2517_v4 = vld [vmem:[%s3923_s1 + $0x304] sm:$0xf0]  ;;  %v2210_v9 = vld [vmem:[%s3923_s1 + $0x470] sm:$0xf]  ;;  %v2099_v11 = vor.u32 %v2535_v60, %v2098_v59  ;;  %v1963_v23 = vor.u32 %v2501_v2, %v1962_v0 }
  0x2e   :  { %1330 = vmatpush.bf16.msrb.mxu2 %v2067_v13  ;;  %v2090_v7 = vld [vmem:[%s3923_s1 + $0x380] sm:$0xf]  ;;  %v2533_v8 = vld [vmem:[%s3923_s1 + $0x384] sm:$0xf0]  ;;  %v2563_v12 = vld [vmem:[%s3923_s1 + $0x474] sm:$0xf0] }
  0x2f   :  { %1344 = vmatpush.bf16.msrb.mxu3 %v2131_v18  ;;  %v2274_v13 = vld [vmem:[%s3923_s1 + $0x4f0] sm:$0xf]  ;;  %v2579_v14 = vld [vmem:[%s3923_s1 + $0x4f4] sm:$0xf0]  ;;  %v2416_v22 = vld [vmem:[%s3924_s0 + $0x3c] sm:$0xf0]  ;;  %v2091_v28 = vor.u32 %v2533_v8, %v2090_v7  ;;  %v2211_v29 = vor.u32 %v2563_v12, %v2210_v9 }
  0x30   :  { %1303 = vmatpush.bf16.msrb.mxu0 %v1931_v24  ;;  %v2338_v15 = vld [vmem:[%s3923_s1 + $0x570] sm:$0xf]  ;;  %v2595_v16 = vld [vmem:[%s3923_s1 + $0x574] sm:$0xf0]  ;;  %v2027_v24 = vor.u32 %v2517_v4, %v2026_v3  ;;  %v2410_v27 = vld [vmem:[%s3924_s0 + $0x14] sm:$0xf]  ;;  %v2275_v33 = vor.u32 %v2579_v14, %v2274_v13 }
  0x31   :  { %1317 = vmatpush.bf16.msrb.mxu1 %v1995_v25  ;;  %v2402_v18 = vld [vmem:[%s3923_s1 + $0x5f0] sm:$0xf]  ;;  %v2611_v20 = vld [vmem:[%s3923_s1 + $0x5f4] sm:$0xf0]  ;;  %v2411_v31 = vld [vmem:[%s3924_s0 + $0x1c] sm:$0xf]  ;;  %v2339_v34 = vor.u32 %v2595_v16, %v2338_v15 }
  0x32   :  { %1331 = vmatpush.bf16.msrb.mxu2 %v2059_v26  ;;  %v1610_v21 = vld [vmem:[%s3924_s0 + $0x10] sm:$0xf]  ;;  %v1618_v25 = vld [vmem:[%s3924_s0 + $0x18] sm:$0xf]  ;;  %v2417_v26 = vld [vmem:[%s3924_s0 + $0x44] sm:$0xf0] }
  0x33   :  { %1345 = vmatpush.bf16.msrb.mxu3 %v2123_v30  ;;  %v1612_v30 = vld [vmem:[%s3924_s0 + $0x40] sm:$0xf0]  ;;  %v1620_v32 = vld [vmem:[%s3924_s0 + $0x48] sm:$0xf0]  ;;  %v2202_v35 = vld [vmem:[%s3923_s1 + $0x460] sm:$0xf]  ;;  %v3109_v39 = vor.u32 %v2416_v22, %v1610_v21  ;;  %v3120_v43 = vor.u32 %v2417_v26, %v1618_v25 }
  0x34   :  { %1304 = vmatpush.bf16.msrb.mxu0 %v1923_v36  ;;  %v2561_v36 = vld [vmem:[%s3923_s1 + $0x464] sm:$0xf0]  ;;  %v2330_v41 = vld [vmem:[%s3923_s1 + $0x560] sm:$0xf]  ;;  %v3122_v44 = vor.u32 %v2410_v27, %v1612_v30  ;;  %v3130_v47 = vor.u32 %v2411_v31, %v1620_v32  ;;  %v2559_v52 = vld [vmem:[%s3923_s1 + $0x454] sm:$0xf0] }
  0x35   :  { %1318 = vmatpush.bf16.msrb.mxu1 %v1987_v37  ;;  %v2266_v37 = vld [vmem:[%s3923_s1 + $0x4e0] sm:$0xf]  ;;  %v2577_v40 = vld [vmem:[%s3923_s1 + $0x4e4] sm:$0xf0]  ;;  %v2258_v53 = vld [vmem:[%s3923_s1 + $0x4d0] sm:$0xf] }
  0x36   :  { %1332 = vmatpush.bf16.msrb.mxu2 %v2051_v38  ;;  %v2403_v38 = vor.u32 %v2611_v20, %v2402_v18  ;;  %v2394_v45 = vld [vmem:[%s3923_s1 + $0x5e0] sm:$0xf]  ;;  %v2609_v46 = vld [vmem:[%s3923_s1 + $0x5e4] sm:$0xf0]  ;;  %v2267_v49 = vor.u32 %v2577_v40, %v2266_v37  ;;  %v2322_v56 = vld [vmem:[%s3923_s1 + $0x550] sm:$0xf] }
  0x37   :  { %1346 = vmatpush.bf16.msrb.mxu3 %v2115_v42  ;;  %v2593_v42 = vld [vmem:[%s3923_s1 + $0x564] sm:$0xf0]  ;;  %v2395_v54 = vor.u32 %v2609_v46, %v2394_v45  ;;  %v2591_v57 = vld [vmem:[%s3923_s1 + $0x554] sm:$0xf0]  ;;  %v2386_v59 = vld [vmem:[%s3923_s1 + $0x5d0] sm:$0xf] }
  0x38   :  { %1305 = vmatpush.bf16.msrb.mxu0 %v1915_v48  ;;  %v2203_v48 = vor.u32 %v2561_v36, %v2202_v35  ;;  %v2607_v60 = vld [vmem:[%s3923_s1 + $0x5d4] sm:$0xf0]  ;;  %v2186_v0 = vld [vmem:[%s3923_s1 + $0x440] sm:$0xf]  ;;  %v2557_v2 = vld [vmem:[%s3923_s1 + $0x444] sm:$0xf0] }
  0x39   :  { %1319 = vmatpush.bf16.msrb.mxu1 %v1979_v50  ;;  %v2331_v50 = vor.u32 %v2593_v42, %v2330_v41  ;;  %v2250_v3 = vld [vmem:[%s3923_s1 + $0x4c0] sm:$0xf]  ;;  %v2387_v4 = vor.u32 %v2607_v60, %v2386_v59  ;;  %v2589_v7 = vld [vmem:[%s3923_s1 + $0x544] sm:$0xf0]  ;;  %v2178_v14 = vld [vmem:[%s3923_s1 + $0x430] sm:$0xf] }
  0x3a   :  { %1333 = vmatpush.bf16.msrb.mxu2 %v2043_v51  ;;  %v2194_v51 = vld [vmem:[%s3923_s1 + $0x450] sm:$0xf]  ;;  %v2378_v8 = vld [vmem:[%s3923_s1 + $0x5c0] sm:$0xf]  ;;  %v2605_v9 = vld [vmem:[%s3923_s1 + $0x5c4] sm:$0xf0] }
  0x3b   :  { %1347 = vmatpush.bf16.msrb.mxu3 %v2107_v55  ;;  %v2575_v55 = vld [vmem:[%s3923_s1 + $0x4d4] sm:$0xf0]  ;;  %v2195_v61 = vor.u32 %v2559_v52, %v2194_v51  ;;  %v2242_v16 = vld [vmem:[%s3923_s1 + $0x4b0] sm:$0xf]  ;;  %v2379_v18 = vor.u32 %v2605_v9, %v2378_v8  ;;  %v2170_v27 = vld [vmem:[%s3923_s1 + $0x420] sm:$0xf] }
  0x3c   :  { %1306 = vmatpush.bf16.msrb.mxu0 %v1907_v63  ;;  %v2259_v62 = vor.u32 %v2575_v55, %v2258_v53  ;;  %v2323_v63 = vor.u32 %v2591_v57, %v2322_v56  ;;  %v2555_v15 = vld [vmem:[%s3923_s1 + $0x434] sm:$0xf0]  ;;  %v2306_v20 = vld [vmem:[%s3923_s1 + $0x530] sm:$0xf]  ;;  %v2569_v31 = vld [vmem:[%s3923_s1 + $0x4a4] sm:$0xf0] }
  0x3d   :  { %1320 = vmatpush.bf16.msrb.mxu1 %v1971_v5  ;;  %v2573_v5 = vld [vmem:[%s3923_s1 + $0x4c4] sm:$0xf0]  ;;  %v2587_v21 = vld [vmem:[%s3923_s1 + $0x534] sm:$0xf0]  ;;  %v2370_v22 = vld [vmem:[%s3923_s1 + $0x5b0] sm:$0xf] }
  0x3e   :  { %1334 = vmatpush.bf16.msrb.mxu2 %v2035_v6  ;;  %v2314_v6 = vld [vmem:[%s3923_s1 + $0x540] sm:$0xf]  ;;  %v2251_v12 = vor.u32 %v2573_v5, %v2250_v3  ;;  %v2307_v26 = vor.u32 %v2587_v21, %v2306_v20  ;;  %v2601_v35 = vld [vmem:[%s3923_s1 + $0x5a4] sm:$0xf0]  ;;  %v2162_v37 = vld [vmem:[%s3923_s1 + $0x410] sm:$0xf] }
  0x3f   :  { %1348 = vmatpush.bf16.msrb.mxu3 %v2099_v11  ;;  %v2187_v11 = vor.u32 %v2557_v2, %v2186_v0  ;;  %v2315_v13 = vor.u32 %v2589_v7, %v2314_v6  ;;  %v2298_v32 = vld [vmem:[%s3923_s1 + $0x520] sm:$0xf]  ;;  %v2551_v41 = vld [vmem:[%s3923_s1 + $0x414] sm:$0xf0]  ;;  %v2226_v42 = vld [vmem:[%s3923_s1 + $0x490] sm:$0xf] }
  0x40   :  { %1307 = vmatpush.bf16.msrb.mxu0 %v1899_v19  ;;  %v2571_v19 = vld [vmem:[%s3923_s1 + $0x4b4] sm:$0xf0]  ;;  %v2154_v52 = vld [vmem:[%s3923_s1 + $0x400] sm:$0xf]  ;;  %v2549_v53 = vld [vmem:[%s3923_s1 + $0x404] sm:$0xf0] }
  0x41   :  { %1321 = vmatpush.bf16.msrb.mxu1 %v1963_v23  ;;  %v2603_v23 = vld [vmem:[%s3923_s1 + $0x5b4] sm:$0xf0]  ;;  %v2243_v25 = vor.u32 %v2571_v19, %v2242_v16  ;;  %v2218_v55 = vld [vmem:[%s3923_s1 + $0x480] sm:$0xf]  ;;  %v2565_v56 = vld [vmem:[%s3923_s1 + $0x484] sm:$0xf0]  ;;  %v2155_v9 = vor.u32 %v2549_v53, %v2154_v52 }
  0x42   :  { %1335 = vmatpush.bf16.msrb.mxu2 %v2027_v24  ;;  %v2179_v24 = vor.u32 %v2555_v15, %v2178_v14  ;;  %v2371_v30 = vor.u32 %v2603_v23, %v2370_v22  ;;  %v2567_v45 = vld [vmem:[%s3923_s1 + $0x494] sm:$0xf0]  ;;  %v2282_v57 = vld [vmem:[%s3923_s1 + $0x500] sm:$0xf]  ;;  %v2581_v59 = vld [vmem:[%s3923_s1 + $0x504] sm:$0xf0]  ;;  %v2219_v14 = vor.u32 %v2565_v56, %v2218_v55 }
  0x43   :  { %1349 = vmatpush.bf16.msrb.mxu3 %v2091_v28  ;;  %1308 = vmatmul.bf16.vlgmr.msrb.gmra.mxu0 %v3109_v39  ;;  %v2553_v28 = vld [vmem:[%s3923_s1 + $0x424] sm:$0xf0]  ;;  %v2599_v51 = vld [vmem:[%s3923_s1 + $0x594] sm:$0xf0]  ;;  %v2227_v60 = vor.u32 %v2567_v45, %v2226_v42  ;;  %v2434_v0 = vld [vmem:[%s3923_s1 + $0x74] sm:$0xf]  ;;  %v2283_v15 = vor.u32 %v2581_v59, %v2282_v57 }
  0x44   :  { %1356 = vmatpush.bf16.msra.mxu0 %v2211_v29  ;;  %1322 = vmatmul.bf16.vlgmr.msrb.gmra.mxu1 %v3122_v44  ;;  %v2234_v29 = vld [vmem:[%s3923_s1 + $0x4a0] sm:$0xf]  ;;  %v2171_v36 = vor.u32 %v2553_v28, %v2170_v27  ;;  %v1700_v3 = vld [vmem:[%s3923_s1 + $0x78] sm:$0xf0]  ;;  %v2466_v6 = vld [vmem:[%s3923_s1 + $0x174] sm:$0xf] }
  0x45   :  { %1370 = vmatpush.bf16.msra.mxu1 %v2275_v33  ;;  %1336 = vmatmul.bf16.vlgmr.msrb.gmra.mxu2 %v3120_v43  ;;  %v2585_v33 = vld [vmem:[%s3923_s1 + $0x524] sm:$0xf0]  ;;  %v1764_v5 = vld [vmem:[%s3923_s1 + $0xf8] sm:$0xf0]  ;;  %v2482_v8 = vld [vmem:[%s3923_s1 + $0x1f4] sm:$0xf]  ;;  %v1703_v21 = vor.u32 %v2434_v0, %v1700_v3 }
  0x46   :  { %1384 = vmatpush.bf16.msra.mxu2 %v2339_v34  ;;  %1350 = vmatmul.bf16.vlgmr.msrb.gmra.mxu3 %v3130_v47  ;;  %v2362_v34 = vld [vmem:[%s3923_s1 + $0x5a0] sm:$0xf]  ;;  %v2299_v40 = vor.u32 %v2585_v33, %v2298_v32  ;;  %v1828_v7 = vld [vmem:[%s3923_s1 + $0x178] sm:$0xf0]  ;;  %v1634_v16 = vld [vmem:[%s3924_s0 + $0x28] sm:$0xf] }
  0x47   :  { %1398 = vmatpush.bf16.msra.mxu3 %v2403_v38  ;;  %v2235_v38 = vor.u32 %v2569_v31, %v2234_v29  ;;  %v2363_v46 = vor.u32 %v2601_v35, %v2362_v34  ;;  %v2412_v19 = vld [vmem:[%s3924_s0 + $0x24] sm:$0xf]  ;;  %v1628_v22 = vld [vmem:[%s3924_s0 + $0x50] sm:$0xf0]  ;;  %v2413_v23 = vld [vmem:[%s3924_s0 + $0x2c] sm:$0xf] }
  0x48   :  { %1357 = vmatpush.bf16.msra.mxu0 %v2203_v48  ;;  %v2290_v48 = vld [vmem:[%s3923_s1 + $0x510] sm:$0xf]  ;;  %v2432_v27 = vld [vmem:[%s3923_s1 + $0x64] sm:$0xf]  ;;  %v1692_v28 = vld [vmem:[%s3923_s1 + $0x68] sm:$0xf0] }
  0x49   :  { %1371 = vmatpush.bf16.msra.mxu1 %v2267_v49  ;;  %v2583_v49 = vld [vmem:[%s3923_s1 + $0x514] sm:$0xf0]  ;;  %v2448_v29 = vld [vmem:[%s3923_s1 + $0xe4] sm:$0xf]  ;;  %v1756_v32 = vld [vmem:[%s3923_s1 + $0xe8] sm:$0xf0] }
  0x4a   :  { %1385 = vmatpush.bf16.msra.mxu2 %v2331_v50  ;;  %v2354_v50 = vld [vmem:[%s3923_s1 + $0x590] sm:$0xf]  ;;  %v2464_v33 = vld [vmem:[%s3923_s1 + $0x164] sm:$0xf]  ;;  %v1820_v34 = vld [vmem:[%s3923_s1 + $0x168] sm:$0xf0]  ;;  %v1759_v42 = vor.u32 %v2448_v29, %v1756_v32 }
  0x4b   :  { %1399 = vmatpush.bf16.msra.mxu3 %v2395_v54  ;;  %v2163_v54 = vor.u32 %v2551_v41, %v2162_v37  ;;  %v2355_v2 = vor.u32 %v2599_v51, %v2354_v50  ;;  %v2480_v37 = vld [vmem:[%s3923_s1 + $0x1e4] sm:$0xf]  ;;  %v1695_v41 = vor.u32 %v2432_v27, %v1692_v28  ;;  %v1823_v45 = vor.u32 %v2464_v33, %v1820_v34  ;;  %v1748_v51 = vld [vmem:[%s3923_s1 + $0xd8] sm:$0xf0]  ;;  %v2462_v52 = vld [vmem:[%s3923_s1 + $0x154] sm:$0xf] }
  0x4c   :  { %1358 = vmatpush.bf16.msra.mxu0 %v2195_v61  ;;  %v2291_v61 = vor.u32 %v2583_v49, %v2290_v48  ;;  %v1684_v48 = vld [vmem:[%s3923_s1 + $0x58] sm:$0xf0]  ;;  %v2446_v49 = vld [vmem:[%s3923_s1 + $0xd4] sm:$0xf]  ;;  %v1740_v0 = vld [vmem:[%s3923_s1 + $0xc8] sm:$0xf0] }
  0x4d   :  { %1372 = vmatpush.bf16.msra.mxu1 %v2259_v62  ;;  %v2346_v62 = vld [vmem:[%s3923_s1 + $0x580] sm:$0xf]  ;;  %v1812_v53 = vld [vmem:[%s3923_s1 + $0x158] sm:$0xf0]  ;;  %v1751_v57 = vor.u32 %v2446_v49, %v1748_v51  ;;  %v1804_v3 = vld [vmem:[%s3923_s1 + $0x148] sm:$0xf0] }
  0x4e   :  { %1386 = vmatpush.bf16.msra.mxu2 %v2323_v63  ;;  %v2597_v63 = vld [vmem:[%s3923_s1 + $0x584] sm:$0xf0]  ;;  %v1876_v55 = vld [vmem:[%s3923_s1 + $0x1d8] sm:$0xf0]  ;;  %v1815_v59 = vor.u32 %v2462_v52, %v1812_v53  ;;  %v1724_v27 = vld [vmem:[%s3923_s1 + $0xa8] sm:$0xf0] }
  0x4f   :  { %1400 = vmatpush.bf16.msra.mxu3 %v2387_v4  ;;  %v2450_v4 = vld [vmem:[%s3923_s1 + $0xf4] sm:$0xf]  ;;  %v2347_v20 = vor.u32 %v2597_v63, %v2346_v62  ;;  %v2444_v62 = vld [vmem:[%s3923_s1 + $0xc4] sm:$0xf]  ;;  %v1788_v29 = vld [vmem:[%s3923_s1 + $0x128] sm:$0xf0] }
  0x50   :  { %1359 = vmatpush.bf16.msra.mxu0 %v2187_v11  ;;  %v1892_v11 = vld [vmem:[%s3923_s1 + $0x1f8] sm:$0xf0]  ;;  %v2456_v28 = vld [vmem:[%s3923_s1 + $0x124] sm:$0xf]  ;;  %v1852_v32 = vld [vmem:[%s3923_s1 + $0x1a8] sm:$0xf0] }
  0x51   :  { %1373 = vmatpush.bf16.msra.mxu1 %v2251_v12  ;;  %v1626_v12 = vld [vmem:[%s3924_s0 + $0x20] sm:$0xf]  ;;  %v1780_v49 = vld [vmem:[%s3923_s1 + $0x118] sm:$0xf0]  ;;  %v2420_v53 = vld [vmem:[%s3923_s1 + $0x4] sm:$0xf] }
  0x52   :  { %1387 = vmatpush.bf16.msra.mxu2 %v2315_v13  ;;  %v2418_v13 = vld [vmem:[%s3924_s0 + $0x4c] sm:$0xf0]  ;;  %v1844_v51 = vld [vmem:[%s3923_s1 + $0x198] sm:$0xf0] }
  0x53   :  { %1401 = vmatpush.bf16.msra.mxu3 %v2379_v18  ;;  %v2419_v18 = vld [vmem:[%s3924_s0 + $0x54] sm:$0xf0]  ;;  %v3337_v31 = vor.u32 %v2418_v13, %v1626_v12  ;;  %v2442_v12 = vld [vmem:[%s3923_s1 + $0xb4] sm:$0xf] }
  0x54   :  { %1360 = vmatpush.bf16.msra.mxu0 %v2179_v24  ;;  %v1636_v24 = vld [vmem:[%s3924_s0 + $0x58] sm:$0xf0]  ;;  %v3348_v35 = vor.u32 %v2419_v18, %v1634_v16  ;;  %v2474_v18 = vld [vmem:[%s3923_s1 + $0x1b4] sm:$0xf] }
  0x55   :  { %1374 = vmatpush.bf16.msra.mxu1 %v2243_v25  ;;  %v1767_v25 = vor.u32 %v2450_v4, %v1764_v5  ;;  %v2476_v4 = vld [vmem:[%s3923_s1 + $0x1c4] sm:$0xf]  ;;  %v1868_v5 = vld [vmem:[%s3923_s1 + $0x1c8] sm:$0xf0]  ;;  %v1796_v16 = vld [vmem:[%s3923_s1 + $0x138] sm:$0xf0] }
  0x56   :  { %1388 = vmatpush.bf16.msra.mxu2 %v2307_v26  ;;  %v1831_v26 = vor.u32 %v2466_v6, %v1828_v7  ;;  %v1743_v7 = vor.u32 %v2444_v62, %v1740_v0  ;;  %v1871_v13 = vor.u32 %v2476_v4, %v1868_v5  ;;  %v1772_v62 = vld [vmem:[%s3923_s1 + $0x108] sm:$0xf0]  ;;  %v2514_v4 = vld [vmem:[%s3923_s1 + $0x2f4] sm:$0xf] }
  0x57   :  { %1402 = vmatpush.bf16.msra.mxu3 %v2371_v30  ;;  %v1895_v30 = vor.u32 %v2482_v8, %v1892_v11  ;;  %v1668_v11 = vld [vmem:[%s3923_s1 + $0x38] sm:$0xf0]  ;;  %v1836_v0 = vld [vmem:[%s3923_s1 + $0x188] sm:$0xf0] }
  0x58   :  { %1361 = vmatpush.bf16.msra.mxu0 %v2171_v36  ;;  %v3350_v36 = vor.u32 %v2412_v19, %v1628_v22  ;;  %v1860_v19 = vld [vmem:[%s3923_s1 + $0x1b8] sm:$0xf0] }
  0x59   :  { %1375 = vmatpush.bf16.msra.mxu1 %v2235_v38  ;;  %v1884_v38 = vld [vmem:[%s3923_s1 + $0x1e8] sm:$0xf0] }
  0x5a   :  { %1389 = vmatpush.bf16.msra.mxu2 %v2299_v40  ;;  %v3358_v40 = vor.u32 %v2413_v23, %v1636_v24  ;;  %v1887_v50 = vor.u32 %v2480_v37, %v1884_v38  ;;  %v2424_v23 = vld [vmem:[%s3923_s1 + $0x24] sm:$0xf]  ;;  %v1660_v24 = vld [vmem:[%s3923_s1 + $0x28] sm:$0xf0]  ;;  %v1791_v37 = vor.u32 %v2456_v28, %v1788_v29  ;;  %v2422_v38 = vld [vmem:[%s3923_s1 + $0x14] sm:$0xf] }
  0x5b   :  { %1403 = vmatpush.bf16.msra.mxu3 %v2363_v46  ;;  %v2430_v46 = vld [vmem:[%s3923_s1 + $0x54] sm:$0xf]  ;;  %v1663_v33 = vor.u32 %v2424_v23, %v1660_v24  ;;  %v2012_v23 = vld [vmem:[%s3923_s1 + $0x2e8] sm:$0xf0]  ;;  %v2528_v24 = vld [vmem:[%s3923_s1 + $0x364] sm:$0xf] }
  0x5c   :  { %1362 = vmatpush.bf16.msra.mxu0 %v2163_v54  ;;  %v2478_v54 = vld [vmem:[%s3923_s1 + $0x1d4] sm:$0xf]  ;;  %v1687_v56 = vor.u32 %v2430_v46, %v1684_v48  ;;  %v1716_v46 = vld [vmem:[%s3923_s1 + $0x98] sm:$0xf0] }
  0x5d   :  { %1376 = vmatpush.bf16.msra.mxu1 %v2227_v60  ;;  %v2428_v60 = vld [vmem:[%s3923_s1 + $0x44] sm:$0xf]  ;;  %v1879_v63 = vor.u32 %v2478_v54, %v1876_v55  ;;  %v2454_v48 = vld [vmem:[%s3923_s1 + $0x114] sm:$0xf]  ;;  %v1644_v54 = vld [vmem:[%s3923_s1 + $0x8] sm:$0xf0] }
  0x5e   :  { %1390 = vmatpush.bf16.msra.mxu2 %v2291_v61  ;;  %v1676_v61 = vld [vmem:[%s3923_s1 + $0x48] sm:$0xf0]  ;;  %v1647_v5 = vor.u32 %v2420_v53, %v1644_v54  ;;  %v2540_v54 = vld [vmem:[%s3923_s1 + $0x3c4] sm:$0xf] }
  0x5f   :  { %1404 = vmatpush.bf16.msra.mxu3 %v2355_v2  ;;  %v2460_v2 = vld [vmem:[%s3923_s1 + $0x144] sm:$0xf]  ;;  %v1679_v6 = vor.u32 %v2428_v60, %v1676_v61  ;;  %v2060_v53 = vld [vmem:[%s3923_s1 + $0x348] sm:$0xf0] }
  0x60   :  { %1363 = vmatpush.bf16.msra.mxu0 %v2155_v9  ;;  %v1807_v8 = vor.u32 %v2460_v2, %v1804_v3  ;;  %v2426_v9 = vld [vmem:[%s3923_s1 + $0x34] sm:$0xf]  ;;  %v2452_v60 = vld [vmem:[%s3923_s1 + $0x104] sm:$0xf]  ;;  %v1956_v3 = vld [vmem:[%s3923_s1 + $0x278] sm:$0xf0] }
  0x61   :  { %1377 = vmatpush.bf16.msra.mxu1 %v2219_v14  ;;  %v1732_v14 = vld [vmem:[%s3923_s1 + $0xb8] sm:$0xf0]  ;;  %v2498_v2 = vld [vmem:[%s3923_s1 + $0x274] sm:$0xf] }
  0x62   :  { %1391 = vmatpush.bf16.msra.mxu2 %v2283_v15  ;;  %v2458_v15 = vld [vmem:[%s3923_s1 + $0x134] sm:$0xf] }
  0x63   :  { %1405 = vmatpush.bf16.msra.mxu3 %v2347_v20  ;;  %1364 = vmatmul.bf16.vlgmr.msra.gmra.mxu0 %v3337_v31  ;;  %v1671_v20 = vor.u32 %v2426_v9, %v1668_v11  ;;  %v1799_v22 = vor.u32 %v2458_v15, %v1796_v16  ;;  %v1775_v11 = vor.u32 %v2452_v60, %v1772_v62  ;;  %v2490_v60 = vld [vmem:[%s3923_s1 + $0x234] sm:$0xf] }
  0x64   :  { %1412 = vmatpush.bf16.msrb.mxu0 %v1703_v21  ;;  %1378 = vmatmul.bf16.vlgmr.msra.gmra.mxu1 %v3350_v36  ;;  %v1735_v21 = vor.u32 %v2442_v12, %v1732_v14  ;;  %v2546_v12 = vld [vmem:[%s3923_s1 + $0x3f4] sm:$0xf]  ;;  %v1959_v15 = vor.u32 %v2498_v2, %v1956_v3  ;;  %v2052_v3 = vld [vmem:[%s3923_s1 + $0x338] sm:$0xf0] }
  0x65   :  { %1426 = vmatpush.bf16.msrb.mxu1 %v1767_v25  ;;  %1392 = vmatmul.bf16.vlgmr.msra.gmra.mxu2 %v3348_v35  ;;  %v2440_v25 = vld [vmem:[%s3923_s1 + $0xa4] sm:$0xf]  ;;  %v2506_v62 = vld [vmem:[%s3923_s1 + $0x2b4] sm:$0xf] }
  0x66   :  { %1440 = vmatpush.bf16.msrb.mxu2 %v1831_v26  ;;  %1406 = vmatmul.bf16.vlgmr.msra.gmra.mxu3 %v3358_v40  ;;  %v1863_v26 = vor.u32 %v2474_v18, %v1860_v19  ;;  %v1727_v34 = vor.u32 %v2440_v25, %v1724_v27  ;;  %v2496_v19 = vld [vmem:[%s3923_s1 + $0x264] sm:$0xf]  ;;  %v2076_v25 = vld [vmem:[%s3923_s1 + $0x368] sm:$0xf0]  ;;  %v2522_v2 = vld [vmem:[%s3923_s1 + $0x334] sm:$0xf] }
  0x67   :  { %1454 = vmatpush.bf16.msrb.mxu3 %v1895_v30  ;;  %v2472_v30 = vld [vmem:[%s3923_s1 + $0x1a4] sm:$0xf]  ;;  %v2140_v27 = vld [vmem:[%s3923_s1 + $0x3e8] sm:$0xf0] }
  0x68   :  { %1413 = vmatpush.bf16.msrb.mxu0 %v1695_v41  ;;  %v1652_v41 = vld [vmem:[%s3923_s1 + $0x18] sm:$0xf0] }
  0x69   :  { %1427 = vmatpush.bf16.msrb.mxu1 %v1759_v42  ;;  %v2438_v42 = vld [vmem:[%s3923_s1 + $0x94] sm:$0xf]  ;;  %v1655_v52 = vor.u32 %v2422_v38, %v1652_v41  ;;  %v2004_v38 = vld [vmem:[%s3923_s1 + $0x2d8] sm:$0xf0] }
  0x6a   :  { %1441 = vmatpush.bf16.msrb.mxu2 %v1823_v45  ;;  %v1855_v45 = vor.u32 %v2472_v30, %v1852_v32  ;;  %v1719_v55 = vor.u32 %v2438_v42, %v1716_v46  ;;  %v2079_v30 = vor.u32 %v2528_v24, %v2076_v25  ;;  %v2494_v32 = vld [vmem:[%s3923_s1 + $0x254] sm:$0xf]  ;;  %v2068_v42 = vld [vmem:[%s3923_s1 + $0x358] sm:$0xf0] }
  0x6b   :  { %1455 = vmatpush.bf16.msrb.mxu3 %v1887_v50  ;;  %v2470_v50 = vld [vmem:[%s3923_s1 + $0x194] sm:$0xf]  ;;  %v2132_v46 = vld [vmem:[%s3923_s1 + $0x3d8] sm:$0xf0] }
  0x6c   :  { %1414 = vmatpush.bf16.msrb.mxu0 %v1687_v56  ;;  %v1783_v56 = vor.u32 %v2454_v48, %v1780_v49  ;;  %v1847_v61 = vor.u32 %v2470_v50, %v1844_v51  ;;  %v2526_v41 = vld [vmem:[%s3923_s1 + $0x354] sm:$0xf]  ;;  %v2492_v50 = vld [vmem:[%s3923_s1 + $0x244] sm:$0xf]  ;;  %v1932_v51 = vld [vmem:[%s3923_s1 + $0x248] sm:$0xf0] }
  0x6d   :  { %1428 = vmatpush.bf16.msrb.mxu1 %v1751_v57  ;;  %v2436_v57 = vld [vmem:[%s3923_s1 + $0x84] sm:$0xf]  ;;  %v1908_v24 = vld [vmem:[%s3923_s1 + $0x218] sm:$0xf0]  ;;  %v2502_v25 = vld [vmem:[%s3923_s1 + $0x294] sm:$0xf] }
  0x6e   :  { %1442 = vmatpush.bf16.msrb.mxu2 %v1815_v59  ;;  %v1708_v59 = vld [vmem:[%s3923_s1 + $0x88] sm:$0xf0] }
  0x6f   :  { %1456 = vmatpush.bf16.msrb.mxu3 %v1879_v63  ;;  %v2468_v63 = vld [vmem:[%s3923_s1 + $0x184] sm:$0xf]  ;;  %v1711_v9 = vor.u32 %v2436_v57, %v1708_v59 }
  0x70   :  { %1415 = vmatpush.bf16.msrb.mxu0 %v1679_v6  ;;  %v2020_v6 = vld [vmem:[%s3923_s1 + $0x2f8] sm:$0xf0]  ;;  %v1839_v14 = vor.u32 %v2468_v63, %v1836_v0 }
  0x71   :  { %1429 = vmatpush.bf16.msrb.mxu1 %v1743_v7  ;;  %v2530_v7 = vld [vmem:[%s3923_s1 + $0x374] sm:$0xf]  ;;  %v2023_v16 = vor.u32 %v2514_v4, %v2020_v6  ;;  %v1988_v0 = vld [vmem:[%s3923_s1 + $0x2b8] sm:$0xf0] }
  0x72   :  { %1443 = vmatpush.bf16.msrb.mxu2 %v1807_v8  ;;  %v2084_v8 = vld [vmem:[%s3923_s1 + $0x378] sm:$0xf0]  ;;  %v2538_v4 = vld [vmem:[%s3923_s1 + $0x3b4] sm:$0xf] }
  0x73   :  { %1457 = vmatpush.bf16.msrb.mxu3 %v1871_v13  ;;  %v2148_v13 = vld [vmem:[%s3923_s1 + $0x3f8] sm:$0xf0]  ;;  %v2087_v18 = vor.u32 %v2530_v7, %v2084_v8  ;;  %v1991_v7 = vor.u32 %v2506_v62, %v1988_v0  ;;  %v2055_v8 = vor.u32 %v2522_v2, %v2052_v3  ;;  %v2560_v0 = vld [vmem:[%s3923_s1 + $0x464] sm:$0xf]  ;;  %v2204_v2 = vld [vmem:[%s3923_s1 + $0x468] sm:$0xf0] }
  0x74   :  { %1416 = vmatpush.bf16.msrb.mxu0 %v1671_v20  ;;  %v1948_v20 = vld [vmem:[%s3923_s1 + $0x268] sm:$0xf0]  ;;  %v2576_v3 = vld [vmem:[%s3923_s1 + $0x4e4] sm:$0xf] }
  0x75   :  { %1430 = vmatpush.bf16.msrb.mxu1 %v1735_v21  ;;  %v2512_v21 = vld [vmem:[%s3923_s1 + $0x2e4] sm:$0xf]  ;;  %v1951_v28 = vor.u32 %v2496_v19, %v1948_v20  ;;  %v2108_v19 = vld [vmem:[%s3923_s1 + $0x3a8] sm:$0xf0] }
  0x76   :  { %1444 = vmatpush.bf16.msrb.mxu2 %v1799_v22  ;;  %v2151_v22 = vor.u32 %v2546_v12, %v2148_v13  ;;  %v2015_v29 = vor.u32 %v2512_v21, %v2012_v23  ;;  %v2504_v12 = vld [vmem:[%s3923_s1 + $0x2a4] sm:$0xf]  ;;  %v2486_v23 = vld [vmem:[%s3923_s1 + $0x214] sm:$0xf] }
  0x77   :  { %1458 = vmatpush.bf16.msrb.mxu3 %v1863_v26  ;;  %v2544_v26 = vld [vmem:[%s3923_s1 + $0x3e4] sm:$0xf] }
  0x78   :  { %1417 = vmatpush.bf16.msrb.mxu0 %v1663_v33  ;;  %v1940_v33 = vld [vmem:[%s3923_s1 + $0x258] sm:$0xf0] }
  0x79   :  { %1431 = vmatpush.bf16.msrb.mxu1 %v1727_v34  ;;  %v2510_v34 = vld [vmem:[%s3923_s1 + $0x2d4] sm:$0xf]  ;;  %v1943_v48 = vor.u32 %v2494_v32, %v1940_v33  ;;  %v2100_v32 = vld [vmem:[%s3923_s1 + $0x398] sm:$0xf0]  ;;  %v1911_v33 = vor.u32 %v2486_v23, %v1908_v24 }
  0x7a   :  { %1445 = vmatpush.bf16.msrb.mxu2 %v1791_v37  ;;  %v2143_v37 = vor.u32 %v2544_v26, %v2140_v27  ;;  %v2007_v49 = vor.u32 %v2510_v34, %v2004_v38  ;;  %v1972_v27 = vld [vmem:[%s3923_s1 + $0x298] sm:$0xf0]  ;;  %v2484_v34 = vld [vmem:[%s3923_s1 + $0x204] sm:$0xf] }
  0x7b   :  { %1459 = vmatpush.bf16.msrb.mxu3 %v1855_v45  ;;  %v2542_v45 = vld [vmem:[%s3923_s1 + $0x3d4] sm:$0xf]  ;;  %v1975_v38 = vor.u32 %v2502_v25, %v1972_v27  ;;  %v2388_v23 = vld [vmem:[%s3923_s1 + $0x5d8] sm:$0xf0]  ;;  %v2188_v27 = vld [vmem:[%s3923_s1 + $0x448] sm:$0xf0] }
  0x7c   :  { %1418 = vmatpush.bf16.msrb.mxu0 %v1655_v52  ;;  %v2524_v52 = vld [vmem:[%s3923_s1 + $0x344] sm:$0xf] }
  0x7d   :  { %1432 = vmatpush.bf16.msrb.mxu1 %v1719_v55  ;;  %v2124_v55 = vld [vmem:[%s3923_s1 + $0x3c8] sm:$0xf0]  ;;  %v2063_v59 = vor.u32 %v2524_v52, %v2060_v53  ;;  %v2276_v52 = vld [vmem:[%s3923_s1 + $0x4f8] sm:$0xf0]  ;;  %v2594_v53 = vld [vmem:[%s3923_s1 + $0x574] sm:$0xf] }
  0x7e   :  { %1446 = vmatpush.bf16.msrb.mxu2 %v1783_v56  ;;  %v1935_v56 = vor.u32 %v2492_v50, %v1932_v51  ;;  %v2127_v63 = vor.u32 %v2540_v54, %v2124_v55  ;;  %v2092_v50 = vld [vmem:[%s3923_s1 + $0x388] sm:$0xf0]  ;;  %v2562_v51 = vld [vmem:[%s3923_s1 + $0x474] sm:$0xf]  ;;  %v2340_v54 = vld [vmem:[%s3923_s1 + $0x578] sm:$0xf0] }
  0x7f   :  { %1460 = vmatpush.bf16.msrb.mxu3 %v1847_v61  ;;  %v1924_v61 = vld [vmem:[%s3923_s1 + $0x238] sm:$0xf0] }
  0x80   :  { %1419 = vmatpush.bf16.msrb.mxu0 %v1647_v5  ;;  %v2116_v5 = vld [vmem:[%s3923_s1 + $0x3b8] sm:$0xf0]  ;;  %v1927_v6 = vor.u32 %v2490_v60, %v1924_v61 }
  0x81   :  { %1433 = vmatpush.bf16.msrb.mxu1 %v1711_v9  ;;  %v2488_v9 = vld [vmem:[%s3923_s1 + $0x224] sm:$0xf]  ;;  %v2119_v13 = vor.u32 %v2538_v4, %v2116_v5  ;;  %v2268_v5 = vld [vmem:[%s3923_s1 + $0x4e8] sm:$0xf0] }
  0x82   :  { %1447 = vmatpush.bf16.msrb.mxu2 %v1775_v11  ;;  %v1916_v11 = vld [vmem:[%s3923_s1 + $0x228] sm:$0xf0] }
  0x83   :  { %1461 = vmatpush.bf16.msrb.mxu3 %v1839_v14  ;;  %1420 = vmatmul.bf16.vlgmr.msrb.gmra.mxu0 %v2887_v58  ;;  %v2071_v58 = vor.u32 %v2526_v41, %v2068_v42  ;;  %v1980_v14 = vld [vmem:[%s3923_s1 + $0x2a8] sm:$0xf0]  ;;  %v1919_v20 = vor.u32 %v2488_v9, %v1916_v11  ;;  %v2500_v42 = vld [vmem:[%s3923_s1 + $0x284] sm:$0xf]  ;;  %v2207_v11 = vor.u32 %v2560_v0, %v2204_v2 }
  0x84   :  { %1468 = vmatpush.bf16.msra.mxu0 %v1959_v15  ;;  %1434 = vmatmul.bf16.vlgmr.msrb.gmra.mxu1 %v2923_v10  ;;  %v2135_v10 = vor.u32 %v2542_v45, %v2132_v46  ;;  %v2520_v15 = vld [vmem:[%s3923_s1 + $0x324] sm:$0xf]  ;;  %v1983_v21 = vor.u32 %v2504_v12, %v1980_v14  ;;  %v1964_v45 = vld [vmem:[%s3923_s1 + $0x288] sm:$0xf0]  ;;  %v2558_v12 = vld [vmem:[%s3923_s1 + $0x454] sm:$0xf] }
  0x85   :  { %1482 = vmatpush.bf16.msra.mxu1 %v2023_v16  ;;  %1448 = vmatmul.bf16.vlgmr.msrb.gmra.mxu2 %v2901_v1  ;;  %v2508_v1 = vld [vmem:[%s3923_s1 + $0x2c4] sm:$0xf]  ;;  %v2044_v16 = vld [vmem:[%s3923_s1 + $0x328] sm:$0xf0]  ;;  %v1967_v55 = vor.u32 %v2500_v42, %v1964_v45 }
  0x86   :  { %1496 = vmatpush.bf16.msra.mxu2 %v2087_v18  ;;  %1462 = vmatmul.bf16.vlgmr.msrb.gmra.mxu3 %v2937_v17  ;;  %v1996_v17 = vld [vmem:[%s3923_s1 + $0x2c8] sm:$0xf0]  ;;  %v2536_v18 = vld [vmem:[%s3923_s1 + $0x3a4] sm:$0xf] }
  0x87   :  { %1510 = vmatpush.bf16.msra.mxu3 %v2151_v22  ;;  %v1999_v57 = vor.u32 %v2508_v1, %v1996_v17  ;;  %v2047_v22 = vor.u32 %v2520_v15, %v2044_v16  ;;  %v2111_v26 = vor.u32 %v2536_v18, %v2108_v19  ;;  %v2516_v46 = vld [vmem:[%s3923_s1 + $0x304] sm:$0xf]  ;;  %v2212_v1 = vld [vmem:[%s3923_s1 + $0x478] sm:$0xf0]  ;;  %v2396_v9 = vld [vmem:[%s3923_s1 + $0x5e8] sm:$0xf0] }
  0x88   :  { %1469 = vmatpush.bf16.msra.mxu0 %v1951_v28  ;;  %v2518_v28 = vld [vmem:[%s3923_s1 + $0x314] sm:$0xf]  ;;  %v2215_v61 = vor.u32 %v2562_v51, %v2212_v1  ;;  %v2196_v15 = vld [vmem:[%s3923_s1 + $0x458] sm:$0xf0]  ;;  %v3764_v18 = vld [vmem:[%s3925_s2] sm:$0x3] }
  0x89   :  { %1483 = vmatpush.bf16.msra.mxu1 %v2015_v29  ;;  %v2036_v29 = vld [vmem:[%s3923_s1 + $0x318] sm:$0xf0]  ;;  %v2574_v16 = vld [vmem:[%s3923_s1 + $0x4d4] sm:$0xf]  ;;  %v2199_v24 = vor.u32 %v2558_v12, %v2196_v15  ;;  %v220_v25 = vperm.slane %v3764_v18, 0 }
  0x8a   :  { %1497 = vmatpush.bf16.msra.mxu2 %v2079_v30  ;;  %v2534_v30 = vld [vmem:[%s3923_s1 + $0x394] sm:$0xf]  ;;  %v2039_v41 = vor.u32 %v2518_v28, %v2036_v29  ;;  %v2252_v29 = vld [vmem:[%s3923_s1 + $0x4c8] sm:$0xf0]  ;;  %v2308_v1 = vld [vmem:[%s3923_s1 + $0x538] sm:$0xf0] }
  0x8b   :  { %1511 = vmatpush.bf16.msra.mxu3 %v2143_v37  ;;  %v1900_v37 = vld [vmem:[%s3923_s1 + $0x208] sm:$0xf0]  ;;  %v2586_v51 = vld [vmem:[%s3923_s1 + $0x534] sm:$0xf] }
  0x8c   :  { %1470 = vmatpush.bf16.msra.mxu0 %v1943_v48  ;;  %v2103_v48 = vor.u32 %v2534_v30, %v2100_v32  ;;  %v1903_v17 = vor.u32 %v2484_v34, %v1900_v37  ;;  %v2588_v30 = vld [vmem:[%s3923_s1 + $0x544] sm:$0xf]  ;;  %v2316_v32 = vld [vmem:[%s3923_s1 + $0x548] sm:$0xf0]  ;;  %v2550_v12 = vld [vmem:[%s3923_s1 + $0x414] sm:$0xf] }
  0x8d   :  { %1484 = vmatpush.bf16.msra.mxu1 %v2007_v49  ;;  %v2028_v49 = vld [vmem:[%s3923_s1 + $0x308] sm:$0xf0]  ;;  %v2319_v45 = vor.u32 %v2588_v30, %v2316_v32  ;;  %v2580_v32 = vld [vmem:[%s3923_s1 + $0x504] sm:$0xf] }
  0x8e   :  { %1498 = vmatpush.bf16.msra.mxu2 %v2071_v58  ;;  %v2532_v58 = vld [vmem:[%s3923_s1 + $0x384] sm:$0xf]  ;;  %v2380_v34 = vld [vmem:[%s3923_s1 + $0x5c8] sm:$0xf0] }
  0x8f   :  { %1512 = vmatpush.bf16.msra.mxu3 %v2135_v10  ;;  %v2578_v10 = vld [vmem:[%s3923_s1 + $0x4f4] sm:$0xf]  ;;  %v2095_v60 = vor.u32 %v2532_v58, %v2092_v50  ;;  %v2244_v50 = vld [vmem:[%s3923_s1 + $0x4b8] sm:$0xf0]  ;;  %v2300_v0 = vld [vmem:[%s3923_s1 + $0x528] sm:$0xf0] }
  0x90   :  { %1471 = vmatpush.bf16.msra.mxu0 %v1935_v56  ;;  %v2031_v56 = vor.u32 %v2516_v46, %v2028_v49  ;;  %v2279_v62 = vor.u32 %v2578_v10, %v2276_v52  ;;  %v2554_v46 = vld [vmem:[%s3923_s1 + $0x434] sm:$0xf]  ;;  %v2220_v30 = vld [vmem:[%s3923_s1 + $0x488] sm:$0xf0] }
  0x91   :  { %1485 = vmatpush.bf16.msra.mxu1 %v1999_v57  ;;  %v2610_v57 = vld [vmem:[%s3923_s1 + $0x5f4] sm:$0xf] }
  0x92   :  { %1499 = vmatpush.bf16.msra.mxu2 %v2063_v59  ;;  %v2404_v59 = vld [vmem:[%s3923_s1 + $0x5f8] sm:$0xf0]  ;;  %v2570_v49 = vld [vmem:[%s3923_s1 + $0x4b4] sm:$0xf] }
  0x93   :  { %1513 = vmatpush.bf16.msra.mxu3 %v2127_v63  ;;  %v2343_v63 = vor.u32 %v2594_v53, %v2340_v54  ;;  %v2407_v4 = vor.u32 %v2610_v57, %v2404_v59  ;;  %v2602_v10 = vld [vmem:[%s3923_s1 + $0x5b4] sm:$0xf]  ;;  %v2552_v57 = vld [vmem:[%s3923_s1 + $0x424] sm:$0xf]  ;;  %v2172_v59 = vld [vmem:[%s3923_s1 + $0x428] sm:$0xf0] }
  0x94   :  { %1472 = vmatpush.bf16.msra.mxu0 %v1927_v6  ;;  %v2592_v6 = vld [vmem:[%s3923_s1 + $0x564] sm:$0xf] }
  0x95   :  { %1486 = vmatpush.bf16.msra.mxu1 %v1991_v7  ;;  %v2332_v7 = vld [vmem:[%s3923_s1 + $0x568] sm:$0xf0] }
  0x96   :  { %1500 = vmatpush.bf16.msra.mxu2 %v2055_v8  ;;  %v2608_v8 = vld [vmem:[%s3923_s1 + $0x5e4] sm:$0xf]  ;;  %v2335_v14 = vor.u32 %v2592_v6, %v2332_v7  ;;  %v2175_v7 = vor.u32 %v2552_v57, %v2172_v59 }
  0x97   :  { %1514 = vmatpush.bf16.msra.mxu3 %v2119_v13  ;;  %v2271_v13 = vor.u32 %v2576_v3, %v2268_v5  ;;  %v2399_v19 = vor.u32 %v2608_v8, %v2396_v9  ;;  %v2600_v3 = vld [vmem:[%s3923_s1 + $0x5a4] sm:$0xf] }
  0x98   :  { %1473 = vmatpush.bf16.msra.mxu0 %v1919_v20  ;;  %v2260_v20 = vld [vmem:[%s3923_s1 + $0x4d8] sm:$0xf0] }
  0x99   :  { %1487 = vmatpush.bf16.msra.mxu1 %v1983_v21  ;;  %v2590_v21 = vld [vmem:[%s3923_s1 + $0x554] sm:$0xf] }
  0x9a   :  { %1501 = vmatpush.bf16.msra.mxu2 %v2047_v22  ;;  %v2324_v22 = vld [vmem:[%s3923_s1 + $0x558] sm:$0xf0] }
  0x9b   :  { %1515 = vmatpush.bf16.msra.mxu3 %v2111_v26  ;;  %v2263_v26 = vor.u32 %v2574_v16, %v2260_v20  ;;  %v2228_v16 = vld [vmem:[%s3923_s1 + $0x498] sm:$0xf0] }
  0x9c   :  { %1474 = vmatpush.bf16.msra.mxu0 %v1911_v33  ;;  %v2604_v33 = vld [vmem:[%s3923_s1 + $0x5c4] sm:$0xf]  ;;  %v2292_v20 = vld [vmem:[%s3923_s1 + $0x518] sm:$0xf0] }
  0x9d   :  { %1488 = vmatpush.bf16.msra.mxu1 %v1975_v38  ;;  %v2383_v58 = vor.u32 %v2604_v33, %v2380_v34  ;;  %v2284_v33 = vld [vmem:[%s3923_s1 + $0x508] sm:$0xf0] }
  0x9e   :  { %1502 = vmatpush.bf16.msra.mxu2 %v2039_v41 }
  0x9f   :  { %1516 = vmatpush.bf16.msra.mxu3 %v2103_v48  ;;  %v2180_v48 = vld [vmem:[%s3923_s1 + $0x438] sm:$0xf0] }
  0xa0   :  { %1475 = vmatpush.bf16.msra.mxu0 %v1903_v17  ;;  %v1253_v37 = vpop.f32.mrf.mxu0  ;;  %v2372_v17 = vld [vmem:[%s3923_s1 + $0x5b8] sm:$0xf0]  ;;  %v2183_v53 = vor.u32 %v2554_v46, %v2180_v48  ;;  %v2287_v46 = vor.u32 %v2580_v32, %v2284_v33 }
  0xa1   :  { %1489 = vmatpush.bf16.msra.mxu1 %v1967_v55  ;;  %v1254_v41 = vadd.f32 %v1253_v37, %v220_v25  ;;  %v1267_v52 = vpop.f32.mrf.mxu1  ;;  %v2247_v55 = vor.u32 %v2570_v49, %v2244_v50  ;;  %v2596_v37 = vld [vmem:[%s3923_s1 + $0x584] sm:$0xf] }
  0xa2   :  { %1503 = vmatpush.bf16.msra.mxu2 %v2031_v56  ;;  %v2311_v56 = vor.u32 %v2586_v51, %v2308_v1 }
  0xa3   :  { %1517 = vmatpush.bf16.msra.mxu3 %v2095_v60  ;;  %1476 = vmatmul.bf16.vlgmr.msra.gmra.mxu0 %v3109_v39  ;;  %v2606_v39 = vld [vmem:[%s3923_s1 + $0x5d4] sm:$0xf]  ;;  %v1268_v54 = vadd.f32 %v1267_v52, %v1254_v41  ;;  %v2568_v60 = vld [vmem:[%s3923_s1 + $0x4a4] sm:$0xf] }
  0xa4   :  { %1524 = vmatpush.bf16.msrb.mxu0 %v2215_v61  ;;  %1490 = vmatmul.bf16.vlgmr.msra.gmra.mxu1 %v3122_v44  ;;  %v2556_v44 = vld [vmem:[%s3923_s1 + $0x444] sm:$0xf]  ;;  %v2391_v28 = vor.u32 %v2606_v39, %v2388_v23  ;;  %v2375_v61 = vor.u32 %v2602_v10, %v2372_v17  ;;  %v2356_v39 = vld [vmem:[%s3923_s1 + $0x598] sm:$0xf0] }
  0xa5   :  { %1538 = vmatpush.bf16.msrb.mxu1 %v2279_v62  ;;  %1504 = vmatmul.bf16.vlgmr.msra.gmra.mxu2 %v3120_v43  ;;  %v2327_v43 = vor.u32 %v2590_v21, %v2324_v22  ;;  %v2191_v38 = vor.u32 %v2556_v44, %v2188_v27  ;;  %v2236_v62 = vld [vmem:[%s3923_s1 + $0x4a8] sm:$0xf0]  ;;  %v2598_v22 = vld [vmem:[%s3923_s1 + $0x594] sm:$0xf]  ;;  %v2548_v27 = vld [vmem:[%s3923_s1 + $0x404] sm:$0xf] }
  0xa6   :  { %1552 = vmatpush.bf16.msrb.mxu2 %v2343_v63  ;;  %1518 = vmatmul.bf16.vlgmr.msra.gmra.mxu3 %v3130_v47  ;;  %v2572_v47 = vld [vmem:[%s3923_s1 + $0x4c4] sm:$0xf]  ;;  %v2239_v9 = vor.u32 %v2568_v60, %v2236_v62 }
  0xa7   :  { %1566 = vmatpush.bf16.msrb.mxu3 %v2407_v4  ;;  %v2255_v42 = vor.u32 %v2572_v47, %v2252_v29  ;;  %v2584_v63 = vld [vmem:[%s3923_s1 + $0x524] sm:$0xf]  ;;  %v2364_v4 = vld [vmem:[%s3923_s1 + $0x5a8] sm:$0xf0]  ;;  %v2359_v29 = vor.u32 %v2598_v22, %v2356_v39 }
  0xa8   :  { %1525 = vmatpush.bf16.msrb.mxu0 %v2207_v11  ;;  %v1281_v2 = vpop.f32.mrf.mxu2  ;;  %v1255_v6 = vpop.f32.mrf.mxu0  ;;  %v2303_v11 = vor.u32 %v2584_v63, %v2300_v0  ;;  %v2367_v15 = vor.u32 %v2600_v3, %v2364_v4  ;;  %v2156_v47 = vld [vmem:[%s3923_s1 + $0x408] sm:$0xf0] }
  0xa9   :  { %1539 = vmatpush.bf16.msrb.mxu1 %v2271_v13  ;;  %v1282_v5 = vadd.f32 %v1281_v2, %v1268_v54  ;;  %v1256_v8 = vadd.f32 %v1255_v6, %v220_v25  ;;  %v2164_v13 = vld [vmem:[%s3923_s1 + $0x418] sm:$0xf0]  ;;  %v1295_v21 = vpop.f32.mrf.mxu3 }
  0xaa   :  { %1553 = vmatpush.bf16.msrb.mxu2 %v2335_v14  ;;  %v2566_v14 = vld [vmem:[%s3923_s1 + $0x494] sm:$0xf]  ;;  %v2167_v25 = vor.u32 %v2550_v12, %v2164_v13 }
  0xab   :  { %1567 = vmatpush.bf16.msrb.mxu3 %v2399_v19  ;;  %v2582_v19 = vld [vmem:[%s3923_s1 + $0x514] sm:$0xf]  ;;  %v3882_v23 = vadd.f32 %v1295_v21, %v1282_v5 }
  0xac   :  { %1526 = vmatpush.bf16.msrb.mxu0 %v2199_v24  ;;  %v1269_v24 = vpop.f32.mrf.mxu1  ;;  %v2295_v44 = vor.u32 %v2582_v19, %v2292_v20 }
  0xad   :  { %1540 = vmatpush.bf16.msrb.mxu1 %v2263_v26  ;;  %v1270_v26 = vadd.f32 %v1269_v24, %v1256_v8 }
  0xae   :  { %1554 = vmatpush.bf16.msrb.mxu2 %v2327_v43  ;;  %v2231_v43 = vor.u32 %v2566_v14, %v2228_v16 }
  0xaf   :  { %1568 = vmatpush.bf16.msrb.mxu3 %v2391_v28  ;;  %v2564_v28 = vld [vmem:[%s3923_s1 + $0x484] sm:$0xf] }
  0xb0   :  { %1527 = vmatpush.bf16.msrb.mxu0 %v2191_v38  ;;  %v1283_v34 = vpop.f32.mrf.mxu2  ;;  %v2348_v38 = vld [vmem:[%s3923_s1 + $0x588] sm:$0xf0] }
  0xb1   :  { %1541 = vmatpush.bf16.msrb.mxu1 %v2255_v42  ;;  %v1284_v41 = vadd.f32 %v1283_v34, %v1270_v26  ;;  %v2159_v42 = vor.u32 %v2548_v27, %v2156_v47  ;;  %v2351_v48 = vor.u32 %v2596_v37, %v2348_v38  ;;  %v1297_v49 = vpop.f32.mrf.mxu3 }
  0xb2   :  { %1555 = vmatpush.bf16.msrb.mxu2 %v2319_v45  ;;  %v2223_v45 = vor.u32 %v2564_v28, %v2220_v30 }
  0xb3   :  { %1569 = vmatpush.bf16.msrb.mxu3 %v2383_v58  ;;  %v1298_v58 = vadd.f32 %v1297_v49, %v1284_v41 }
  0xb4   :  { %1528 = vmatpush.bf16.msrb.mxu0 %v2183_v53 }
  0xb5   :  { %1542 = vmatpush.bf16.msrb.mxu1 %v2247_v55 }
  0xb6   :  { %1556 = vmatpush.bf16.msrb.mxu2 %v2311_v56 }
  0xb7   :  { %1570 = vmatpush.bf16.msrb.mxu3 %v2375_v61 }
  0xb8   :  { %1529 = vmatpush.bf16.msrb.mxu0 %v2175_v7 }
  0xb9   :  { %1543 = vmatpush.bf16.msrb.mxu1 %v2239_v9 }
  0xba   :  { %1557 = vmatpush.bf16.msrb.mxu2 %v2303_v11 }
  0xbb   :  { %1571 = vmatpush.bf16.msrb.mxu3 %v2367_v15 }
  0xbc   :  { %1530 = vmatpush.bf16.msrb.mxu0 %v2167_v25 }
  0xbd   :  { %1544 = vmatpush.bf16.msrb.mxu1 %v2231_v43 }
  0xbe   :  { %1558 = vmatpush.bf16.msrb.mxu2 %v2295_v44 }
  0xbf   :  { %1572 = vmatpush.bf16.msrb.mxu3 %v2359_v29 }
  0xc0   :  { %1531 = vmatpush.bf16.msrb.mxu0 %v2159_v42  ;;  %v1309_v50 = vpop.f32.mrf.mxu0 }
  0xc1   :  { %1545 = vmatpush.bf16.msrb.mxu1 %v2223_v45  ;;  %v1323_v51 = vpop.f32.mrf.mxu1  ;;  %v1310_v12 = vadd.f32 %v1309_v50, %v3882_v23 }
  0xc2   :  { %1559 = vmatpush.bf16.msrb.mxu2 %v2287_v46 }
  0xc3   :  { %1573 = vmatpush.bf16.msrb.mxu3 %v2351_v48  ;;  %1532 = vmatmul.bf16.vlgmr.msrb.gmra.mxu0 %v3337_v31  ;;  %v1324_v16 = vadd.f32 %v1323_v51, %v1310_v12 }
  0xc4   :  { %1546 = vmatmul.bf16.vlgmr.msrb.gmra.mxu1 %v3350_v36 }
  0xc5   :  { %1560 = vmatmul.bf16.vlgmr.msrb.gmra.mxu2 %v3348_v35 }
  0xc6   :  { %1574 = vmatmul.bf16.vlgmr.msrb.gmra.mxu3 %v3358_v40  ;;  %v221_v40 = vperm.slane %v3764_v18, 1 }
  0xc8   :  { %v1337_v1 = vpop.f32.mrf.mxu2  ;;  %v1311_v17 = vpop.f32.mrf.mxu0 }
  0xc9   :  { %v1351_v10 = vpop.f32.mrf.mxu3  ;;  %v1325_v52 = vpop.f32.mrf.mxu1  ;;  %v1338_v22 = vadd.f32 %v1337_v1, %v1324_v16  ;;  %v1312_v25 = vadd.f32 %v1311_v17, %v1298_v58 }
  0xcb   :  { %v1352_v44 = vadd.f32 %v1351_v10, %v1338_v22  ;;  %v1326_v47 = vadd.f32 %v1325_v52, %v1312_v25 }
  0xd0   :  { %v1339_v53 = vpop.f32.mrf.mxu2 }
  0xd1   :  { %v1353_v54 = vpop.f32.mrf.mxu3  ;;  %v1340_v30 = vadd.f32 %v1339_v53, %v1326_v47 }
  0xd3   :  { %v1354_v45 = vadd.f32 %v1353_v54, %v1340_v30 }
  0xe0   :  { %v1365_v55 = vpop.f32.mrf.mxu0 }
  0xe1   :  { %v1379_v56 = vpop.f32.mrf.mxu1  ;;  %v1366_v28 = vadd.f32 %v1365_v55, %v1352_v44 }
  0xe3   :  { %v1380_v37 = vadd.f32 %v1379_v56, %v1366_v28 }
  0xe8   :  { %v1393_v57 = vpop.f32.mrf.mxu2  ;;  %v1367_v60 = vpop.f32.mrf.mxu0 }
  0xe9   :  { %v1407_v59 = vpop.f32.mrf.mxu3  ;;  %v1381_v31 = vpop.f32.mrf.mxu1  ;;  %v1394_v46 = vadd.f32 %v1393_v57, %v1380_v37  ;;  %v1368_v49 = vadd.f32 %v1367_v60, %v1354_v45 }
  0xeb   :  { %v1408_v51 = vadd.f32 %v1407_v59, %v1394_v46  ;;  %v1382_v55 = vadd.f32 %v1381_v31, %v1368_v49 }
  0xf0   :  { %v1395_v61 = vpop.f32.mrf.mxu2 }
  0xf1   :  { %v3912_v36 = vpop.f32.mrf.mxu3 }
 0x100   :  { %v1421_v35 = vpop.f32.mrf.mxu0 }
 0x101   :  { %v1435_v62 = vpop.f32.mrf.mxu1  ;;  %v1422_v2 = vadd.f32 %v1421_v35, %v221_v40 }
 0x103   :  { %v1436_v5 = vadd.f32 %v1435_v62, %v1422_v2  ;;  %v1580_v62 = vmax.f32 %v1408_v51, 0.0 }
 0x108   :  { %v1449_v63 = vpop.f32.mrf.mxu2  ;;  %v1423_v3 = vpop.f32.mrf.mxu0 }
 0x109   :  { %v1463_v0 = vpop.f32.mrf.mxu3  ;;  %v1437_v4 = vpop.f32.mrf.mxu1  ;;  %v1450_v7 = vadd.f32 %v1449_v63, %v1436_v5  ;;  %v1424_v9 = vadd.f32 %v1423_v3, %v221_v40  ;;  %v1396_v40 = vadd.f32 %v1395_v61, %v1382_v55 }
 0x10b   :  { %v1464_v13 = vadd.f32 %v1463_v0, %v1450_v7  ;;  %v1438_v15 = vadd.f32 %v1437_v4, %v1424_v9  ;;  %v1410_v57 = vadd.f32 %v3912_v36, %v1396_v40 }
 0x10d   :  { %v1582_v4 = vmax.f32 %v1410_v57, 0.0 }
 0x110   :  { %v1451_v6 = vpop.f32.mrf.mxu2 }
 0x111   :  { %v1465_v8 = vpop.f32.mrf.mxu3  ;;  %v1452_v18 = vadd.f32 %v1451_v6, %v1438_v15 }
 0x113   :  { %v1466_v26 = vadd.f32 %v1465_v8, %v1452_v18 }
 0x120   :  { %v1477_v11 = vpop.f32.mrf.mxu0 }
 0x121   :  { %v1491_v14 = vpop.f32.mrf.mxu1  ;;  %v1478_v19 = vadd.f32 %v1477_v11, %v1464_v13 }
 0x123   :  { %v1492_v39 = vadd.f32 %v1491_v14, %v1478_v19 }
 0x128   :  { %v1505_v20 = vpop.f32.mrf.mxu2  ;;  %v1479_v24 = vpop.f32.mrf.mxu0 }
 0x129   :  { %v1519_v21 = vpop.f32.mrf.mxu3  ;;  %v1493_v43 = vpop.f32.mrf.mxu1  ;;  %v1506_v27 = vadd.f32 %v1505_v20, %v1492_v39  ;;  %v1480_v29 = vadd.f32 %v1479_v24, %v1466_v26 }
 0x12b   :  { %v1520_v32 = vadd.f32 %v1519_v21, %v1506_v27  ;;  %v1494_v38 = vadd.f32 %v1493_v43, %v1480_v29 }
 0x130   :  { %v1507_v23 = vpop.f32.mrf.mxu2 }
 0x131   :  { %v1521_v33 = vpop.f32.mrf.mxu3  ;;  %v1508_v48 = vadd.f32 %v1507_v23, %v1494_v38 }
 0x133   :  { %v1522_v1 = vadd.f32 %v1521_v33, %v1508_v48 }
 0x140   :  { %v1533_v34 = vpop.f32.mrf.mxu0 }
 0x141   :  { %v1534_v41 = vadd.f32 %v1533_v34, %v1520_v32  ;;  %v1547_v42 = vpop.f32.mrf.mxu1 }
 0x143   :  { %v1548_v58 = vadd.f32 %v1547_v42, %v1534_v41 }
 0x148   :  { %v1561_v50 = vpop.f32.mrf.mxu2  ;;  %v1535_v52 = vpop.f32.mrf.mxu0 }
 0x149   :  { %v1562_v10 = vadd.f32 %v1561_v50, %v1548_v58  ;;  %v1575_v17 = vpop.f32.mrf.mxu3  ;;  %v1536_v35 = vadd.f32 %v1535_v52, %v1522_v1  ;;  %v1549_v63 = vpop.f32.mrf.mxu1 }
 0x14b   :  { %v1576_v53 = vadd.f32 %v1575_v17, %v1562_v10  ;;  %v1550_v2 = vadd.f32 %v1549_v63, %v1536_v35 }
 0x14d   :  { %v1581_v56 = vmax.f32 %v1576_v53, 0.0 }
 0x14f   :  { %v1584_v0 = vpack.c.bf16 %v1581_v56, %v1580_v62 }
 0x150   :  { %v1563_v54 = vpop.f32.mrf.mxu2 }
 0x151   :  { %1586 = vst [vmem:[%s3926_s3] sm:$0xff] %v1584_v0  ;;  %v1564_v59 = vadd.f32 %v1563_v54, %v1550_v2  ;;  %v1577_v60 = vpop.f32.mrf.mxu3 }
 0x153   :  { %v1578_v3 = vadd.f32 %v1577_v60, %v1564_v59 }
 0x155   :  { %v1583_v31 = vmax.f32 %v1578_v3, 0.0 }
 0x157   :  { %v1585_v5 = vpack.c.bf16 %v1583_v31, %v1582_v4 }
 0x159   :  { %1587 = vst [vmem:[%s3926_s3 + $0x8] sm:$0xff] %v1585_v5 }

// kernel: dqn_forward.5
= control target key start
LH: loop header
LB: loop body
LE: loop exit
PB: predicated region body
PF: predicated region fallthrough
CT: control target
= control target key end

     0   :  { %vm1535_vm0 = vcmask 1042432   ;;  %vm1536_vm1 = vcmask 522244   ;;  %s3751_s1 = inlined_call_operand.vmem [shape: bf16[1536,192], index: 1, kind: input, shape index: {}]   ;;  %s3752_s0 = inlined_call_operand.vmem [shape: bf16[6,1536], index: 0, kind: input, shape index: {}]   ;;  %s3753_s2 = inlined_call_operand.vmem [shape: f32[1,192], index: 2, kind: input, shape index: {}]   ;;  %s3754_s3 = inlined_call_operand.vmem [shape: bf16[6,192], index: 3, kind: output, shape index: {}]  }
   0x1   :  { %v1601_v0 = vld [vmem:[%s3751_s1 + $0x70] sm:$0xf]  ;;  %v2326_v1 = vld [vmem:[%s3751_s1 + $0x74] sm:$0xf0]  ;;  %v1593_v11 = vld [vmem:[%s3751_s1 + $0x60] sm:$0xf] }
   0x2   :  { %v1665_v2 = vld [vmem:[%s3751_s1 + $0xf0] sm:$0xf]  ;;  %v1602_v3 = vor.u32 %v2326_v1, %v1601_v0  ;;  %v2342_v4 = vld [vmem:[%s3751_s1 + $0xf4] sm:$0xf0]  ;;  %v2324_v13 = vld [vmem:[%s3751_s1 + $0x64] sm:$0xf0] }
   0x3   :  { %v1729_v5 = vld [vmem:[%s3751_s1 + $0x170] sm:$0xf]  ;;  %v2358_v6 = vld [vmem:[%s3751_s1 + $0x174] sm:$0xf0]  ;;  %v1666_v7 = vor.u32 %v2342_v4, %v1665_v2  ;;  %v1657_v14 = vld [vmem:[%s3751_s1 + $0xe0] sm:$0xf]  ;;  %v1594_v16 = vor.u32 %v2324_v13, %v1593_v11 }
   0x4   :  { %v1730_v8 = vor.u32 %v2358_v6, %v1729_v5  ;;  %v1793_v9 = vld [vmem:[%s3751_s1 + $0x1f0] sm:$0xf]  ;;  %v2374_v10 = vld [vmem:[%s3751_s1 + $0x1f4] sm:$0xf0]  ;;  %1220 = vmatpush.bf16.msra.mxu0 %v1602_v3  ;;  %v2340_v15 = vld [vmem:[%s3751_s1 + $0xe4] sm:$0xf0] }
   0x5   :  { %v1794_v12 = vor.u32 %v2374_v10, %v1793_v9  ;;  %1233 = vmatpush.bf16.msra.mxu1 %v1666_v7  ;;  %v1658_v17 = vor.u32 %v2340_v15, %v1657_v14  ;;  %v1721_v18 = vld [vmem:[%s3751_s1 + $0x160] sm:$0xf]  ;;  %v2356_v19 = vld [vmem:[%s3751_s1 + $0x164] sm:$0xf0]  ;;  %v1585_v23 = vld [vmem:[%s3751_s1 + $0x50] sm:$0xf] }
   0x6   :  { %1246 = vmatpush.bf16.msra.mxu2 %v1730_v8  ;;  %v1785_v20 = vld [vmem:[%s3751_s1 + $0x1e0] sm:$0xf]  ;;  %v1722_v21 = vor.u32 %v2356_v19, %v1721_v18  ;;  %v2372_v22 = vld [vmem:[%s3751_s1 + $0x1e4] sm:$0xf0]  ;;  %v2322_v24 = vld [vmem:[%s3751_s1 + $0x54] sm:$0xf0] }
   0x7   :  { %1259 = vmatpush.bf16.msra.mxu3 %v1794_v12  ;;  %v1786_v25 = vor.u32 %v2372_v22, %v1785_v20  ;;  %v1649_v26 = vld [vmem:[%s3751_s1 + $0xd0] sm:$0xf]  ;;  %v2338_v27 = vld [vmem:[%s3751_s1 + $0xd4] sm:$0xf0]  ;;  %v1586_v29 = vor.u32 %v2322_v24, %v1585_v23  ;;  %v1577_v35 = vld [vmem:[%s3751_s1 + $0x40] sm:$0xf] }
   0x8   :  { %v1713_v28 = vld [vmem:[%s3751_s1 + $0x150] sm:$0xf]  ;;  %1221 = vmatpush.bf16.msra.mxu0 %v1594_v16  ;;  %v2354_v30 = vld [vmem:[%s3751_s1 + $0x154] sm:$0xf0]  ;;  %v1650_v33 = vor.u32 %v2338_v27, %v1649_v26  ;;  %v2320_v36 = vld [vmem:[%s3751_s1 + $0x44] sm:$0xf0] }
   0x9   :  { %v1777_v31 = vld [vmem:[%s3751_s1 + $0x1d0] sm:$0xf]  ;;  %v2370_v32 = vld [vmem:[%s3751_s1 + $0x1d4] sm:$0xf0]  ;;  %1234 = vmatpush.bf16.msra.mxu1 %v1658_v17  ;;  %v1714_v34 = vor.u32 %v2354_v30, %v1713_v28  ;;  %v1641_v37 = vld [vmem:[%s3751_s1 + $0xc0] sm:$0xf]  ;;  %v1578_v44 = vor.u32 %v2320_v36, %v1577_v35 }
   0xa   :  { %1247 = vmatpush.bf16.msra.mxu2 %v1722_v21  ;;  %v1778_v38 = vor.u32 %v2370_v32, %v1777_v31  ;;  %v2336_v39 = vld [vmem:[%s3751_s1 + $0xc4] sm:$0xf0]  ;;  %v1705_v40 = vld [vmem:[%s3751_s1 + $0x140] sm:$0xf]  ;;  %v1569_v47 = vld [vmem:[%s3751_s1 + $0x30] sm:$0xf] }
   0xb   :  { %1260 = vmatpush.bf16.msra.mxu3 %v1786_v25  ;;  %v2352_v41 = vld [vmem:[%s3751_s1 + $0x144] sm:$0xf0]  ;;  %v1769_v42 = vld [vmem:[%s3751_s1 + $0x1c0] sm:$0xf]  ;;  %v1642_v45 = vor.u32 %v2336_v39, %v1641_v37  ;;  %v2318_v48 = vld [vmem:[%s3751_s1 + $0x34] sm:$0xf0] }
   0xc   :  { %v2368_v43 = vld [vmem:[%s3751_s1 + $0x1c4] sm:$0xf0]  ;;  %1222 = vmatpush.bf16.msra.mxu0 %v1586_v29  ;;  %v1706_v46 = vor.u32 %v2352_v41, %v1705_v40  ;;  %v1633_v49 = vld [vmem:[%s3751_s1 + $0xb0] sm:$0xf]  ;;  %v2334_v51 = vld [vmem:[%s3751_s1 + $0xb4] sm:$0xf0]  ;;  %v1570_v56 = vor.u32 %v2318_v48, %v1569_v47 }
   0xd   :  { %1235 = vmatpush.bf16.msra.mxu1 %v1650_v33  ;;  %v1770_v50 = vor.u32 %v2368_v43, %v1769_v42  ;;  %v1697_v52 = vld [vmem:[%s3751_s1 + $0x130] sm:$0xf]  ;;  %v2350_v53 = vld [vmem:[%s3751_s1 + $0x134] sm:$0xf0]  ;;  %v1634_v57 = vor.u32 %v2334_v51, %v1633_v49  ;;  %v1561_v59 = vld [vmem:[%s3751_s1 + $0x20] sm:$0xf] }
   0xe   :  { %1248 = vmatpush.bf16.msra.mxu2 %v1714_v34  ;;  %v1761_v54 = vld [vmem:[%s3751_s1 + $0x1b0] sm:$0xf]  ;;  %v2366_v55 = vld [vmem:[%s3751_s1 + $0x1b4] sm:$0xf0]  ;;  %v1698_v58 = vor.u32 %v2350_v53, %v1697_v52  ;;  %v2316_v60 = vld [vmem:[%s3751_s1 + $0x24] sm:$0xf0] }
   0xf   :  { %1261 = vmatpush.bf16.msra.mxu3 %v1778_v38  ;;  %v1625_v61 = vld [vmem:[%s3751_s1 + $0xa0] sm:$0xf]  ;;  %v1762_v62 = vor.u32 %v2366_v55, %v1761_v54  ;;  %v2332_v63 = vld [vmem:[%s3751_s1 + $0xa4] sm:$0xf0]  ;;  %v1562_v4 = vor.u32 %v2316_v60, %v1561_v59  ;;  %v1553_v7 = vld [vmem:[%s3751_s1 + $0x10] sm:$0xf] }
  0x10   :  { %1223 = vmatpush.bf16.msra.mxu0 %v1578_v44  ;;  %v1689_v0 = vld [vmem:[%s3751_s1 + $0x120] sm:$0xf]  ;;  %v2348_v1 = vld [vmem:[%s3751_s1 + $0x124] sm:$0xf0]  ;;  %v1626_v5 = vor.u32 %v2332_v63, %v1625_v61  ;;  %v2314_v8 = vld [vmem:[%s3751_s1 + $0x14] sm:$0xf0] }
  0x11   :  { %1236 = vmatpush.bf16.msra.mxu1 %v1642_v45  ;;  %v1753_v2 = vld [vmem:[%s3751_s1 + $0x1a0] sm:$0xf]  ;;  %v2364_v3 = vld [vmem:[%s3751_s1 + $0x1a4] sm:$0xf0]  ;;  %v1690_v6 = vor.u32 %v2348_v1, %v1689_v0  ;;  %v1617_v9 = vld [vmem:[%s3751_s1 + $0x90] sm:$0xf]  ;;  %v1554_v16 = vor.u32 %v2314_v8, %v1553_v7 }
  0x12   :  { %1249 = vmatpush.bf16.msra.mxu2 %v1706_v46  ;;  %v1754_v10 = vor.u32 %v2364_v3, %v1753_v2  ;;  %v2330_v11 = vld [vmem:[%s3751_s1 + $0x94] sm:$0xf0]  ;;  %v1681_v12 = vld [vmem:[%s3751_s1 + $0x110] sm:$0xf]  ;;  %v1545_v17 = vld [vmem:[%s3751_s1] sm:$0xf] }
  0x13   :  { %1262 = vmatpush.bf16.msra.mxu3 %v1770_v50  ;;  %v2346_v13 = vld [vmem:[%s3751_s1 + $0x114] sm:$0xf0]  ;;  %v1745_v14 = vld [vmem:[%s3751_s1 + $0x190] sm:$0xf]  ;;  %v2312_v18 = vld [vmem:[%s3751_s1 + $0x4] sm:$0xf0]  ;;  %v1618_v19 = vor.u32 %v2330_v11, %v1617_v9 }
  0x14   :  { %1224 = vmatpush.bf16.msra.mxu0 %v1570_v56  ;;  %v2362_v15 = vld [vmem:[%s3751_s1 + $0x194] sm:$0xf0]  ;;  %v1682_v20 = vor.u32 %v2346_v13, %v1681_v12  ;;  %v1609_v21 = vld [vmem:[%s3751_s1 + $0x80] sm:$0xf]  ;;  %v2328_v22 = vld [vmem:[%s3751_s1 + $0x84] sm:$0xf0]  ;;  %v1546_v31 = vor.u32 %v2312_v18, %v1545_v17 }
  0x15   :  { %1237 = vmatpush.bf16.msra.mxu1 %v1634_v57  ;;  %v1673_v23 = vld [vmem:[%s3751_s1 + $0x100] sm:$0xf]  ;;  %v1746_v24 = vor.u32 %v2362_v15, %v1745_v14  ;;  %v2344_v25 = vld [vmem:[%s3751_s1 + $0x104] sm:$0xf0]  ;;  %v1857_v28 = vld [vmem:[%s3751_s1 + $0x270] sm:$0xf]  ;;  %v1610_v35 = vor.u32 %v2328_v22, %v1609_v21 }
  0x16   :  { %1250 = vmatpush.bf16.msra.mxu2 %v1698_v58  ;;  %v1737_v26 = vld [vmem:[%s3751_s1 + $0x180] sm:$0xf]  ;;  %v2360_v27 = vld [vmem:[%s3751_s1 + $0x184] sm:$0xf0]  ;;  %v2390_v29 = vld [vmem:[%s3751_s1 + $0x274] sm:$0xf0]  ;;  %v1674_v36 = vor.u32 %v2344_v25, %v1673_v23 }
  0x17   :  { %1263 = vmatpush.bf16.msra.mxu3 %v1762_v62  ;;  %v1921_v30 = vld [vmem:[%s3751_s1 + $0x2f0] sm:$0xf]  ;;  %v2406_v32 = vld [vmem:[%s3751_s1 + $0x2f4] sm:$0xf0]  ;;  %v1738_v39 = vor.u32 %v2360_v27, %v1737_v26  ;;  %v1858_v40 = vor.u32 %v2390_v29, %v1857_v28  ;;  %v1849_v43 = vld [vmem:[%s3751_s1 + $0x260] sm:$0xf] }
  0x18   :  { %1225 = vmatpush.bf16.msra.mxu0 %v1562_v4  ;;  %v1985_v33 = vld [vmem:[%s3751_s1 + $0x370] sm:$0xf]  ;;  %v2422_v34 = vld [vmem:[%s3751_s1 + $0x374] sm:$0xf0]  ;;  %v1922_v41 = vor.u32 %v2406_v32, %v1921_v30  ;;  %v2388_v44 = vld [vmem:[%s3751_s1 + $0x264] sm:$0xf0] }
  0x19   :  { %1238 = vmatpush.bf16.msra.mxu1 %v1626_v5  ;;  %v2049_v37 = vld [vmem:[%s3751_s1 + $0x3f0] sm:$0xf]  ;;  %v2438_v38 = vld [vmem:[%s3751_s1 + $0x3f4] sm:$0xf0]  ;;  %v1986_v42 = vor.u32 %v2422_v34, %v1985_v33  ;;  %v1913_v45 = vld [vmem:[%s3751_s1 + $0x2e0] sm:$0xf]  ;;  %v1850_v52 = vor.u32 %v2388_v44, %v1849_v43 }
  0x1a   :  { %1251 = vmatpush.bf16.msra.mxu2 %v1690_v6  ;;  %v2050_v46 = vor.u32 %v2438_v38, %v2049_v37  ;;  %v2404_v47 = vld [vmem:[%s3751_s1 + $0x2e4] sm:$0xf0]  ;;  %v1977_v48 = vld [vmem:[%s3751_s1 + $0x360] sm:$0xf]  ;;  %v1841_v53 = vld [vmem:[%s3751_s1 + $0x250] sm:$0xf] }
  0x1b   :  { %1264 = vmatpush.bf16.msra.mxu3 %v1754_v10  ;;  %v2420_v49 = vld [vmem:[%s3751_s1 + $0x364] sm:$0xf0]  ;;  %v2041_v50 = vld [vmem:[%s3751_s1 + $0x3e0] sm:$0xf]  ;;  %v1914_v54 = vor.u32 %v2404_v47, %v1913_v45  ;;  %v2386_v56 = vld [vmem:[%s3751_s1 + $0x254] sm:$0xf0] }
  0x1c   :  { %1226 = vmatpush.bf16.msra.mxu0 %v1554_v16  ;;  %v2436_v51 = vld [vmem:[%s3751_s1 + $0x3e4] sm:$0xf0]  ;;  %v1978_v55 = vor.u32 %v2420_v49, %v1977_v48  ;;  %v1905_v57 = vld [vmem:[%s3751_s1 + $0x2d0] sm:$0xf]  ;;  %v2402_v60 = vld [vmem:[%s3751_s1 + $0x2d4] sm:$0xf0]  ;;  %v1842_v3 = vor.u32 %v2386_v56, %v1841_v53 }
  0x1d   :  { %1239 = vmatpush.bf16.msra.mxu1 %v1618_v19  ;;  %v15_v58 = vld [vmem:[%s3752_s0 + $0x8] sm:$0x77]  ;;  %v2042_v59 = vor.u32 %v2436_v51, %v2041_v50  ;;  %v1969_v61 = vld [vmem:[%s3751_s1 + $0x350] sm:$0xf]  ;;  %v2418_v62 = vld [vmem:[%s3751_s1 + $0x354] sm:$0xf0]  ;;  %v1906_v7 = vor.u32 %v2402_v60, %v1905_v57 }
  0x1e   :  { %1252 = vmatpush.bf16.msra.mxu2 %v1682_v20  ;;  %v226_v63 = vunpack.c.l.b16 %v15_v58  ;;  %v227_v0 = vunpack.c.h.b16 %v15_v58  ;;  %v2033_v1 = vld [vmem:[%s3751_s1 + $0x3d0] sm:$0xf]  ;;  %v2434_v2 = vld [vmem:[%s3751_s1 + $0x3d4] sm:$0xf0]  ;;  %v14_v5 = vld [vmem:[%s3752_s0] sm:$0x77]  ;;  %v1970_v8 = vor.u32 %v2418_v62, %v1969_v61 }
  0x1f   :  { %1265 = vmatpush.bf16.msra.mxu3 %v1746_v24  ;;  %v1833_v9 = vld [vmem:[%s3751_s1 + $0x240] sm:$0xf]  ;;  %v2384_v10 = vld [vmem:[%s3751_s1 + $0x244] sm:$0xf0]  ;;  %v224_v12 = vunpack.c.l.b16 %v14_v5  ;;  %v225_v13 = vunpack.c.h.b16 %v14_v5  ;;  %v2034_v14 = vor.u32 %v2434_v2, %v2033_v1  ;;  %v1825_v25 = vld [vmem:[%s3751_s1 + $0x230] sm:$0xf] }
  0x20   :  { %1227 = vmatpush.bf16.msra.mxu0 %v1546_v31  ;;  %v2790_v4 = vpack.c.b16 %v226_v63, %v226_v63  ;;  %v2795_v6 = vpack.c.b16 %v227_v0, %v227_v0  ;;  %v1897_v11 = vld [vmem:[%s3751_s1 + $0x2c0] sm:$0xf]  ;;  %v2400_v15 = vld [vmem:[%s3751_s1 + $0x2c4] sm:$0xf0]  ;;  %v1834_v22 = vor.u32 %v2384_v10, %v1833_v9  ;;  %v2382_v26 = vld [vmem:[%s3751_s1 + $0x234] sm:$0xf0] }
  0x21   :  { %1240 = vmatpush.bf16.msra.mxu1 %v1610_v35  ;;  %v1961_v16 = vld [vmem:[%s3751_s1 + $0x340] sm:$0xf]  ;;  %v2416_v17 = vld [vmem:[%s3751_s1 + $0x344] sm:$0xf0]  ;;  %v2822_v20 = vpack.c.b16 %v224_v12, %v224_v12  ;;  %v2825_v21 = vpack.c.b16 %v225_v13, %v225_v13  ;;  %v1898_v23 = vor.u32 %v2400_v15, %v1897_v11  ;;  %v1889_v27 = vld [vmem:[%s3751_s1 + $0x2b0] sm:$0xf]  ;;  %v1826_v34 = vor.u32 %v2382_v26, %v1825_v25 }
  0x22   :  { %1253 = vmatpush.bf16.msra.mxu2 %v1674_v36  ;;  %v2025_v18 = vld [vmem:[%s3751_s1 + $0x3c0] sm:$0xf]  ;;  %v2432_v19 = vld [vmem:[%s3751_s1 + $0x3c4] sm:$0xf0]  ;;  %v1962_v24 = vor.u32 %v2416_v17, %v1961_v16  ;;  %v2398_v29 = vld [vmem:[%s3751_s1 + $0x2b4] sm:$0xf0] }
  0x23   :  { %1266 = vmatpush.bf16.msra.mxu3 %v1738_v39  ;;  %v2026_v28 = vor.u32 %v2432_v19, %v2025_v18  ;;  %v1953_v30 = vld [vmem:[%s3751_s1 + $0x330] sm:$0xf]  ;;  %v2414_v31 = vld [vmem:[%s3751_s1 + $0x334] sm:$0xf0]  ;;  %1228 = vmatmul.bf16.vlgmr.msra.gmra.mxu0 %v2822_v20  ;;  %v1890_v35 = vor.u32 %v2398_v29, %v1889_v27  ;;  %v1817_v37 = vld [vmem:[%s3751_s1 + $0x220] sm:$0xf] }
  0x24   :  { %1272 = vmatpush.bf16.msrb.mxu0 %v1858_v40  ;;  %v2017_v32 = vld [vmem:[%s3751_s1 + $0x3b0] sm:$0xf]  ;;  %v2430_v33 = vld [vmem:[%s3751_s1 + $0x3b4] sm:$0xf0]  ;;  %1241 = vmatmul.bf16.vlgmr.msra.gmra.mxu1 %v2825_v21  ;;  %v1954_v36 = vor.u32 %v2414_v31, %v1953_v30  ;;  %v2380_v38 = vld [vmem:[%s3751_s1 + $0x224] sm:$0xf0] }
  0x25   :  { %1285 = vmatpush.bf16.msrb.mxu1 %v1922_v41  ;;  %1254 = vmatmul.bf16.vlgmr.msra.gmra.mxu2 %v2790_v4  ;;  %v1881_v39 = vld [vmem:[%s3751_s1 + $0x2a0] sm:$0xf]  ;;  %v2018_v40 = vor.u32 %v2430_v33, %v2017_v32  ;;  %v2396_v41 = vld [vmem:[%s3751_s1 + $0x2a4] sm:$0xf0]  ;;  %v1809_v49 = vld [vmem:[%s3751_s1 + $0x210] sm:$0xf] }
  0x26   :  { %1298 = vmatpush.bf16.msrb.mxu2 %v1986_v42  ;;  %1267 = vmatmul.bf16.vlgmr.msra.gmra.mxu3 %v2795_v6  ;;  %v1945_v42 = vld [vmem:[%s3751_s1 + $0x320] sm:$0xf]  ;;  %v2412_v43 = vld [vmem:[%s3751_s1 + $0x324] sm:$0xf0]  ;;  %v1882_v47 = vor.u32 %v2396_v41, %v1881_v39  ;;  %v2378_v50 = vld [vmem:[%s3751_s1 + $0x214] sm:$0xf0] }
  0x27   :  { %1311 = vmatpush.bf16.msrb.mxu3 %v2050_v46  ;;  %v2009_v44 = vld [vmem:[%s3751_s1 + $0x3a0] sm:$0xf]  ;;  %v2428_v45 = vld [vmem:[%s3751_s1 + $0x3a4] sm:$0xf0]  ;;  %v1818_v46 = vor.u32 %v2380_v38, %v1817_v37  ;;  %v1946_v48 = vor.u32 %v2412_v43, %v1945_v42  ;;  %v1873_v51 = vld [vmem:[%s3751_s1 + $0x290] sm:$0xf] }
  0x28   :  { %1273 = vmatpush.bf16.msrb.mxu0 %v1850_v52  ;;  %v2010_v52 = vor.u32 %v2428_v45, %v2009_v44  ;;  %v2394_v53 = vld [vmem:[%s3751_s1 + $0x294] sm:$0xf0]  ;;  %v2001_v56 = vld [vmem:[%s3751_s1 + $0x390] sm:$0xf]  ;;  %v1801_v58 = vld [vmem:[%s3751_s1 + $0x200] sm:$0xf] }
  0x29   :  { %1286 = vmatpush.bf16.msrb.mxu1 %v1914_v54  ;;  %v1937_v54 = vld [vmem:[%s3751_s1 + $0x310] sm:$0xf]  ;;  %v2426_v57 = vld [vmem:[%s3751_s1 + $0x394] sm:$0xf0]  ;;  %v2376_v60 = vld [vmem:[%s3751_s1 + $0x204] sm:$0xf0]  ;;  %v1874_v63 = vor.u32 %v2394_v53, %v1873_v51 }
  0x2a   :  { %1299 = vmatpush.bf16.msrb.mxu2 %v1978_v55  ;;  %v2410_v55 = vld [vmem:[%s3751_s1 + $0x314] sm:$0xf0]  ;;  %v1865_v61 = vld [vmem:[%s3751_s1 + $0x280] sm:$0xf]  ;;  %v2392_v62 = vld [vmem:[%s3751_s1 + $0x284] sm:$0xf0]  ;;  %v2002_v5 = vor.u32 %v2426_v57, %v2001_v56  ;;  %v1802_v13 = vor.u32 %v2376_v60, %v1801_v58 }
  0x2b   :  { %1312 = vmatpush.bf16.msrb.mxu3 %v2042_v59  ;;  %v1810_v59 = vor.u32 %v2378_v50, %v1809_v49  ;;  %v1938_v0 = vor.u32 %v2410_v55, %v1937_v54  ;;  %v1929_v1 = vld [vmem:[%s3751_s1 + $0x300] sm:$0xf]  ;;  %v2408_v2 = vld [vmem:[%s3751_s1 + $0x304] sm:$0xf0]  ;;  %v16_v9 = vld [vmem:[%s3752_s0 + $0x10] sm:$0x77]  ;;  %v1866_v18 = vor.u32 %v2392_v62, %v1865_v61 }
  0x2c   :  { %1274 = vmatpush.bf16.msrb.mxu0 %v1842_v3  ;;  %v17_v3 = vld [vmem:[%s3752_s0 + $0x18] sm:$0x77]  ;;  %v2113_v10 = vld [vmem:[%s3751_s1 + $0x470] sm:$0xf]  ;;  %v1930_v19 = vor.u32 %v2408_v2, %v1929_v1  ;;  %v2105_v31 = vld [vmem:[%s3751_s1 + $0x460] sm:$0xf] }
  0x2d   :  { %1287 = vmatpush.bf16.msrb.mxu1 %v1906_v7  ;;  %v1993_v7 = vld [vmem:[%s3751_s1 + $0x380] sm:$0xf]  ;;  %v2454_v11 = vld [vmem:[%s3751_s1 + $0x474] sm:$0xf0]  ;;  %v2177_v12 = vld [vmem:[%s3751_s1 + $0x4f0] sm:$0xf]  ;;  %v230_v17 = vunpack.c.l.b16 %v17_v3  ;;  %v231_v25 = vunpack.c.h.b16 %v17_v3 }
  0x2e   :  { %1300 = vmatpush.bf16.msrb.mxu2 %v1970_v8  ;;  %v2424_v8 = vld [vmem:[%s3751_s1 + $0x384] sm:$0xf0]  ;;  %v2241_v15 = vld [vmem:[%s3751_s1 + $0x570] sm:$0xf]  ;;  %v2486_v16 = vld [vmem:[%s3751_s1 + $0x574] sm:$0xf0]  ;;  %v2114_v27 = vor.u32 %v2454_v11, %v2113_v10 }
  0x2f   :  { %1313 = vmatpush.bf16.msrb.mxu3 %v2034_v14  ;;  %v2470_v14 = vld [vmem:[%s3751_s1 + $0x4f4] sm:$0xf0]  ;;  %v1994_v26 = vor.u32 %v2424_v8, %v1993_v7  ;;  %v2242_v30 = vor.u32 %v2486_v16, %v2241_v15  ;;  %v2452_v32 = vld [vmem:[%s3751_s1 + $0x464] sm:$0xf0]  ;;  %v2169_v33 = vld [vmem:[%s3751_s1 + $0x4e0] sm:$0xf]  ;;  %v2973_v38 = vpack.c.b16 %v230_v17, %v230_v17  ;;  %v2983_v42 = vpack.c.b16 %v231_v25, %v231_v25 }
  0x30   :  { %1275 = vmatpush.bf16.msrb.mxu0 %v1834_v22  ;;  %v2305_v22 = vld [vmem:[%s3751_s1 + $0x5f0] sm:$0xf]  ;;  %v2178_v29 = vor.u32 %v2470_v14, %v2177_v12  ;;  %v2484_v37 = vld [vmem:[%s3751_s1 + $0x564] sm:$0xf0]  ;;  %v2297_v39 = vld [vmem:[%s3751_s1 + $0x5e0] sm:$0xf]  ;;  %v2106_v43 = vor.u32 %v2452_v32, %v2105_v31 }
  0x31   :  { %1288 = vmatpush.bf16.msrb.mxu1 %v1898_v23  ;;  %v2502_v23 = vld [vmem:[%s3751_s1 + $0x5f4] sm:$0xf0]  ;;  %v2161_v49 = vld [vmem:[%s3751_s1 + $0x4d0] sm:$0xf]  ;;  %v2448_v60 = vld [vmem:[%s3751_s1 + $0x444] sm:$0xf0] }
  0x32   :  { %1301 = vmatpush.bf16.msrb.mxu2 %v1962_v24  ;;  %v228_v24 = vunpack.c.l.b16 %v16_v9  ;;  %v2466_v51 = vld [vmem:[%s3751_s1 + $0x4d4] sm:$0xf0]  ;;  %v2289_v54 = vld [vmem:[%s3751_s1 + $0x5d0] sm:$0xf]  ;;  %v2153_v61 = vld [vmem:[%s3751_s1 + $0x4c0] sm:$0xf] }
  0x33   :  { %1314 = vmatpush.bf16.msrb.mxu3 %v2026_v28  ;;  %v229_v28 = vunpack.c.h.b16 %v16_v9  ;;  %v2482_v53 = vld [vmem:[%s3751_s1 + $0x554] sm:$0xf0]  ;;  %v2162_v57 = vor.u32 %v2466_v51, %v2161_v49  ;;  %v2480_v1 = vld [vmem:[%s3751_s1 + $0x544] sm:$0xf0]  ;;  %v2281_v2 = vld [vmem:[%s3751_s1 + $0x5c0] sm:$0xf] }
  0x34   :  { %1276 = vmatpush.bf16.msrb.mxu0 %v1826_v34  ;;  %v2306_v34 = vor.u32 %v2502_v23, %v2305_v22  ;;  %v2981_v41 = vpack.c.b16 %v228_v24, %v228_v24  ;;  %v2498_v55 = vld [vmem:[%s3751_s1 + $0x5d4] sm:$0xf0]  ;;  %v2496_v3 = vld [vmem:[%s3751_s1 + $0x5c4] sm:$0xf0]  ;;  %v2081_v9 = vld [vmem:[%s3751_s1 + $0x430] sm:$0xf] }
  0x35   :  { %1289 = vmatpush.bf16.msrb.mxu1 %v1890_v35  ;;  %v2468_v35 = vld [vmem:[%s3751_s1 + $0x4e4] sm:$0xf0]  ;;  %v2985_v44 = vpack.c.b16 %v229_v28, %v229_v28  ;;  %v2290_v62 = vor.u32 %v2498_v55, %v2289_v54  ;;  %v2446_v10 = vld [vmem:[%s3751_s1 + $0x434] sm:$0xf0]  ;;  %v2145_v11 = vld [vmem:[%s3751_s1 + $0x4b0] sm:$0xf]  ;;  %v2282_v12 = vor.u32 %v2496_v3, %v2281_v2 }
  0x36   :  { %1302 = vmatpush.bf16.msrb.mxu2 %v1954_v36  ;;  %v2233_v36 = vld [vmem:[%s3751_s1 + $0x560] sm:$0xf]  ;;  %v2170_v45 = vor.u32 %v2468_v35, %v2169_v33  ;;  %v2209_v14 = vld [vmem:[%s3751_s1 + $0x530] sm:$0xf]  ;;  %v2478_v15 = vld [vmem:[%s3751_s1 + $0x534] sm:$0xf0] }
  0x37   :  { %1315 = vmatpush.bf16.msrb.mxu3 %v2018_v40  ;;  %v2500_v40 = vld [vmem:[%s3751_s1 + $0x5e4] sm:$0xf0]  ;;  %v2273_v16 = vld [vmem:[%s3751_s1 + $0x5b0] sm:$0xf]  ;;  %v2494_v17 = vld [vmem:[%s3751_s1 + $0x5b4] sm:$0xf0]  ;;  %v2210_v22 = vor.u32 %v2478_v15, %v2209_v14 }
  0x38   :  { %1277 = vmatpush.bf16.msrb.mxu0 %v1818_v46  ;;  %v2234_v46 = vor.u32 %v2484_v37, %v2233_v36  ;;  %v2298_v50 = vor.u32 %v2500_v40, %v2297_v39  ;;  %v2073_v23 = vld [vmem:[%s3751_s1 + $0x420] sm:$0xf]  ;;  %v2444_v24 = vld [vmem:[%s3751_s1 + $0x424] sm:$0xf0]  ;;  %v2065_v35 = vld [vmem:[%s3751_s1 + $0x410] sm:$0xf] }
  0x39   :  { %1290 = vmatpush.bf16.msrb.mxu1 %v1882_v47  ;;  %v2097_v47 = vld [vmem:[%s3751_s1 + $0x450] sm:$0xf]  ;;  %v2137_v25 = vld [vmem:[%s3751_s1 + $0x4a0] sm:$0xf]  ;;  %v2492_v31 = vld [vmem:[%s3751_s1 + $0x5a4] sm:$0xf0]  ;;  %v2074_v32 = vor.u32 %v2444_v24, %v2073_v23 }
  0x3a   :  { %1303 = vmatpush.bf16.msrb.mxu2 %v1946_v48  ;;  %v2450_v48 = vld [vmem:[%s3751_s1 + $0x454] sm:$0xf0]  ;;  %v2201_v28 = vld [vmem:[%s3751_s1 + $0x520] sm:$0xf]  ;;  %v2129_v37 = vld [vmem:[%s3751_s1 + $0x490] sm:$0xf] }
  0x3b   :  { %1316 = vmatpush.bf16.msrb.mxu3 %v2010_v52  ;;  %v2225_v52 = vld [vmem:[%s3751_s1 + $0x550] sm:$0xf]  ;;  %v2098_v56 = vor.u32 %v2450_v48, %v2097_v47  ;;  %v2442_v36 = vld [vmem:[%s3751_s1 + $0x414] sm:$0xf0]  ;;  %v2057_v48 = vld [vmem:[%s3751_s1 + $0x400] sm:$0xf] }
  0x3c   :  { %1278 = vmatpush.bf16.msrb.mxu0 %v1810_v59  ;;  %v2226_v58 = vor.u32 %v2482_v53, %v2225_v52  ;;  %v2089_v59 = vld [vmem:[%s3751_s1 + $0x440] sm:$0xf]  ;;  %v2458_v40 = vld [vmem:[%s3751_s1 + $0x494] sm:$0xf0]  ;;  %v2066_v49 = vor.u32 %v2442_v36, %v2065_v35  ;;  %v2456_v52 = vld [vmem:[%s3751_s1 + $0x484] sm:$0xf0] }
  0x3d   :  { %1291 = vmatpush.bf16.msrb.mxu1 %v1874_v63  ;;  %v2464_v63 = vld [vmem:[%s3751_s1 + $0x4c4] sm:$0xf0]  ;;  %v2490_v47 = vld [vmem:[%s3751_s1 + $0x594] sm:$0xf0]  ;;  %v2121_v51 = vld [vmem:[%s3751_s1 + $0x480] sm:$0xf]  ;;  %v2130_v53 = vor.u32 %v2458_v40, %v2129_v37 }
  0x3e   :  { %1304 = vmatpush.bf16.msrb.mxu2 %v1938_v0  ;;  %v2217_v0 = vld [vmem:[%s3751_s1 + $0x540] sm:$0xf]  ;;  %v2154_v7 = vor.u32 %v2464_v63, %v2153_v61  ;;  %v19_v61 = vld [vmem:[%s3752_s0 + $0x28] sm:$0x77]  ;;  %v1603_v63 = vld [vmem:[%s3751_s1 + $0x78] sm:$0xf0] }
  0x3f   :  { %1317 = vmatpush.bf16.msrb.mxu3 %v2002_v5  ;;  %v2090_v5 = vor.u32 %v2448_v60, %v2089_v59  ;;  %v2218_v8 = vor.u32 %v2480_v1, %v2217_v0  ;;  %v2185_v55 = vld [vmem:[%s3751_s1 + $0x500] sm:$0xf]  ;;  %v2488_v60 = vld [vmem:[%s3751_s1 + $0x584] sm:$0xf0]  ;;  %v2341_v0 = vld [vmem:[%s3751_s1 + $0xf4] sm:$0xf] }
  0x40   :  { %1279 = vmatpush.bf16.msrb.mxu0 %v1802_v13  ;;  %v2462_v13 = vld [vmem:[%s3751_s1 + $0x4b4] sm:$0xf0]  ;;  %v2249_v59 = vld [vmem:[%s3751_s1 + $0x580] sm:$0xf]  ;;  %v1667_v2 = vld [vmem:[%s3751_s1 + $0xf8] sm:$0xf0] }
  0x41   :  { %1292 = vmatpush.bf16.msrb.mxu1 %v1866_v18  ;;  %v2082_v18 = vor.u32 %v2446_v10, %v2081_v9  ;;  %v2357_v3 = vld [vmem:[%s3751_s1 + $0x174] sm:$0xf]  ;;  %v2250_v14 = vor.u32 %v2488_v60, %v2249_v59  ;;  %v2339_v23 = vld [vmem:[%s3751_s1 + $0xe4] sm:$0xf]  ;;  %v1707_v59 = vld [vmem:[%s3751_s1 + $0x148] sm:$0xf0] }
  0x42   :  { %1305 = vmatpush.bf16.msrb.mxu2 %v1930_v19  ;;  %v2146_v19 = vor.u32 %v2462_v13, %v2145_v11  ;;  %v2373_v10 = vld [vmem:[%s3751_s1 + $0x1f4] sm:$0xf]  ;;  %v1795_v11 = vld [vmem:[%s3751_s1 + $0x1f8] sm:$0xf0]  ;;  %v2367_v60 = vld [vmem:[%s3751_s1 + $0x1c4] sm:$0xf] }
  0x43   :  { %1318 = vmatpush.bf16.msrb.mxu3 %v1994_v26  ;;  %1280 = vmatmul.bf16.vlgmr.msrb.gmra.mxu0 %v2981_v41  ;;  %v2274_v26 = vor.u32 %v2494_v17, %v2273_v16  ;;  %v235_v16 = vunpack.c.h.b16 %v19_v61  ;;  %v1670_v17 = vor.u32 %v2341_v0, %v1667_v2  ;;  %v1798_v24 = vor.u32 %v2373_v10, %v1795_v11  ;;  %v2321_v37 = vld [vmem:[%s3751_s1 + $0x54] sm:$0xf]  ;;  %v1571_v2 = vld [vmem:[%s3751_s1 + $0x38] sm:$0xf0]  ;;  %vm1537_vm2 = vmor %vm1536_vm1, %vm1535_vm0 }
  0x44   :  { %1324 = vmatpush.bf16.msra.mxu0 %v2114_v27  ;;  %1293 = vmatmul.bf16.vlgmr.msrb.gmra.mxu1 %v2985_v44  ;;  %v2460_v27 = vld [vmem:[%s3751_s1 + $0x4a4] sm:$0xf0]  ;;  %v2337_v40 = vld [vmem:[%s3751_s1 + $0xd4] sm:$0xf]  ;;  %v1763_v11 = vld [vmem:[%s3751_s1 + $0x1b8] sm:$0xf0] }
  0x45   :  { %1337 = vmatpush.bf16.msra.mxu1 %v2178_v29  ;;  %1306 = vmatmul.bf16.vlgmr.msrb.gmra.mxu2 %v2973_v38  ;;  %v2476_v29 = vld [vmem:[%s3751_s1 + $0x524] sm:$0xf0]  ;;  %v2138_v33 = vor.u32 %v2460_v27, %v2137_v25  ;;  %v2355_v27 = vld [vmem:[%s3751_s1 + $0x164] sm:$0xf]  ;;  %v2365_v10 = vld [vmem:[%s3751_s1 + $0x1b4] sm:$0xf] }
  0x46   :  { %1350 = vmatpush.bf16.msra.mxu2 %v2242_v30  ;;  %1319 = vmatmul.bf16.vlgmr.msrb.gmra.mxu3 %v2983_v42  ;;  %v2265_v30 = vld [vmem:[%s3751_s1 + $0x5a0] sm:$0xf] }
  0x47   :  { %1363 = vmatpush.bf16.msra.mxu3 %v2306_v34  ;;  %v2202_v34 = vor.u32 %v2476_v29, %v2201_v28  ;;  %v2266_v39 = vor.u32 %v2492_v31, %v2265_v30  ;;  %v1723_v28 = vld [vmem:[%s3751_s1 + $0x168] sm:$0xf0]  ;;  %v2371_v31 = vld [vmem:[%s3751_s1 + $0x1e4] sm:$0xf] }
  0x48   :  { %1325 = vmatpush.bf16.msra.mxu0 %v2106_v43  ;;  %v2193_v43 = vld [vmem:[%s3751_s1 + $0x510] sm:$0xf]  ;;  %v1726_v36 = vor.u32 %v2355_v27, %v1723_v28 }
  0x49   :  { %1338 = vmatpush.bf16.msra.mxu1 %v2170_v45  ;;  %v2474_v45 = vld [vmem:[%s3751_s1 + $0x514] sm:$0xf0] }
  0x4a   :  { %1351 = vmatpush.bf16.msra.mxu2 %v2234_v46  ;;  %v2257_v46 = vld [vmem:[%s3751_s1 + $0x590] sm:$0xf]  ;;  %v2194_v54 = vor.u32 %v2474_v45, %v2193_v43  ;;  %v1651_v45 = vld [vmem:[%s3751_s1 + $0xd8] sm:$0xf0] }
  0x4b   :  { %1364 = vmatpush.bf16.msra.mxu3 %v2298_v50  ;;  %v2440_v50 = vld [vmem:[%s3751_s1 + $0x404] sm:$0xf0] }
  0x4c   :  { %1326 = vmatpush.bf16.msra.mxu0 %v2098_v56  ;;  %v2472_v56 = vld [vmem:[%s3751_s1 + $0x504] sm:$0xf0]  ;;  %v2058_v1 = vor.u32 %v2440_v50, %v2057_v48  ;;  %v2369_v48 = vld [vmem:[%s3751_s1 + $0x1d4] sm:$0xf] }
  0x4d   :  { %1339 = vmatpush.bf16.msra.mxu1 %v2162_v57  ;;  %v18_v57 = vld [vmem:[%s3752_s0 + $0x20] sm:$0x77]  ;;  %v2186_v9 = vor.u32 %v2472_v56, %v2185_v55 }
  0x4e   :  { %1352 = vmatpush.bf16.msra.mxu2 %v2226_v58  ;;  %v2258_v58 = vor.u32 %v2490_v47, %v2257_v46  ;;  %v233_v13 = vunpack.c.h.b16 %v18_v57  ;;  %v2353_v46 = vld [vmem:[%s3751_s1 + $0x154] sm:$0xf]  ;;  %v1715_v47 = vld [vmem:[%s3751_s1 + $0x158] sm:$0xf0]  ;;  %v2335_v55 = vld [vmem:[%s3751_s1 + $0xc4] sm:$0xf] }
  0x4f   :  { %1365 = vmatpush.bf16.msra.mxu3 %v2290_v62  ;;  %v2325_v62 = vld [vmem:[%s3751_s1 + $0x74] sm:$0xf] }
  0x50   :  { %1327 = vmatpush.bf16.msra.mxu0 %v2090_v5  ;;  %v1731_v5 = vld [vmem:[%s3751_s1 + $0x178] sm:$0xf0]  ;;  %v1606_v15 = vor.u32 %v2325_v62, %v1603_v63  ;;  %v3187_v30 = vpack.c.b16 %v233_v13, %v233_v13 }
  0x51   :  { %1340 = vmatpush.bf16.msra.mxu1 %v2154_v7  ;;  %v232_v7 = vunpack.c.l.b16 %v18_v57  ;;  %v1643_v57 = vld [vmem:[%s3751_s1 + $0xc8] sm:$0xf0] }
  0x52   :  { %1353 = vmatpush.bf16.msra.mxu2 %v2218_v8  ;;  %v2122_v8 = vor.u32 %v2456_v52, %v2121_v51  ;;  %v1654_v51 = vor.u32 %v2337_v40, %v1651_v45  ;;  %v1718_v52 = vor.u32 %v2353_v46, %v1715_v47  ;;  %v1646_v63 = vor.u32 %v2335_v55, %v1643_v57  ;;  %v1683_v40 = vld [vmem:[%s3751_s1 + $0x118] sm:$0xf0]  ;;  %v2311_v47 = vld [vmem:[%s3751_s1 + $0x4] sm:$0xf]  ;;  %v1675_v55 = vld [vmem:[%s3751_s1 + $0x108] sm:$0xf0] }
  0x53   :  { %1366 = vmatpush.bf16.msra.mxu3 %v2282_v12  ;;  %v234_v12 = vunpack.c.l.b16 %v19_v61  ;;  %v3174_v25 = vpack.c.b16 %v232_v7, %v232_v7  ;;  %v1771_v61 = vld [vmem:[%s3751_s1 + $0x1c8] sm:$0xf0]  ;;  %v1635_v7 = vld [vmem:[%s3751_s1 + $0xb8] sm:$0xf0] }
  0x54   :  { %1328 = vmatpush.bf16.msra.mxu0 %v2082_v18  ;;  %v1734_v18 = vor.u32 %v2357_v3, %v1731_v5  ;;  %v2333_v3 = vld [vmem:[%s3751_s1 + $0xb4] sm:$0xf]  ;;  %v1774_v5 = vor.u32 %v2367_v60, %v1771_v61  ;;  %v1747_v45 = vld [vmem:[%s3751_s1 + $0x198] sm:$0xf0]  ;;  %v1739_v57 = vld [vmem:[%s3751_s1 + $0x188] sm:$0xf0] }
  0x55   :  { %1341 = vmatpush.bf16.msra.mxu1 %v2146_v19  ;;  %v2323_v19 = vld [vmem:[%s3751_s1 + $0x64] sm:$0xf]  ;;  %v3185_v29 = vpack.c.b16 %v234_v12, %v234_v12  ;;  %v1638_v13 = vor.u32 %v2333_v3, %v1635_v7  ;;  %v2405_v60 = vld [vmem:[%s3751_s1 + $0x2f4] sm:$0xf] }
  0x56   :  { %1354 = vmatpush.bf16.msra.mxu2 %v2210_v22  ;;  %v1595_v22 = vld [vmem:[%s3751_s1 + $0x68] sm:$0xf0]  ;;  %v2437_v3 = vld [vmem:[%s3751_s1 + $0x3f4] sm:$0xf] }
  0x57   :  { %1367 = vmatpush.bf16.msra.mxu3 %v2274_v26  ;;  %v1659_v26 = vld [vmem:[%s3751_s1 + $0xe8] sm:$0xf0] }
  0x58   :  { %1329 = vmatpush.bf16.msra.mxu0 %v2074_v32  ;;  %v1787_v32 = vld [vmem:[%s3751_s1 + $0x1e8] sm:$0xf0]  ;;  %v1662_v35 = vor.u32 %v2339_v23, %v1659_v26 }
  0x59   :  { %1342 = vmatpush.bf16.msra.mxu1 %v2138_v33  ;;  %v3195_v33 = vpack.c.b16 %v235_v16, %v235_v16  ;;  %v1790_v43 = vor.u32 %v2371_v31, %v1787_v32  ;;  %v1563_v16 = vld [vmem:[%s3751_s1 + $0x28] sm:$0xf0]  ;;  %v2313_v32 = vld [vmem:[%s3751_s1 + $0x14] sm:$0xf] }
  0x5a   :  { %1355 = vmatpush.bf16.msra.mxu2 %v2202_v34  ;;  %v1598_v34 = vor.u32 %v2323_v19, %v1595_v22  ;;  %v1627_v19 = vld [vmem:[%s3751_s1 + $0xa8] sm:$0xf0]  ;;  %v2347_v22 = vld [vmem:[%s3751_s1 + $0x124] sm:$0xf] }
  0x5b   :  { %1368 = vmatpush.bf16.msra.mxu3 %v2266_v39  ;;  %v1587_v39 = vld [vmem:[%s3751_s1 + $0x58] sm:$0xf0]  ;;  %v1691_v23 = vld [vmem:[%s3751_s1 + $0x128] sm:$0xf0] }
  0x5c   :  { %1330 = vmatpush.bf16.msra.mxu0 %v2066_v49  ;;  %v1779_v49 = vld [vmem:[%s3751_s1 + $0x1d8] sm:$0xf0]  ;;  %v1590_v50 = vor.u32 %v2321_v37, %v1587_v39  ;;  %v1755_v26 = vld [vmem:[%s3751_s1 + $0x1a8] sm:$0xf0]  ;;  %v1694_v31 = vor.u32 %v2347_v22, %v1691_v23  ;;  %v2345_v39 = vld [vmem:[%s3751_s1 + $0x114] sm:$0xf] }
  0x5d   :  { %1343 = vmatpush.bf16.msra.mxu1 %v2130_v53  ;;  %v2319_v53 = vld [vmem:[%s3751_s1 + $0x44] sm:$0xf]  ;;  %v1782_v56 = vor.u32 %v2369_v48, %v1779_v49  ;;  %v1619_v37 = vld [vmem:[%s3751_s1 + $0x98] sm:$0xf0]  ;;  %v1547_v48 = vld [vmem:[%s3751_s1 + $0x8] sm:$0xf0] }
  0x5e   :  { %1356 = vmatpush.bf16.msra.mxu2 %v2194_v54  ;;  %v1579_v54 = vld [vmem:[%s3751_s1 + $0x48] sm:$0xf0]  ;;  %v1550_v61 = vor.u32 %v2311_v47, %v1547_v48  ;;  %v2431_v48 = vld [vmem:[%s3751_s1 + $0x3c4] sm:$0xf] }
  0x5f   :  { %1369 = vmatpush.bf16.msra.mxu3 %v2258_v58  ;;  %v2351_v58 = vld [vmem:[%s3751_s1 + $0x144] sm:$0xf]  ;;  %v1582_v62 = vor.u32 %v2319_v53, %v1579_v54  ;;  %v1963_v47 = vld [vmem:[%s3751_s1 + $0x348] sm:$0xf0] }
  0x60   :  { %1331 = vmatpush.bf16.msra.mxu0 %v2058_v1  ;;  %v1710_v0 = vor.u32 %v2351_v58, %v1707_v59  ;;  %v2317_v1 = vld [vmem:[%s3751_s1 + $0x34] sm:$0xf]  ;;  %v2343_v53 = vld [vmem:[%s3751_s1 + $0x104] sm:$0xf]  ;;  %v1859_v59 = vld [vmem:[%s3751_s1 + $0x278] sm:$0xf0] }
  0x61   :  { %1344 = vmatpush.bf16.msra.mxu1 %v2122_v8  ;;  %v2349_v8 = vld [vmem:[%s3751_s1 + $0x134] sm:$0xf]  ;;  %v1574_v12 = vor.u32 %v2317_v1, %v1571_v2  ;;  %v1678_v2 = vor.u32 %v2343_v53, %v1675_v55 }
  0x62   :  { %1357 = vmatpush.bf16.msra.mxu2 %v2186_v9  ;;  %v1699_v9 = vld [vmem:[%s3751_s1 + $0x138] sm:$0xf0]  ;;  %v2389_v58 = vld [vmem:[%s3751_s1 + $0x274] sm:$0xf] }
  0x63   :  { %1370 = vmatpush.bf16.msra.mxu3 %v2250_v14  ;;  %1332 = vmatmul.bf16.vlgmr.msra.gmra.mxu0 %v3174_v25  ;;  %v1702_v14 = vor.u32 %v2349_v8, %v1699_v9  ;;  %v1862_v8 = vor.u32 %v2389_v58, %v1859_v59  ;;  %v2381_v53 = vld [vmem:[%s3751_s1 + $0x234] sm:$0xf]  ;;  %v1955_v59 = vld [vmem:[%s3751_s1 + $0x338] sm:$0xf0] }
  0x64   :  { %1376 = vmatpush.bf16.msrb.mxu0 %v1606_v15  ;;  %1345 = vmatmul.bf16.vlgmr.msra.gmra.mxu1 %v3187_v30  ;;  %v2315_v15 = vld [vmem:[%s3751_s1 + $0x24] sm:$0xf]  ;;  %v2397_v55 = vld [vmem:[%s3751_s1 + $0x2b4] sm:$0xf] }
  0x65   :  { %1389 = vmatpush.bf16.msrb.mxu1 %v1670_v17  ;;  %1358 = vmatmul.bf16.vlgmr.msra.gmra.mxu2 %v3185_v29  ;;  %v2331_v17 = vld [vmem:[%s3751_s1 + $0xa4] sm:$0xf]  ;;  %v1566_v27 = vor.u32 %v2315_v15, %v1563_v16  ;;  %v1915_v15 = vld [vmem:[%s3751_s1 + $0x2e8] sm:$0xf0]  ;;  %v2413_v58 = vld [vmem:[%s3751_s1 + $0x334] sm:$0xf] }
  0x66   :  { %1402 = vmatpush.bf16.msrb.mxu2 %v1734_v18  ;;  %1371 = vmatmul.bf16.vlgmr.msra.gmra.mxu3 %v3195_v33  ;;  %v1766_v18 = vor.u32 %v2365_v10, %v1763_v11  ;;  %v1630_v28 = vor.u32 %v2331_v17, %v1627_v19  ;;  %v2387_v11 = vld [vmem:[%s3751_s1 + $0x264] sm:$0xf]  ;;  %v1979_v17 = vld [vmem:[%s3751_s1 + $0x368] sm:$0xf0] }
  0x67   :  { %1415 = vmatpush.bf16.msrb.mxu3 %v1798_v24  ;;  %v2363_v24 = vld [vmem:[%s3751_s1 + $0x1a4] sm:$0xf]  ;;  %v2043_v19 = vld [vmem:[%s3751_s1 + $0x3e8] sm:$0xf0] }
  0x68   :  { %1377 = vmatpush.bf16.msrb.mxu0 %v1598_v34  ;;  %v1555_v34 = vld [vmem:[%s3751_s1 + $0x18] sm:$0xf0]  ;;  %v2419_v16 = vld [vmem:[%s3751_s1 + $0x364] sm:$0xf] }
  0x69   :  { %1390 = vmatpush.bf16.msrb.mxu1 %v1662_v35  ;;  %v2329_v35 = vld [vmem:[%s3751_s1 + $0x94] sm:$0xf]  ;;  %v1558_v46 = vor.u32 %v2313_v32, %v1555_v34  ;;  %v1907_v32 = vld [vmem:[%s3751_s1 + $0x2d8] sm:$0xf0] }
  0x6a   :  { %1403 = vmatpush.bf16.msrb.mxu2 %v1726_v36  ;;  %v1758_v36 = vor.u32 %v2363_v24, %v1755_v26  ;;  %v1622_v49 = vor.u32 %v2329_v35, %v1619_v37  ;;  %v1982_v24 = vor.u32 %v2419_v16, %v1979_v17  ;;  %v2385_v26 = vld [vmem:[%s3751_s1 + $0x254] sm:$0xf]  ;;  %v1971_v35 = vld [vmem:[%s3751_s1 + $0x358] sm:$0xf0] }
  0x6b   :  { %1416 = vmatpush.bf16.msrb.mxu3 %v1790_v43  ;;  %v2361_v43 = vld [vmem:[%s3751_s1 + $0x194] sm:$0xf]  ;;  %v2035_v37 = vld [vmem:[%s3751_s1 + $0x3d8] sm:$0xf0] }
  0x6c   :  { %1378 = vmatpush.bf16.msrb.mxu0 %v1590_v50  ;;  %v1686_v50 = vor.u32 %v2345_v39, %v1683_v40  ;;  %v1750_v54 = vor.u32 %v2361_v43, %v1747_v45  ;;  %v2417_v34 = vld [vmem:[%s3751_s1 + $0x354] sm:$0xf]  ;;  %v2383_v43 = vld [vmem:[%s3751_s1 + $0x244] sm:$0xf]  ;;  %v1835_v45 = vld [vmem:[%s3751_s1 + $0x248] sm:$0xf0] }
  0x6d   :  { %1391 = vmatpush.bf16.msrb.mxu1 %v1654_v51  ;;  %v2327_v51 = vld [vmem:[%s3751_s1 + $0x84] sm:$0xf]  ;;  %v1811_v16 = vld [vmem:[%s3751_s1 + $0x218] sm:$0xf0]  ;;  %v2393_v17 = vld [vmem:[%s3751_s1 + $0x294] sm:$0xf] }
  0x6e   :  { %1404 = vmatpush.bf16.msrb.mxu2 %v1718_v52  ;;  %v1611_v52 = vld [vmem:[%s3751_s1 + $0x88] sm:$0xf0] }
  0x6f   :  { %1417 = vmatpush.bf16.msrb.mxu3 %v1782_v56  ;;  %v2359_v56 = vld [vmem:[%s3751_s1 + $0x184] sm:$0xf]  ;;  %v1614_v1 = vor.u32 %v2327_v51, %v1611_v52 }
  0x70   :  { %1379 = vmatpush.bf16.msrb.mxu0 %v1582_v62  ;;  %v1923_v62 = vld [vmem:[%s3751_s1 + $0x2f8] sm:$0xf0]  ;;  %v1742_v7 = vor.u32 %v2359_v56, %v1739_v57 }
  0x71   :  { %1392 = vmatpush.bf16.msrb.mxu1 %v1646_v63  ;;  %v2421_v63 = vld [vmem:[%s3751_s1 + $0x374] sm:$0xf]  ;;  %v1926_v9 = vor.u32 %v2405_v60, %v1923_v62  ;;  %v1891_v57 = vld [vmem:[%s3751_s1 + $0x2b8] sm:$0xf0] }
  0x72   :  { %1405 = vmatpush.bf16.msrb.mxu2 %v1710_v0  ;;  %v1987_v0 = vld [vmem:[%s3751_s1 + $0x378] sm:$0xf0]  ;;  %v2429_v60 = vld [vmem:[%s3751_s1 + $0x3b4] sm:$0xf] }
  0x73   :  { %1418 = vmatpush.bf16.msrb.mxu3 %v1774_v5  ;;  %v2051_v5 = vld [vmem:[%s3751_s1 + $0x3f8] sm:$0xf0]  ;;  %v1990_v10 = vor.u32 %v2421_v63, %v1987_v0  ;;  %v1894_v63 = vor.u32 %v2397_v55, %v1891_v57  ;;  %v1958_v0 = vor.u32 %v2413_v58, %v1955_v59  ;;  %v2451_v57 = vld [vmem:[%s3751_s1 + $0x464] sm:$0xf]  ;;  %v2107_v58 = vld [vmem:[%s3751_s1 + $0x468] sm:$0xf0] }
  0x74   :  { %1380 = vmatpush.bf16.msrb.mxu0 %v1574_v12  ;;  %v1851_v12 = vld [vmem:[%s3751_s1 + $0x268] sm:$0xf0]  ;;  %v2467_v59 = vld [vmem:[%s3751_s1 + $0x4e4] sm:$0xf] }
  0x75   :  { %1393 = vmatpush.bf16.msrb.mxu1 %v1638_v13  ;;  %v2403_v13 = vld [vmem:[%s3751_s1 + $0x2e4] sm:$0xf]  ;;  %v1854_v22 = vor.u32 %v2387_v11, %v1851_v12  ;;  %v2011_v11 = vld [vmem:[%s3751_s1 + $0x3a8] sm:$0xf0] }
  0x76   :  { %1406 = vmatpush.bf16.msrb.mxu2 %v1702_v14  ;;  %v2054_v14 = vor.u32 %v2437_v3, %v2051_v5  ;;  %v1918_v23 = vor.u32 %v2403_v13, %v1915_v15  ;;  %v2395_v3 = vld [vmem:[%s3751_s1 + $0x2a4] sm:$0xf]  ;;  %v2377_v15 = vld [vmem:[%s3751_s1 + $0x214] sm:$0xf] }
  0x77   :  { %1419 = vmatpush.bf16.msrb.mxu3 %v1766_v18  ;;  %v2435_v18 = vld [vmem:[%s3751_s1 + $0x3e4] sm:$0xf] }
  0x78   :  { %1381 = vmatpush.bf16.msrb.mxu0 %v1566_v27  ;;  %v1843_v27 = vld [vmem:[%s3751_s1 + $0x258] sm:$0xf0] }
  0x79   :  { %1394 = vmatpush.bf16.msrb.mxu1 %v1630_v28  ;;  %v2401_v28 = vld [vmem:[%s3751_s1 + $0x2d4] sm:$0xf]  ;;  %v1846_v39 = vor.u32 %v2385_v26, %v1843_v27  ;;  %v2003_v26 = vld [vmem:[%s3751_s1 + $0x398] sm:$0xf0]  ;;  %v1814_v27 = vor.u32 %v2377_v15, %v1811_v16 }
  0x7a   :  { %1407 = vmatpush.bf16.msrb.mxu2 %v1694_v31  ;;  %v2046_v31 = vor.u32 %v2435_v18, %v2043_v19  ;;  %v1910_v40 = vor.u32 %v2401_v28, %v1907_v32  ;;  %v1875_v19 = vld [vmem:[%s3751_s1 + $0x298] sm:$0xf0]  ;;  %v2375_v28 = vld [vmem:[%s3751_s1 + $0x204] sm:$0xf] }
  0x7b   :  { %1420 = vmatpush.bf16.msrb.mxu3 %v1758_v36  ;;  %v2433_v36 = vld [vmem:[%s3751_s1 + $0x3d4] sm:$0xf]  ;;  %v1878_v32 = vor.u32 %v2393_v17, %v1875_v19 }
  0x7c   :  { %1382 = vmatpush.bf16.msrb.mxu0 %v1558_v46  ;;  %v2415_v46 = vld [vmem:[%s3751_s1 + $0x344] sm:$0xf] }
  0x7d   :  { %1395 = vmatpush.bf16.msrb.mxu1 %v1622_v49  ;;  %v2027_v49 = vld [vmem:[%s3751_s1 + $0x3c8] sm:$0xf0]  ;;  %v1966_v52 = vor.u32 %v2415_v46, %v1963_v47  ;;  %v2179_v46 = vld [vmem:[%s3751_s1 + $0x4f8] sm:$0xf0]  ;;  %v2485_v47 = vld [vmem:[%s3751_s1 + $0x574] sm:$0xf] }
  0x7e   :  { %1408 = vmatpush.bf16.msrb.mxu2 %v1686_v50  ;;  %v1838_v50 = vor.u32 %v2383_v43, %v1835_v45  ;;  %v2030_v56 = vor.u32 %v2431_v48, %v2027_v49  ;;  %v1995_v43 = vld [vmem:[%s3751_s1 + $0x388] sm:$0xf0]  ;;  %v2453_v45 = vld [vmem:[%s3751_s1 + $0x474] sm:$0xf]  ;;  %v2243_v48 = vld [vmem:[%s3751_s1 + $0x578] sm:$0xf0] }
  0x7f   :  { %1421 = vmatpush.bf16.msrb.mxu3 %v1750_v54  ;;  %v1827_v54 = vld [vmem:[%s3751_s1 + $0x238] sm:$0xf0] }
  0x80   :  { %1383 = vmatpush.bf16.msrb.mxu0 %v1550_v61  ;;  %v2019_v61 = vld [vmem:[%s3751_s1 + $0x3b8] sm:$0xf0]  ;;  %v1830_v62 = vor.u32 %v2381_v53, %v1827_v54 }
  0x81   :  { %1396 = vmatpush.bf16.msrb.mxu1 %v1614_v1  ;;  %v2379_v1 = vld [vmem:[%s3751_s1 + $0x224] sm:$0xf]  ;;  %v2022_v5 = vor.u32 %v2429_v60, %v2019_v61  ;;  %v2171_v61 = vld [vmem:[%s3751_s1 + $0x4e8] sm:$0xf0] }
  0x82   :  { %1409 = vmatpush.bf16.msrb.mxu2 %v1678_v2  ;;  %v1819_v2 = vld [vmem:[%s3751_s1 + $0x228] sm:$0xf0] }
  0x83   :  { %1422 = vmatpush.bf16.msrb.mxu3 %v1742_v7  ;;  %1384 = vmatmul.bf16.vlgmr.msrb.gmra.mxu0 %v2822_v20  ;;  %v2038_v20 = vor.u32 %v2433_v36, %v2035_v37  ;;  %v1883_v7 = vld [vmem:[%s3751_s1 + $0x2a8] sm:$0xf0]  ;;  %v1822_v12 = vor.u32 %v2379_v1, %v1819_v2  ;;  %v2407_v37 = vld [vmem:[%s3751_s1 + $0x304] sm:$0xf]  ;;  %v2110_v2 = vor.u32 %v2451_v57, %v2107_v58 }
  0x84   :  { %1428 = vmatpush.bf16.msra.mxu0 %v1862_v8  ;;  %1397 = vmatmul.bf16.vlgmr.msrb.gmra.mxu1 %v2825_v21  ;;  %v1899_v21 = vld [vmem:[%s3751_s1 + $0x2c8] sm:$0xf0]  ;;  %v2411_v8 = vld [vmem:[%s3751_s1 + $0x324] sm:$0xf]  ;;  %v1886_v13 = vor.u32 %v2395_v3, %v1883_v7  ;;  %v2174_v3 = vor.u32 %v2467_v59, %v2171_v61  ;;  %v2449_v7 = vld [vmem:[%s3751_s1 + $0x454] sm:$0xf] }
  0x85   :  { %1441 = vmatpush.bf16.msra.mxu1 %v1926_v9  ;;  %1410 = vmatmul.bf16.vlgmr.msrb.gmra.mxu2 %v2790_v4  ;;  %v1974_v4 = vor.u32 %v2417_v34, %v1971_v35  ;;  %v1947_v9 = vld [vmem:[%s3751_s1 + $0x328] sm:$0xf0]  ;;  %v2391_v35 = vld [vmem:[%s3751_s1 + $0x284] sm:$0xf] }
  0x86   :  { %1454 = vmatpush.bf16.msra.mxu2 %v1990_v10  ;;  %1423 = vmatmul.bf16.vlgmr.msrb.gmra.mxu3 %v2795_v6  ;;  %v2399_v6 = vld [vmem:[%s3751_s1 + $0x2c4] sm:$0xf]  ;;  %v1867_v36 = vld [vmem:[%s3751_s1 + $0x288] sm:$0xf0] }
  0x87   :  { %1467 = vmatpush.bf16.msra.mxu3 %v2054_v14  ;;  %v1902_v51 = vor.u32 %v2399_v6, %v1899_v21  ;;  %v2427_v10 = vld [vmem:[%s3751_s1 + $0x3a4] sm:$0xf]  ;;  %v1950_v14 = vor.u32 %v2411_v8, %v1947_v9  ;;  %v2115_v6 = vld [vmem:[%s3751_s1 + $0x478] sm:$0xf0]  ;;  %v1870_v49 = vor.u32 %v2391_v35, %v1867_v36  ;;  %v2299_v1 = vld [vmem:[%s3751_s1 + $0x5e8] sm:$0xf0] }
  0x88   :  { %1429 = vmatpush.bf16.msra.mxu0 %v1854_v22  ;;  %v2014_v18 = vor.u32 %v2427_v10, %v2011_v11  ;;  %v2409_v22 = vld [vmem:[%s3751_s1 + $0x314] sm:$0xf]  ;;  %v2118_v54 = vor.u32 %v2453_v45, %v2115_v6  ;;  %v2099_v8 = vld [vmem:[%s3751_s1 + $0x458] sm:$0xf0]  ;;  %v3653_v36 = vld [vmem:[%s3753_s2] sm:$0x3] }
  0x89   :  { %1442 = vmatpush.bf16.msra.mxu1 %v1918_v23  ;;  %v1939_v23 = vld [vmem:[%s3751_s1 + $0x318] sm:$0xf0]  ;;  %v2465_v9 = vld [vmem:[%s3751_s1 + $0x4d4] sm:$0xf]  ;;  %v2102_v15 = vor.u32 %v2449_v7, %v2099_v8 }
  0x8a   :  { %1455 = vmatpush.bf16.msra.mxu2 %v1982_v24  ;;  %v2425_v24 = vld [vmem:[%s3751_s1 + $0x394] sm:$0xf]  ;;  %v1942_v34 = vor.u32 %v2409_v22, %v1939_v23  ;;  %v2163_v11 = vld [vmem:[%s3751_s1 + $0x4d8] sm:$0xf0]  ;;  %v2479_v22 = vld [vmem:[%s3751_s1 + $0x544] sm:$0xf] }
  0x8b   :  { %1468 = vmatpush.bf16.msra.mxu3 %v2046_v31  ;;  %v1803_v31 = vld [vmem:[%s3751_s1 + $0x208] sm:$0xf0]  ;;  %v2166_v16 = vor.u32 %v2465_v9, %v2163_v11  ;;  %v2461_v35 = vld [vmem:[%s3751_s1 + $0x4b4] sm:$0xf]  ;;  %v2275_v45 = vld [vmem:[%s3751_s1 + $0x5b8] sm:$0xf0] }
  0x8c   :  { %1430 = vmatpush.bf16.msra.mxu0 %v1846_v39  ;;  %v2006_v39 = vor.u32 %v2425_v24, %v2003_v26  ;;  %v1806_v21 = vor.u32 %v2375_v28, %v1803_v31  ;;  %v2219_v23 = vld [vmem:[%s3751_s1 + $0x548] sm:$0xf0]  ;;  %v2495_v24 = vld [vmem:[%s3751_s1 + $0x5c4] sm:$0xf]  ;;  %v2445_v28 = vld [vmem:[%s3751_s1 + $0x434] sm:$0xf] }
  0x8d   :  { %1443 = vmatpush.bf16.msra.mxu1 %v1910_v40  ;;  %v1931_v40 = vld [vmem:[%s3751_s1 + $0x308] sm:$0xf0]  ;;  %v2195_v7 = vld [vmem:[%s3751_s1 + $0x518] sm:$0xf0] }
  0x8e   :  { %1456 = vmatpush.bf16.msra.mxu2 %v1974_v4  ;;  %v2423_v4 = vld [vmem:[%s3751_s1 + $0x384] sm:$0xf]  ;;  %v2283_v26 = vld [vmem:[%s3751_s1 + $0x5c8] sm:$0xf0]  ;;  %v2259_v11 = vld [vmem:[%s3751_s1 + $0x598] sm:$0xf0] }
  0x8f   :  { %1469 = vmatpush.bf16.msra.mxu3 %v2038_v20  ;;  %v2469_v20 = vld [vmem:[%s3751_s1 + $0x4f4] sm:$0xf]  ;;  %v1998_v53 = vor.u32 %v2423_v4, %v1995_v43  ;;  %v2211_v4 = vld [vmem:[%s3751_s1 + $0x538] sm:$0xf0] }
  0x90   :  { %1431 = vmatpush.bf16.msra.mxu0 %v1838_v50  ;;  %v1934_v50 = vor.u32 %v2407_v37, %v1931_v40  ;;  %v2182_v55 = vor.u32 %v2469_v20, %v2179_v46  ;;  %v2286_v37 = vor.u32 %v2495_v24, %v2283_v26  ;;  %v2477_v40 = vld [vmem:[%s3751_s1 + $0x534] sm:$0xf]  ;;  %v214_v20 = vperm.slane %v3653_v36, 0 }
  0x91   :  { %1444 = vmatpush.bf16.msra.mxu1 %v1902_v51  ;;  %v2501_v51 = vld [vmem:[%s3751_s1 + $0x5f4] sm:$0xf]  ;;  %v2214_v46 = vor.u32 %v2477_v40, %v2211_v4 }
  0x92   :  { %1457 = vmatpush.bf16.msra.mxu2 %v1966_v52  ;;  %v2307_v52 = vld [vmem:[%s3751_s1 + $0x5f8] sm:$0xf0]  ;;  %v2493_v43 = vld [vmem:[%s3751_s1 + $0x5b4] sm:$0xf] }
  0x93   :  { %1470 = vmatpush.bf16.msra.mxu3 %v2030_v56  ;;  %v2246_v56 = vor.u32 %v2485_v47, %v2243_v48  ;;  %v2310_v60 = vor.u32 %v2501_v51, %v2307_v52  ;;  %v2443_v47 = vld [vmem:[%s3751_s1 + $0x424] sm:$0xf]  ;;  %v2075_v48 = vld [vmem:[%s3751_s1 + $0x428] sm:$0xf0] }
  0x94   :  { %1432 = vmatpush.bf16.msra.mxu0 %v1830_v62  ;;  %v2483_v62 = vld [vmem:[%s3751_s1 + $0x564] sm:$0xf]  ;;  %v2139_v51 = vld [vmem:[%s3751_s1 + $0x4a8] sm:$0xf0]  ;;  %v2078_v57 = vor.u32 %v2443_v47, %v2075_v48 }
  0x95   :  { %1445 = vmatpush.bf16.msra.mxu1 %v1894_v63  ;;  %v2235_v63 = vld [vmem:[%s3751_s1 + $0x568] sm:$0xf0]  ;;  %v2475_v52 = vld [vmem:[%s3751_s1 + $0x524] sm:$0xf] }
  0x96   :  { %1458 = vmatpush.bf16.msra.mxu2 %v1958_v0  ;;  %v2499_v0 = vld [vmem:[%s3751_s1 + $0x5e4] sm:$0xf] }
  0x97   :  { %1471 = vmatpush.bf16.msra.mxu3 %v2022_v5  ;;  %v2238_v5 = vor.u32 %v2483_v62, %v2235_v63  ;;  %v2302_v10 = vor.u32 %v2499_v0, %v2299_v1  ;;  %v2441_v62 = vld [vmem:[%s3751_s1 + $0x414] sm:$0xf]  ;;  %v2067_v63 = vld [vmem:[%s3751_s1 + $0x418] sm:$0xf0] }
  0x98   :  { %1433 = vmatpush.bf16.msra.mxu0 %v1822_v12  ;;  %v2481_v12 = vld [vmem:[%s3751_s1 + $0x554] sm:$0xf] }
  0x99   :  { %1446 = vmatpush.bf16.msra.mxu1 %v1886_v13  ;;  %v2227_v13 = vld [vmem:[%s3751_s1 + $0x558] sm:$0xf0]  ;;  %v2457_v0 = vld [vmem:[%s3751_s1 + $0x494] sm:$0xf] }
  0x9a   :  { %1459 = vmatpush.bf16.msra.mxu2 %v1950_v14  ;;  %v2291_v14 = vld [vmem:[%s3751_s1 + $0x5d8] sm:$0xf0]  ;;  %v2230_v17 = vor.u32 %v2481_v12, %v2227_v13  ;;  %v2070_v12 = vor.u32 %v2441_v62, %v2067_v63 }
  0x9b   :  { %1472 = vmatpush.bf16.msra.mxu3 %v2014_v18  ;;  %v2463_v18 = vld [vmem:[%s3751_s1 + $0x4c4] sm:$0xf] }
  0x9c   :  { %1434 = vmatpush.bf16.msra.mxu0 %v1814_v27 }
  0x9d   :  { %1447 = vmatpush.bf16.msra.mxu1 %v1878_v32  ;;  %v2222_v32 = vor.u32 %v2479_v22, %v2219_v23  ;;  %v2487_v22 = vld [vmem:[%s3751_s1 + $0x584] sm:$0xf]  ;;  %v2251_v23 = vld [vmem:[%s3751_s1 + $0x588] sm:$0xf0] }
  0x9e   :  { %1460 = vmatpush.bf16.msra.mxu2 %v1942_v34  ;;  %v2083_v34 = vld [vmem:[%s3751_s1 + $0x438] sm:$0xf0] }
  0x9f   :  { %1473 = vmatpush.bf16.msra.mxu3 %v2006_v39  ;;  %v2147_v39 = vld [vmem:[%s3751_s1 + $0x4b8] sm:$0xf0]  ;;  %v2086_v6 = vor.u32 %v2445_v28, %v2083_v34  ;;  %v2254_v34 = vor.u32 %v2487_v22, %v2251_v23 }
  0xa0   :  { %1435 = vmatpush.bf16.msra.mxu0 %v1806_v21  ;;  %v2150_v21 = vor.u32 %v2461_v35, %v2147_v39 }
  0xa1   :  { %1448 = vmatpush.bf16.msra.mxu1 %v1870_v49  ;;  %v2459_v49 = vld [vmem:[%s3751_s1 + $0x4a4] sm:$0xf]  ;;  %v1242_v59 = vpop.f32.mrf.mxu1 }
  0xa2   :  { %1461 = vmatpush.bf16.msra.mxu2 %v1934_v50  ;;  %v2278_v50 = vor.u32 %v2493_v43, %v2275_v45 }
  0xa3   :  { %1474 = vmatpush.bf16.msra.mxu3 %v1998_v53  ;;  %1436 = vmatmul.bf16.vlgmr.msra.gmra.mxu0 %v2981_v41  ;;  %v2447_v41 = vld [vmem:[%s3751_s1 + $0x444] sm:$0xf]  ;;  %v2203_v53 = vld [vmem:[%s3751_s1 + $0x528] sm:$0xf0] }
  0xa4   :  { %1480 = vmatpush.bf16.msrb.mxu0 %v2118_v54  ;;  %1449 = vmatmul.bf16.vlgmr.msra.gmra.mxu1 %v2985_v44  ;;  %v2155_v44 = vld [vmem:[%s3751_s1 + $0x4c8] sm:$0xf0]  ;;  %v2491_v54 = vld [vmem:[%s3751_s1 + $0x5a4] sm:$0xf]  ;;  %v2206_v61 = vor.u32 %v2475_v52, %v2203_v53 }
  0xa5   :  { %1493 = vmatpush.bf16.msrb.mxu1 %v2182_v55  ;;  %1462 = vmatmul.bf16.vlgmr.msra.gmra.mxu2 %v2973_v38  ;;  %v2497_v38 = vld [vmem:[%s3751_s1 + $0x5d4] sm:$0xf]  ;;  %v2158_v31 = vor.u32 %v2463_v18, %v2155_v44  ;;  %v2267_v55 = vld [vmem:[%s3751_s1 + $0x5a8] sm:$0xf0]  ;;  %v2471_v18 = vld [vmem:[%s3751_s1 + $0x504] sm:$0xf] }
  0xa6   :  { %1506 = vmatpush.bf16.msrb.mxu2 %v2246_v56  ;;  %1475 = vmatmul.bf16.vlgmr.msra.gmra.mxu3 %v2983_v42  ;;  %v2091_v42 = vld [vmem:[%s3751_s1 + $0x448] sm:$0xf0]  ;;  %v2294_v19 = vor.u32 %v2497_v38, %v2291_v14  ;;  %v1229_v56 = vpop.f32.mrf.mxu0 }
  0xa7   :  { %1519 = vmatpush.bf16.msrb.mxu3 %v2310_v60  ;;  %v2094_v27 = vor.u32 %v2447_v41, %v2091_v42  ;;  %v1230_v58 = vadd.f32 %v1229_v56, %v214_v20  ;;  %v2142_v60 = vor.u32 %v2459_v49, %v2139_v51  ;;  %v2123_v42 = vld [vmem:[%s3751_s1 + $0x488] sm:$0xf0] }
  0xa8   :  { %1481 = vmatpush.bf16.msrb.mxu0 %v2110_v2  ;;  %v1255_v1 = vpop.f32.mrf.mxu2  ;;  %v2270_v2 = vor.u32 %v2491_v54, %v2267_v55 }
  0xa9   :  { %1494 = vmatpush.bf16.msrb.mxu1 %v2174_v3  ;;  %v2131_v3 = vld [vmem:[%s3751_s1 + $0x498] sm:$0xf0]  ;;  %v1243_v8 = vadd.f32 %v1242_v59, %v1230_v58  ;;  %v1268_v9 = vpop.f32.mrf.mxu3 }
  0xaa   :  { %1507 = vmatpush.bf16.msrb.mxu2 %v2238_v5  ;;  %v2473_v5 = vld [vmem:[%s3751_s1 + $0x514] sm:$0xf]  ;;  %v2134_v38 = vor.u32 %v2457_v0, %v2131_v3 }
  0xab   :  { %1520 = vmatpush.bf16.msrb.mxu3 %v2302_v10  ;;  %v2489_v10 = vld [vmem:[%s3751_s1 + $0x594] sm:$0xf]  ;;  %v1256_v13 = vadd.f32 %v1255_v1, %v1243_v8  ;;  %v2198_v14 = vor.u32 %v2473_v5, %v2195_v7  ;;  %v215_v1 = vperm.slane %v3653_v36, 1 }
  0xac   :  { %1482 = vmatpush.bf16.msrb.mxu0 %v2102_v15  ;;  %v2439_v15 = vld [vmem:[%s3751_s1 + $0x404] sm:$0xf]  ;;  %v2262_v41 = vor.u32 %v2489_v10, %v2259_v11 }
  0xad   :  { %1495 = vmatpush.bf16.msrb.mxu1 %v2166_v16  ;;  %v2059_v16 = vld [vmem:[%s3751_s1 + $0x408] sm:$0xf0]  ;;  %v1269_v44 = vadd.f32 %v1268_v9, %v1256_v13 }
  0xae   :  { %1508 = vmatpush.bf16.msrb.mxu2 %v2230_v17  ;;  %v2455_v17 = vld [vmem:[%s3751_s1 + $0x484] sm:$0xf]  ;;  %v1231_v24 = vpop.f32.mrf.mxu0  ;;  %v2062_v26 = vor.u32 %v2439_v15, %v2059_v16 }
  0xaf   :  { %1521 = vmatpush.bf16.msrb.mxu3 %v2294_v19  ;;  %v2187_v19 = vld [vmem:[%s3751_s1 + $0x508] sm:$0xf0]  ;;  %v2126_v28 = vor.u32 %v2455_v17, %v2123_v42 }
  0xb0   :  { %1483 = vmatpush.bf16.msrb.mxu0 %v2094_v27  ;;  %v1244_v27 = vpop.f32.mrf.mxu1 }
  0xb1   :  { %1496 = vmatpush.bf16.msrb.mxu1 %v2158_v31  ;;  %v2190_v31 = vor.u32 %v2471_v18, %v2187_v19  ;;  %v1270_v35 = vpop.f32.mrf.mxu3 }
  0xb2   :  { %1509 = vmatpush.bf16.msrb.mxu2 %v2222_v32  ;;  %v1257_v32 = vpop.f32.mrf.mxu2 }
  0xb3   :  { %1522 = vmatpush.bf16.msrb.mxu3 %v2286_v37 }
  0xb4   :  { %1484 = vmatpush.bf16.msrb.mxu0 %v2086_v6 }
  0xb5   :  { %1497 = vmatpush.bf16.msrb.mxu1 %v2150_v21 }
  0xb6   :  { %1510 = vmatpush.bf16.msrb.mxu2 %v2214_v46 }
  0xb7   :  { %1523 = vmatpush.bf16.msrb.mxu3 %v2278_v50 }
  0xb8   :  { %1485 = vmatpush.bf16.msrb.mxu0 %v2078_v57 }
  0xb9   :  { %1498 = vmatpush.bf16.msrb.mxu1 %v2142_v60 }
  0xba   :  { %1511 = vmatpush.bf16.msrb.mxu2 %v2206_v61 }
  0xbb   :  { %1524 = vmatpush.bf16.msrb.mxu3 %v2270_v2 }
  0xbc   :  { %1486 = vmatpush.bf16.msrb.mxu0 %v2070_v12 }
  0xbd   :  { %1499 = vmatpush.bf16.msrb.mxu1 %v2134_v38 }
  0xbe   :  { %1512 = vmatpush.bf16.msrb.mxu2 %v2198_v14 }
  0xbf   :  { %1525 = vmatpush.bf16.msrb.mxu3 %v2262_v41 }
  0xc0   :  { %1487 = vmatpush.bf16.msrb.mxu0 %v2062_v26  ;;  %v1281_v37 = vpop.f32.mrf.mxu0 }
  0xc1   :  { %1500 = vmatpush.bf16.msrb.mxu1 %v2126_v28  ;;  %v1282_v39 = vadd.f32 %v1281_v37, %v1269_v44  ;;  %v1294_v40 = vpop.f32.mrf.mxu1 }
  0xc2   :  { %1513 = vmatpush.bf16.msrb.mxu2 %v2190_v31 }
  0xc3   :  { %1526 = vmatpush.bf16.msrb.mxu3 %v2254_v34  ;;  %1488 = vmatmul.bf16.vlgmr.msrb.gmra.mxu0 %v3174_v25  ;;  %v1295_v4 = vadd.f32 %v1294_v40, %v1282_v39 }
  0xc4   :  { %1501 = vmatmul.bf16.vlgmr.msrb.gmra.mxu1 %v3187_v30 }
  0xc5   :  { %1514 = vmatmul.bf16.vlgmr.msrb.gmra.mxu2 %v3185_v29 }
  0xc6   :  { %1527 = vmatmul.bf16.vlgmr.msrb.gmra.mxu3 %v3195_v33 }
  0xc8   :  { %v1307_v43 = vpop.f32.mrf.mxu2  ;;  %v1283_v21 = vpop.f32.mrf.mxu0 }
  0xc9   :  { %v1308_v45 = vadd.f32 %v1307_v43, %v1295_v4  ;;  %v1320_v6 = vpop.f32.mrf.mxu3  ;;  %v1296_v46 = vpop.f32.mrf.mxu1 }
  0xcb   :  { %v1321_v20 = vadd.f32 %v1320_v6, %v1308_v45 }
  0xd0   :  { %v1309_v47 = vpop.f32.mrf.mxu2 }
  0xd1   :  { %v1322_v48 = vpop.f32.mrf.mxu3 }
  0xe0   :  { %v1333_v49 = vpop.f32.mrf.mxu0 }
  0xe1   :  { %v1334_v25 = vadd.f32 %v1333_v49, %v1321_v20  ;;  %v1346_v50 = vpop.f32.mrf.mxu1 }
  0xe3   :  { %v1347_v30 = vadd.f32 %v1346_v50, %v1334_v25 }
  0xe8   :  { %v1359_v51 = vpop.f32.mrf.mxu2  ;;  %v1335_v33 = vpop.f32.mrf.mxu0 }
  0xe9   :  { %v1360_v29 = vadd.f32 %v1359_v51, %v1347_v30  ;;  %v1372_v52 = vpop.f32.mrf.mxu3  ;;  %v1348_v53 = vpop.f32.mrf.mxu1 }
  0xeb   :  { %v1373_v54 = vadd.f32 %v1372_v52, %v1360_v29 }
  0xed   :  { %v1532_v28 = vmax.f32 %v1373_v54, 0.0 }
  0xf0   :  { %v1361_v55 = vpop.f32.mrf.mxu2 }
  0xf1   :  { %v1374_v56 = vpop.f32.mrf.mxu3 }
 0x100   :  { %v1385_v57 = vpop.f32.mrf.mxu0 }
 0x101   :  { %v1398_v58 = vpop.f32.mrf.mxu1  ;;  %v1386_v2 = vadd.f32 %v1385_v57, %v215_v1 }
 0x103   :  { %v1399_v7 = vadd.f32 %v1398_v58, %v1386_v2 }
 0x108   :  { %v1411_v59 = vpop.f32.mrf.mxu2  ;;  %v1387_v61 = vpop.f32.mrf.mxu0 }
 0x109   :  { %v1424_v60 = vpop.f32.mrf.mxu3  ;;  %v1400_v62 = vpop.f32.mrf.mxu1  ;;  %v1412_v10 = vadd.f32 %v1411_v59, %v1399_v7 }
 0x10b   :  { %v1425_v13 = vadd.f32 %v1424_v60, %v1412_v10 }
 0x110   :  { %v1413_v63 = vpop.f32.mrf.mxu2 }
 0x111   :  { %v1426_v0 = vpop.f32.mrf.mxu3 }
 0x120   :  { %v1437_v3 = vpop.f32.mrf.mxu0 }
 0x121   :  { %v1450_v5 = vpop.f32.mrf.mxu1  ;;  %v1438_v15 = vadd.f32 %v1437_v3, %v1425_v13 }
 0x123   :  { %v1451_v16 = vadd.f32 %v1450_v5, %v1438_v15 }
 0x128   :  { %v1463_v8 = vpop.f32.mrf.mxu2  ;;  %v1439_v11 = vpop.f32.mrf.mxu0 }
 0x129   :  { %v1476_v9 = vpop.f32.mrf.mxu3  ;;  %v1452_v12 = vpop.f32.mrf.mxu1  ;;  %v1464_v17 = vadd.f32 %v1463_v8, %v1451_v16 }
 0x12b   :  { %v1477_v41 = vadd.f32 %v1476_v9, %v1464_v17 }
 0x130   :  { %v1465_v38 = vpop.f32.mrf.mxu2 }
 0x131   :  { %v1478_v14 = vpop.f32.mrf.mxu3 }
 0x140   :  { %v1489_v42 = vpop.f32.mrf.mxu0 }
 0x141   :  { %v1502_v18 = vpop.f32.mrf.mxu1  ;;  %v1490_v19 = vadd.f32 %v1489_v42, %v1477_v41 }
 0x143   :  { %v1503_v36 = vadd.f32 %v1502_v18, %v1490_v19 }
 0x148   :  { %v1515_v44 = vpop.f32.mrf.mxu2  ;;  %v1491_v24 = vpop.f32.mrf.mxu0 }
 0x149   :  { %v1516_v22 = vadd.f32 %v1515_v44, %v1503_v36  ;;  %v1528_v23 = vpop.f32.mrf.mxu3  ;;  %v1504_v26 = vpop.f32.mrf.mxu1 }
 0x14b   :  { %v1529_v27 = vadd.f32 %v1528_v23, %v1516_v22 }
 0x14d   :  { %v1533_v31 = vmax.f32 %v1529_v27, 0.0 }
 0x14f   :  { %v1534_v32 = vpack.c.bf16 %v1533_v31, %v1532_v28 }
 0x150   :  { %v1517_v34 = vpop.f32.mrf.mxu2 }
 0x151   :  { %1538 = vst.msk [vmem:[%s3754_s3] sm:$0x77] %vm1537_vm2, %v1534_v32  ;;  %v1530_v35 = vpop.f32.mrf.mxu3 }

// kernel: dqn_forward.6
= control target key start
LH: loop header
LB: loop body
LE: loop exit
PB: predicated region body
PF: predicated region fallthrough
CT: control target
= control target key end

     0   :  { %vm319_vm0 = vcmask 523264   ;;  %vm389_vm1 = vcmask 516096   ;;  %s714_s1 = inlined_call_operand.vmem [shape: bf16[576,64], index: 1, kind: input, shape index: {}]   ;;  %s715_s0 = inlined_call_operand.vmem [shape: bf16[2,576], index: 0, kind: input, shape index: {}]   ;;  %s716_s2 = inlined_call_operand.vmem [shape: f32[1,64], index: 2, kind: input, shape index: {}]   ;;  %s717_s3 = inlined_call_operand.vmem [shape: bf16[2,64], index: 3, kind: output, shape index: {}]  }
   0x1   :  { %v547_v0 = vld [vmem:[%s714_s1 + $0x38] sm:$0xff]  ;;  %v546_v4 = vld [vmem:[%s714_s1 + $0x30] sm:$0xff]  ;;  %v545_v8 = vld [vmem:[%s714_s1 + $0x28] sm:$0xff] }
   0x2   :  { %v563_v1 = vld [vmem:[%s714_s1 + $0xb8] sm:$0xff]  ;;  %322 = vmatpush.bf16.msra.mxu0 %v547_v0  ;;  %v562_v5 = vld [vmem:[%s714_s1 + $0xb0] sm:$0xff]  ;;  %v561_v9 = vld [vmem:[%s714_s1 + $0xa8] sm:$0xff] }
   0x3   :  { %v571_v2 = vld [vmem:[%s714_s1 + $0xf8] sm:$0xff]  ;;  %348 = vmatpush.bf16.msra.mxu2 %v563_v1  ;;  %v570_v6 = vld [vmem:[%s714_s1 + $0xf0] sm:$0xff]  ;;  %v569_v10 = vld [vmem:[%s714_s1 + $0xe8] sm:$0xff] }
   0x4   :  { %v555_v3 = vld [vmem:[%s714_s1 + $0x78] sm:$0xff]  ;;  %361 = vmatpush.bf16.msra.mxu3 %v571_v2  ;;  %v554_v7 = vld [vmem:[%s714_s1 + $0x70] sm:$0xff]  ;;  %v553_v11 = vld [vmem:[%s714_s1 + $0x68] sm:$0xff] }
   0x5   :  { %335 = vmatpush.bf16.msra.mxu1 %v555_v3  ;;  %v544_v12 = vld [vmem:[%s714_s1 + $0x20] sm:$0xff]  ;;  %v543_v17 = vld [vmem:[%s714_s1 + $0x18] sm:$0xff]  ;;  %v542_v21 = vld [vmem:[%s714_s1 + $0x10] sm:$0xff] }
   0x6   :  { %323 = vmatpush.bf16.msra.mxu0 %v546_v4  ;;  %v560_v13 = vld [vmem:[%s714_s1 + $0xa0] sm:$0xff]  ;;  %v559_v18 = vld [vmem:[%s714_s1 + $0x98] sm:$0xff]  ;;  %v558_v22 = vld [vmem:[%s714_s1 + $0x90] sm:$0xff] }
   0x7   :  { %349 = vmatpush.bf16.msra.mxu2 %v562_v5  ;;  %v15_v14 = vld [vmem:[%s715_s0] sm:$0x1f]  ;;  %v567_v19 = vld [vmem:[%s714_s1 + $0xd8] sm:$0xff]  ;;  %v566_v23 = vld [vmem:[%s714_s1 + $0xd0] sm:$0xff] }
   0x8   :  { %362 = vmatpush.bf16.msra.mxu3 %v570_v6  ;;  %v568_v15 = vld [vmem:[%s714_s1 + $0xe0] sm:$0xff]  ;;  %93 = vst [vmem:[#allocation1] ss:$9 sm:$0xff] %v15_v14  ;;  %v551_v20 = vld [vmem:[%s714_s1 + $0x58] sm:$0xff]  ;;  %v550_v24 = vld [vmem:[%s714_s1 + $0x50] sm:$0xff] }
   0x9   :  { %336 = vmatpush.bf16.msra.mxu1 %v554_v7  ;;  %v552_v16 = vld [vmem:[%s714_s1 + $0x60] sm:$0xff]  ;;  %v541_v25 = vld [vmem:[%s714_s1 + $0x8] sm:$0xff]  ;;  %v575_v33 = vld [vmem:[%s714_s1 + $0x118] sm:$0xff] }
   0xa   :  { %324 = vmatpush.bf16.msra.mxu0 %v545_v8  ;;  %v557_v26 = vld [vmem:[%s714_s1 + $0x88] sm:$0xff]  ;;  %v540_v29 = vld [vmem:[%s714_s1] sm:$0xff]  ;;  %v574_v38 = vld [vmem:[%s714_s1 + $0x110] sm:$0xff] }
   0xb   :  { %350 = vmatpush.bf16.msra.mxu2 %v561_v9  ;;  %v565_v27 = vld [vmem:[%s714_s1 + $0xc8] sm:$0xff]  ;;  %v556_v30 = vld [vmem:[%s714_s1 + $0x80] sm:$0xff] }
   0xc   :  { %363 = vmatpush.bf16.msra.mxu3 %v569_v10  ;;  %v549_v28 = vld [vmem:[%s714_s1 + $0x48] sm:$0xff]  ;;  %v564_v31 = vld [vmem:[%s714_s1 + $0xc0] sm:$0xff] }
   0xd   :  { %337 = vmatpush.bf16.msra.mxu1 %v553_v11  ;;  %v548_v32 = vld [vmem:[%s714_s1 + $0x40] sm:$0xff]  ;;  %v573_v39 = vld [vmem:[%s714_s1 + $0x108] sm:$0xff] }
   0xe   :  { %325 = vmatpush.bf16.msra.mxu0 %v544_v12  ;;  %v572_v40 = vld [vmem:[%s714_s1 + $0x100] sm:$0xff] }
   0xf   :  { %351 = vmatpush.bf16.msra.mxu2 %v560_v13  ;;  %v94_v34 = vld [vmem:[#allocation1] sm:$0xff]  ;;  %v96_v35 = vld [vmem:[#allocation1 + $0x12] sm:$0xff]  ;;  %v95_v37 = vld [vmem:[#allocation1 + $0x9] sm:$0xff] }
  0x10   :  { %364 = vmatpush.bf16.msra.mxu3 %v568_v15  ;;  %v97_v36 = vld [vmem:[#allocation1 + $0x1b] sm:$0xff]  ;;  %v98_v41 = vld [vmem:[#allocation1 + $0x24] sm:$0xff] }
  0x11   :  { %338 = vmatpush.bf16.msra.mxu1 %v552_v16  ;;  %v576_v43 = vld [vmem:[%s716_s2] ss:$0 sm:$0xff] }
  0x12   :  { %326 = vmatpush.bf16.msra.mxu0 %v543_v17 }
  0x13   :  { %352 = vmatpush.bf16.msra.mxu2 %v559_v18 }
  0x14   :  { %365 = vmatpush.bf16.msra.mxu3 %v567_v19 }
  0x15   :  { %339 = vmatpush.bf16.msra.mxu1 %v551_v20 }
  0x16   :  { %327 = vmatpush.bf16.msra.mxu0 %v542_v21 }
  0x17   :  { %353 = vmatpush.bf16.msra.mxu2 %v558_v22 }
  0x18   :  { %366 = vmatpush.bf16.msra.mxu3 %v566_v23 }
  0x19   :  { %340 = vmatpush.bf16.msra.mxu1 %v550_v24 }
  0x1a   :  { %328 = vmatpush.bf16.msra.mxu0 %v541_v25 }
  0x1b   :  { %354 = vmatpush.bf16.msra.mxu2 %v557_v26 }
  0x1c   :  { %367 = vmatpush.bf16.msra.mxu3 %v565_v27 }
  0x1d   :  { %341 = vmatpush.bf16.msra.mxu1 %v549_v28 }
  0x1e   :  { %329 = vmatpush.bf16.msra.mxu0 %v540_v29 }
  0x1f   :  { %355 = vmatpush.bf16.msra.mxu2 %v556_v30 }
  0x20   :  { %368 = vmatpush.bf16.msra.mxu3 %v564_v31 }
  0x21   :  { %342 = vmatpush.bf16.msra.mxu1 %v548_v32  ;;  %330 = vmatmul.bf16.vlgmr.msra.gmra.mxu0 %v94_v34 }
  0x22   :  { %378 = vmatpush.bf16.msrb.mxu0 %v575_v33  ;;  %356 = vmatmul.bf16.vlgmr.msra.gmra.mxu2 %v96_v35 }
  0x23   :  { %369 = vmatmul.bf16.vlgmr.msra.gmra.mxu3 %v97_v36 }
  0x24   :  { %343 = vmatmul.bf16.vlgmr.msra.gmra.mxu1 %v95_v37 }
  0x26   :  { %379 = vmatpush.bf16.msrb.mxu0 %v574_v38 }
  0x2a   :  { %380 = vmatpush.bf16.msrb.mxu0 %v573_v39 }
  0x2e   :  { %381 = vmatpush.bf16.msrb.mxu0 %v572_v40 }
  0x31   :  { %539 = vmatmul.msk.bf16.vlgmr.msrb.gmra.mxu0 %vm319_vm0, %v98_v41 }
  0x9e   :  { %v331_v42 = vpop.f32.mrf.mxu0 }
  0x9f   :  { %v332_v45 = vadd.f32 %v576_v43, %v331_v42 }
  0xa1   :  { %v344_v44 = vpop.f32.mrf.mxu1 }
  0xa2   :  { %v345_v49 = vadd.f32 %v344_v44, %v332_v45 }
  0xa5   :  { %v357_v46 = vpop.f32.mrf.mxu2 }
  0xa6   :  { %v370_v47 = vpop.f32.mrf.mxu3  ;;  %v333_v48 = vpop.f32.mrf.mxu0  ;;  %v358_v51 = vadd.f32 %v357_v46, %v345_v49 }
  0xa8   :  { %v371_v53 = vadd.f32 %v370_v47, %v358_v51 }
  0xa9   :  { %v346_v50 = vpop.f32.mrf.mxu1 }
  0xad   :  { %v359_v52 = vpop.f32.mrf.mxu2 }
  0xae   :  { %v372_v54 = vpop.f32.mrf.mxu3  ;;  %v383_v55 = vpop.f32.mrf.mxu0 }
  0xaf   :  { %v384_v56 = vadd.f32 %v383_v55, %v371_v53 }
  0xb1   :  { %v387_v57 = vmax.f32 %v384_v56, 0.0 }
  0xb3   :  { %v388_v58 = vpack.c.bf16 %v387_v57, %v387_v57 }
  0xb5   :  { %390 = vst.msk [vmem:[%s717_s3] sm:$0x1] %vm389_vm1, %v388_v58 }
  0xb6   :  { %v385_v59 = vpop.f32.mrf.mxu0 }

// kernel: dqn_forward.7
= control target key start
LH: loop header
LB: loop body
LE: loop exit
PB: predicated region body
PF: predicated region fallthrough
CT: control target
= control target key end

     0   :  { %vm135_vm0 = vcmask 523264   ;;  %s3522_s0 = inlined_call_operand.vmem [shape: bf16[2,64], index: 0, kind: input, shape index: {}]   ;;  %s3523_s1 = inlined_call_operand.vmem [shape: bf16[64,512], index: 1, kind: input, shape index: {}]   ;;  %s3524_s2 = inlined_call_operand.vmem [shape: f32[1,512], index: 2, kind: input, shape index: {}]   ;;  %s3525_s3 = inlined_call_operand.vmem [shape: bf16[512,512], index: 3, kind: input, shape index: {}]   ;;  %s3526_s4 = inlined_call_operand.vmem [shape: f32[1,512], index: 4, kind: input, shape index: {}]   ;;  %s3527_s5 = inlined_call_operand.vmem [shape: bf16[512,7], index: 5, kind: input, shape index: {}]   ;;  %s3528_s6 = inlined_call_operand.vmem [shape: f32[1,7], index: 6, kind: input, shape index: {}]   ;;  %s3529_s7 = inlined_call_operand.hbm [shape: f32[2,6], index: 7, kind: output, shape index: {}]  }
   0x1   :  { %v1598_v0 = vld [vmem:[%s3523_s1 + $0x60] sm:$0xf]  ;;  %v2270_v1 = vld [vmem:[%s3523_s1 + $0x6c] sm:$0xf0]  ;;  %v2268_v2 = vld [vmem:[%s3523_s1 + $0x64] sm:$0xf] }
   0x2   :  { %v1599_v3 = vor.u32 %v2270_v1, %v1598_v0  ;;  %v1600_v4 = vld [vmem:[%s3523_s1 + $0x70] sm:$0xf0]  ;;  %v1606_v5 = vld [vmem:[%s3523_s1 + $0x68] sm:$0xf]  ;;  %v2271_v6 = vld [vmem:[%s3523_s1 + $0x74] sm:$0xf0] }
   0x3   :  { %v1603_v7 = vor.u32 %v2268_v2, %v1600_v4  ;;  %v1607_v8 = vor.u32 %v2271_v6, %v1606_v5  ;;  %v2269_v9 = vld [vmem:[%s3523_s1 + $0x6c] sm:$0xf]  ;;  %v1608_v10 = vld [vmem:[%s3523_s1 + $0x78] sm:$0xf0]  ;;  %v1582_v11 = vld [vmem:[%s3523_s1 + $0x40] sm:$0xf] }
   0x4   :  { %143 = vmatpush.bf16.msra.mxu0 %v1599_v3  ;;  %v1611_v12 = vor.u32 %v2269_v9, %v1608_v10  ;;  %v2266_v13 = vld [vmem:[%s3523_s1 + $0x4c] sm:$0xf0]  ;;  %v2264_v14 = vld [vmem:[%s3523_s1 + $0x44] sm:$0xf]  ;;  %v1584_v15 = vld [vmem:[%s3523_s1 + $0x50] sm:$0xf0] }
   0x5   :  { %156 = vmatpush.bf16.msra.mxu1 %v1603_v7  ;;  %169 = vmatpush.bf16.msra.mxu2 %v1607_v8  ;;  %v1583_v16 = vor.u32 %v2266_v13, %v1582_v11  ;;  %v1587_v17 = vor.u32 %v2264_v14, %v1584_v15  ;;  %v1590_v18 = vld [vmem:[%s3523_s1 + $0x48] sm:$0xf]  ;;  %v2267_v19 = vld [vmem:[%s3523_s1 + $0x54] sm:$0xf0]  ;;  %v2265_v20 = vld [vmem:[%s3523_s1 + $0x4c] sm:$0xf] }
   0x6   :  { %182 = vmatpush.bf16.msra.mxu3 %v1611_v12  ;;  %v1591_v21 = vor.u32 %v2267_v19, %v1590_v18  ;;  %v1592_v22 = vld [vmem:[%s3523_s1 + $0x58] sm:$0xf0]  ;;  %v1566_v23 = vld [vmem:[%s3523_s1 + $0x20] sm:$0xf]  ;;  %v2262_v24 = vld [vmem:[%s3523_s1 + $0x2c] sm:$0xf0] }
   0x7   :  { %v1595_v25 = vor.u32 %v2265_v20, %v1592_v22  ;;  %v2260_v26 = vld [vmem:[%s3523_s1 + $0x24] sm:$0xf]  ;;  %v1568_v27 = vld [vmem:[%s3523_s1 + $0x30] sm:$0xf0]  ;;  %v1574_v28 = vld [vmem:[%s3523_s1 + $0x28] sm:$0xf]  ;;  %v1567_v29 = vor.u32 %v2262_v24, %v1566_v23 }
   0x8   :  { %144 = vmatpush.bf16.msra.mxu0 %v1583_v16  ;;  %v2263_v30 = vld [vmem:[%s3523_s1 + $0x34] sm:$0xf0]  ;;  %v2261_v31 = vld [vmem:[%s3523_s1 + $0x2c] sm:$0xf]  ;;  %v1576_v32 = vld [vmem:[%s3523_s1 + $0x38] sm:$0xf0]  ;;  %v1571_v33 = vor.u32 %v2260_v26, %v1568_v27 }
   0x9   :  { %157 = vmatpush.bf16.msra.mxu1 %v1587_v17  ;;  %170 = vmatpush.bf16.msra.mxu2 %v1591_v21  ;;  %v1575_v34 = vor.u32 %v2263_v30, %v1574_v28  ;;  %v1550_v35 = vld [vmem:[%s3523_s1] sm:$0xf]  ;;  %v2258_v36 = vld [vmem:[%s3523_s1 + $0xc] sm:$0xf0]  ;;  %v2256_v37 = vld [vmem:[%s3523_s1 + $0x4] sm:$0xf]  ;;  %v1579_v38 = vor.u32 %v2261_v31, %v1576_v32 }
   0xa   :  { %183 = vmatpush.bf16.msra.mxu3 %v1595_v25  ;;  %v1552_v39 = vld [vmem:[%s3523_s1 + $0x10] sm:$0xf0]  ;;  %v1558_v40 = vld [vmem:[%s3523_s1 + $0x8] sm:$0xf]  ;;  %v2259_v41 = vld [vmem:[%s3523_s1 + $0x14] sm:$0xf0]  ;;  %v1551_v44 = vor.u32 %v2258_v36, %v1550_v35 }
   0xb   :  { %v2257_v42 = vld [vmem:[%s3523_s1 + $0xc] sm:$0xf]  ;;  %v1560_v43 = vld [vmem:[%s3523_s1 + $0x18] sm:$0xf0]  ;;  %v1730_v45 = vld [vmem:[%s3525_s3 + $0xe0] sm:$0xf]  ;;  %v1555_v47 = vor.u32 %v2256_v37, %v1552_v39  ;;  %v1559_v48 = vor.u32 %v2259_v41, %v1558_v40 }
   0xc   :  { %145 = vmatpush.bf16.msra.mxu0 %v1567_v29  ;;  %v2302_v46 = vld [vmem:[%s3525_s3 + $0xec] sm:$0xf0]  ;;  %v1858_v49 = vld [vmem:[%s3525_s3 + $0x1e0] sm:$0xf]  ;;  %v1563_v51 = vor.u32 %v2257_v42, %v1560_v43 }
   0xd   :  { %158 = vmatpush.bf16.msra.mxu1 %v1571_v33  ;;  %171 = vmatpush.bf16.msra.mxu2 %v1575_v34  ;;  %v2334_v50 = vld [vmem:[%s3525_s3 + $0x1ec] sm:$0xf0]  ;;  %v28_v52 = vld [vmem:[%s3522_s0] sm:$0x1]  ;;  %v1731_v53 = vor.u32 %v2302_v46, %v1730_v45 }
   0xe   :  { %184 = vmatpush.bf16.msra.mxu3 %v1579_v38  ;;  %v1714_v54 = vld [vmem:[%s3525_s3 + $0xc0] sm:$0xf]  ;;  %v2298_v55 = vld [vmem:[%s3525_s3 + $0xcc] sm:$0xf0]  ;;  %v1859_v56 = vor.u32 %v2334_v50, %v1858_v49 }
   0xf   :  { %v1986_v57 = vld [vmem:[%s3525_s3 + $0x2e0] sm:$0xf]  ;;  %v2366_v58 = vld [vmem:[%s3525_s3 + $0x2ec] sm:$0xf0]  ;;  %v1715_v0 = vor.u32 %v2298_v55, %v1714_v54 }
  0x10   :  { %v2114_v59 = vld [vmem:[%s3525_s3 + $0x3e0] sm:$0xf]  ;;  %146 = vmatpush.bf16.msra.mxu0 %v1551_v44  ;;  %v2330_v61 = vld [vmem:[%s3525_s3 + $0x1cc] sm:$0xf0]  ;;  %v1987_v63 = vor.u32 %v2366_v58, %v1986_v57 }
  0x11   :  { %v1842_v60 = vld [vmem:[%s3525_s3 + $0x1c0] sm:$0xf]  ;;  %v2398_v62 = vld [vmem:[%s3525_s3 + $0x3ec] sm:$0xf0]  ;;  %159 = vmatpush.bf16.msra.mxu1 %v1555_v47  ;;  %172 = vmatpush.bf16.msra.mxu2 %v1559_v48 }
  0x12   :  { %185 = vmatpush.bf16.msra.mxu3 %v1563_v51  ;;  %v2115_v1 = vor.u32 %v2398_v62, %v2114_v59  ;;  %v1698_v2 = vld [vmem:[%s3525_s3 + $0xa0] sm:$0xf]  ;;  %v2362_v4 = vld [vmem:[%s3525_s3 + $0x2cc] sm:$0xf0]  ;;  %v1843_v5 = vor.u32 %v2330_v61, %v1842_v60 }
  0x13   :  { %v1970_v3 = vld [vmem:[%s3525_s3 + $0x2c0] sm:$0xf]  ;;  %1612 = vmatmul.msk.bf16.vlgmr.msra.gmra.mxu0 %vm135_vm0, %v28_v52  ;;  %v2294_v6 = vld [vmem:[%s3525_s3 + $0xac] sm:$0xf0] }
  0x14   :  { %977 = vmatpush.bf16.msrb.mxu0 %v1731_v53  ;;  %v2098_v7 = vld [vmem:[%s3525_s3 + $0x3c0] sm:$0xf]  ;;  %v2394_v8 = vld [vmem:[%s3525_s3 + $0x3cc] sm:$0xf0]  ;;  %1613 = vmatmul.msk.bf16.vlgmr.msra.gmra.mxu1 %vm135_vm0, %v28_v52  ;;  %v1971_v11 = vor.u32 %v2362_v4, %v1970_v3  ;;  %v1699_v12 = vor.u32 %v2294_v6, %v1698_v2 }
  0x15   :  { %990 = vmatpush.bf16.msrb.mxu1 %v1859_v56  ;;  %1614 = vmatmul.msk.bf16.vlgmr.msra.gmra.mxu2 %vm135_vm0, %v28_v52  ;;  %v1826_v9 = vld [vmem:[%s3525_s3 + $0x1a0] sm:$0xf]  ;;  %v2326_v10 = vld [vmem:[%s3525_s3 + $0x1ac] sm:$0xf0]  ;;  %v2099_v13 = vor.u32 %v2394_v8, %v2098_v7  ;;  %v2300_v7 = vld [vmem:[%s3525_s3 + $0xe4] sm:$0xf] }
  0x16   :  { %1615 = vmatmul.msk.bf16.vlgmr.msra.gmra.mxu3 %vm135_vm0, %v28_v52  ;;  %1003 = vmatpush.bf16.msrb.mxu2 %v1987_v63  ;;  %v1682_v14 = vld [vmem:[%s3525_s3 + $0x80] sm:$0xf]  ;;  %v2358_v16 = vld [vmem:[%s3525_s3 + $0x2ac] sm:$0xf0]  ;;  %v1827_v17 = vor.u32 %v2326_v10, %v1826_v9  ;;  %v1732_v8 = vld [vmem:[%s3525_s3 + $0xf0] sm:$0xf0] }
  0x17   :  { %1016 = vmatpush.bf16.msrb.mxu3 %v2115_v1  ;;  %v1954_v15 = vld [vmem:[%s3525_s3 + $0x2a0] sm:$0xf]  ;;  %v2290_v18 = vld [vmem:[%s3525_s3 + $0x8c] sm:$0xf0]  ;;  %v2332_v9 = vld [vmem:[%s3525_s3 + $0x1e4] sm:$0xf] }
  0x18   :  { %978 = vmatpush.bf16.msrb.mxu0 %v1715_v0  ;;  %v2082_v19 = vld [vmem:[%s3525_s3 + $0x3a0] sm:$0xf]  ;;  %v2390_v20 = vld [vmem:[%s3525_s3 + $0x3ac] sm:$0xf0]  ;;  %v1955_v23 = vor.u32 %v2358_v16, %v1954_v15  ;;  %v1683_v24 = vor.u32 %v2290_v18, %v1682_v14  ;;  %v1860_v10 = vld [vmem:[%s3525_s3 + $0x1f0] sm:$0xf0] }
  0x19   :  { %991 = vmatpush.bf16.msrb.mxu1 %v1843_v5  ;;  %v1810_v21 = vld [vmem:[%s3525_s3 + $0x180] sm:$0xf]  ;;  %v2322_v22 = vld [vmem:[%s3525_s3 + $0x18c] sm:$0xf0]  ;;  %v2083_v25 = vor.u32 %v2390_v20, %v2082_v19  ;;  %v2296_v14 = vld [vmem:[%s3525_s3 + $0xc4] sm:$0xf]  ;;  %v1735_v19 = vor.u32 %v2300_v7, %v1732_v8 }
  0x1a   :  { %1004 = vmatpush.bf16.msrb.mxu2 %v1971_v11  ;;  %v1666_v26 = vld [vmem:[%s3525_s3 + $0x60] sm:$0xf]  ;;  %v2354_v28 = vld [vmem:[%s3525_s3 + $0x28c] sm:$0xf0]  ;;  %v1811_v29 = vor.u32 %v2322_v22, %v1810_v21  ;;  %v2364_v21 = vld [vmem:[%s3525_s3 + $0x2e4] sm:$0xf] }
  0x1b   :  { %1017 = vmatpush.bf16.msrb.mxu3 %v2099_v13  ;;  %v1938_v27 = vld [vmem:[%s3525_s3 + $0x280] sm:$0xf]  ;;  %v2286_v30 = vld [vmem:[%s3525_s3 + $0x6c] sm:$0xf0]  ;;  %v1988_v22 = vld [vmem:[%s3525_s3 + $0x2f0] sm:$0xf0] }
  0x1c   :  { %979 = vmatpush.bf16.msrb.mxu0 %v1699_v12  ;;  %v2066_v31 = vld [vmem:[%s3525_s3 + $0x380] sm:$0xf]  ;;  %v2386_v32 = vld [vmem:[%s3525_s3 + $0x38c] sm:$0xf0]  ;;  %v1939_v35 = vor.u32 %v2354_v28, %v1938_v27  ;;  %v1667_v36 = vor.u32 %v2286_v30, %v1666_v26  ;;  %v2116_v26 = vld [vmem:[%s3525_s3 + $0x3f0] sm:$0xf0] }
  0x1d   :  { %992 = vmatpush.bf16.msrb.mxu1 %v1827_v17  ;;  %v1794_v33 = vld [vmem:[%s3525_s3 + $0x160] sm:$0xf]  ;;  %v2318_v34 = vld [vmem:[%s3525_s3 + $0x16c] sm:$0xf0]  ;;  %v2067_v37 = vor.u32 %v2386_v32, %v2066_v31  ;;  %v2328_v27 = vld [vmem:[%s3525_s3 + $0x1c4] sm:$0xf]  ;;  %v1991_v31 = vor.u32 %v2364_v21, %v1988_v22 }
  0x1e   :  { %1005 = vmatpush.bf16.msrb.mxu2 %v1955_v23  ;;  %v1650_v38 = vld [vmem:[%s3525_s3 + $0x40] sm:$0xf]  ;;  %v2350_v40 = vld [vmem:[%s3525_s3 + $0x26c] sm:$0xf0]  ;;  %v1795_v41 = vor.u32 %v2318_v34, %v1794_v33  ;;  %v1863_v23 = vor.u32 %v2332_v9, %v1860_v10  ;;  %v1844_v28 = vld [vmem:[%s3525_s3 + $0x1d0] sm:$0xf0] }
  0x1f   :  { %1018 = vmatpush.bf16.msrb.mxu3 %v2083_v25  ;;  %v1922_v39 = vld [vmem:[%s3525_s3 + $0x260] sm:$0xf]  ;;  %v2282_v42 = vld [vmem:[%s3525_s3 + $0x4c] sm:$0xf0]  ;;  %v2396_v25 = vld [vmem:[%s3525_s3 + $0x3e4] sm:$0xf] }
  0x20   :  { %980 = vmatpush.bf16.msrb.mxu0 %v1683_v24  ;;  %v2050_v43 = vld [vmem:[%s3525_s3 + $0x360] sm:$0xf]  ;;  %v2382_v44 = vld [vmem:[%s3525_s3 + $0x36c] sm:$0xf0]  ;;  %v1923_v47 = vor.u32 %v2350_v40, %v1922_v39  ;;  %v1651_v48 = vor.u32 %v2282_v42, %v1650_v38  ;;  %v1716_v24 = vld [vmem:[%s3525_s3 + $0xd0] sm:$0xf0] }
  0x21   :  { %993 = vmatpush.bf16.msrb.mxu1 %v1811_v29  ;;  %v1778_v45 = vld [vmem:[%s3525_s3 + $0x140] sm:$0xf]  ;;  %v2314_v46 = vld [vmem:[%s3525_s3 + $0x14c] sm:$0xf0]  ;;  %v2051_v49 = vor.u32 %v2382_v44, %v2050_v43  ;;  %v2292_v32 = vld [vmem:[%s3525_s3 + $0xa4] sm:$0xf]  ;;  %v1719_v34 = vor.u32 %v2296_v14, %v1716_v24 }
  0x22   :  { %1006 = vmatpush.bf16.msrb.mxu2 %v1939_v35  ;;  %v1634_v50 = vld [vmem:[%s3525_s3 + $0x20] sm:$0xf]  ;;  %v2346_v52 = vld [vmem:[%s3525_s3 + $0x24c] sm:$0xf0]  ;;  %v1779_v53 = vor.u32 %v2314_v46, %v1778_v45  ;;  %v2360_v33 = vld [vmem:[%s3525_s3 + $0x2c4] sm:$0xf]  ;;  %v2119_v35 = vor.u32 %v2396_v25, %v2116_v26 }
  0x23   :  { %1019 = vmatpush.bf16.msrb.mxu3 %v2067_v37  ;;  %v1906_v51 = vld [vmem:[%s3525_s3 + $0x240] sm:$0xf]  ;;  %v2278_v54 = vld [vmem:[%s3525_s3 + $0x2c] sm:$0xf0] }
  0x24   :  { %981 = vmatpush.bf16.msrb.mxu0 %v1667_v36  ;;  %v2034_v55 = vld [vmem:[%s3525_s3 + $0x340] sm:$0xf]  ;;  %v2378_v56 = vld [vmem:[%s3525_s3 + $0x34c] sm:$0xf0]  ;;  %v1907_v59 = vor.u32 %v2346_v52, %v1906_v51  ;;  %v1635_v61 = vor.u32 %v2278_v54, %v1634_v50  ;;  %v1972_v36 = vld [vmem:[%s3525_s3 + $0x2d0] sm:$0xf0] }
  0x25   :  { %994 = vmatpush.bf16.msrb.mxu1 %v1795_v41  ;;  %v1762_v57 = vld [vmem:[%s3525_s3 + $0x120] sm:$0xf]  ;;  %v2310_v58 = vld [vmem:[%s3525_s3 + $0x12c] sm:$0xf0]  ;;  %v2035_v62 = vor.u32 %v2378_v56, %v2034_v55 }
  0x26   :  { %1007 = vmatpush.bf16.msrb.mxu2 %v1923_v47  ;;  %v1618_v60 = vld [vmem:[%s3525_s3] sm:$0xf]  ;;  %v2274_v63 = vld [vmem:[%s3525_s3 + $0xc] sm:$0xf0]  ;;  %v1763_v2 = vor.u32 %v2310_v58, %v1762_v57 }
  0x27   :  { %1020 = vmatpush.bf16.msrb.mxu3 %v2051_v49  ;;  %v1890_v0 = vld [vmem:[%s3525_s3 + $0x220] sm:$0xf]  ;;  %v2342_v1 = vld [vmem:[%s3525_s3 + $0x22c] sm:$0xf0]  ;;  %v1619_v12 = vor.u32 %v2274_v63, %v1618_v60 }
  0x28   :  { %982 = vmatpush.bf16.msrb.mxu0 %v1651_v48  ;;  %v1746_v3 = vld [vmem:[%s3525_s3 + $0x100] sm:$0xf]  ;;  %v2374_v5 = vld [vmem:[%s3525_s3 + $0x32c] sm:$0xf0]  ;;  %v1891_v11 = vor.u32 %v2342_v1, %v1890_v0 }
  0x29   :  { %995 = vmatpush.bf16.msrb.mxu1 %v1779_v53  ;;  %v2018_v4 = vld [vmem:[%s3525_s3 + $0x320] sm:$0xf]  ;;  %v2306_v6 = vld [vmem:[%s3525_s3 + $0x10c] sm:$0xf0] }
  0x2a   :  { %1008 = vmatpush.bf16.msrb.mxu2 %v1907_v59  ;;  %v2019_v13 = vor.u32 %v2374_v5, %v2018_v4  ;;  %v1874_v15 = vld [vmem:[%s3525_s3 + $0x200] sm:$0xf]  ;;  %v2338_v16 = vld [vmem:[%s3525_s3 + $0x20c] sm:$0xf0]  ;;  %v1747_v18 = vor.u32 %v2306_v6, %v1746_v3 }
  0x2b   :  { %1021 = vmatpush.bf16.msrb.mxu3 %v2035_v62  ;;  %v2002_v17 = vld [vmem:[%s3525_s3 + $0x300] sm:$0xf]  ;;  %v2370_v20 = vld [vmem:[%s3525_s3 + $0x30c] sm:$0xf0]  ;;  %v1875_v29 = vor.u32 %v2338_v16, %v1874_v15 }
  0x2c   :  { %983 = vmatpush.bf16.msrb.mxu0 %v1635_v61  ;;  %v2003_v30 = vor.u32 %v2370_v20, %v2002_v17 }
  0x2d   :  { %996 = vmatpush.bf16.msrb.mxu1 %v1763_v2 }
  0x2e   :  { %1009 = vmatpush.bf16.msrb.mxu2 %v1891_v11 }
  0x2f   :  { %1022 = vmatpush.bf16.msrb.mxu3 %v2019_v13 }
  0x30   :  { %984 = vmatpush.bf16.msrb.mxu0 %v1619_v12 }
  0x31   :  { %997 = vmatpush.bf16.msrb.mxu1 %v1747_v18 }
  0x34   :  { %1029 = vmatpush.bf16.msra.mxu0 %v1735_v19 }
  0x35   :  { %12 = vsyncpa [#allocation3], 0  ;;  %1042 = vmatpush.bf16.msra.mxu1 %v1863_v23  ;;  %v1847_v37 = vor.u32 %v2328_v27, %v1844_v28  ;;  %v1700_v38 = vld [vmem:[%s3525_s3 + $0xb0] sm:$0xf0]  ;;  %v2392_v39 = vld [vmem:[%s3525_s3 + $0x3c4] sm:$0xf]  ;;  %1010 = vmatpush.bf16.msrb.mxu2 %v1875_v29  ;;  %v1975_v43 = vor.u32 %v2360_v33, %v1972_v36 }
  0x36   :  { %v2100_v40 = vld [vmem:[%s3525_s3 + $0x3d0] sm:$0xf0]  ;;  %v2324_v41 = vld [vmem:[%s3525_s3 + $0x1a4] sm:$0xf]  ;;  %1023 = vmatpush.bf16.msrb.mxu3 %v2003_v30  ;;  %v1703_v44 = vor.u32 %v2292_v32, %v1700_v38  ;;  %vm1509_vm1 = vcmask 41984   ;;  %s1539_s13 = sshll.u32 %s3529_s7, 4  ;;  %s1540_s13 = int_to_ptr.hbm [resolvable:$true] %s1539_s13 }
  0x37   :  { %v1828_v42 = vld [vmem:[%s3525_s3 + $0x1b0] sm:$0xf0]  ;;  %v2103_v45 = vor.u32 %v2392_v39, %v2100_v40  ;;  %v2288_v46 = vld [vmem:[%s3525_s3 + $0x84] sm:$0xf] }
  0x38   :  { %1030 = vmatpush.bf16.msra.mxu0 %v1719_v34  ;;  %v2356_v47 = vld [vmem:[%s3525_s3 + $0x2a4] sm:$0xf]  ;;  %v1956_v48 = vld [vmem:[%s3525_s3 + $0x2b0] sm:$0xf0]  ;;  %v1831_v49 = vor.u32 %v2324_v41, %v1828_v42 }
  0x39   :  { %1055 = vmatpush.bf16.msra.mxu2 %v1991_v31  ;;  %1043 = vmatpush.bf16.msra.mxu1 %v1847_v37  ;;  %v1684_v50 = vld [vmem:[%s3525_s3 + $0x90] sm:$0xf0]  ;;  %v2388_v51 = vld [vmem:[%s3525_s3 + $0x3a4] sm:$0xf]  ;;  %v1959_v55 = vor.u32 %v2356_v47, %v1956_v48 }
  0x3a   :  { %1068 = vmatpush.bf16.msra.mxu3 %v2119_v35  ;;  %v2084_v52 = vld [vmem:[%s3525_s3 + $0x3b0] sm:$0xf0]  ;;  %v2320_v53 = vld [vmem:[%s3525_s3 + $0x184] sm:$0xf]  ;;  %v1687_v56 = vor.u32 %v2288_v46, %v1684_v50 }
  0x3b   :  { %v1812_v54 = vld [vmem:[%s3525_s3 + $0x190] sm:$0xf0]  ;;  %v2087_v57 = vor.u32 %v2388_v51, %v2084_v52  ;;  %v2284_v58 = vld [vmem:[%s3525_s3 + $0x64] sm:$0xf] }
  0x3c   :  { %1031 = vmatpush.bf16.msra.mxu0 %v1703_v44  ;;  %v2352_v59 = vld [vmem:[%s3525_s3 + $0x284] sm:$0xf]  ;;  %v1940_v60 = vld [vmem:[%s3525_s3 + $0x290] sm:$0xf0]  ;;  %v1815_v61 = vor.u32 %v2320_v53, %v1812_v54 }
  0x3d   :  { %1056 = vmatpush.bf16.msra.mxu2 %v1975_v43  ;;  %1044 = vmatpush.bf16.msra.mxu1 %v1831_v49  ;;  %v1668_v62 = vld [vmem:[%s3525_s3 + $0x70] sm:$0xf0]  ;;  %v2384_v63 = vld [vmem:[%s3525_s3 + $0x384] sm:$0xf]  ;;  %v1943_v3 = vor.u32 %v2352_v59, %v1940_v60  ;;  %v45_v49 = vld [vmem:[%s3524_s2] sm:$0xf] }
  0x3e   :  { %1069 = vmatpush.bf16.msra.mxu3 %v2103_v45  ;;  %v2068_v0 = vld [vmem:[%s3525_s3 + $0x390] sm:$0xf0]  ;;  %v2316_v1 = vld [vmem:[%s3525_s3 + $0x164] sm:$0xf]  ;;  %v1671_v4 = vor.u32 %v2284_v58, %v1668_v62  ;;  %v47_v50 = vperm.slane %v45_v49, 0  ;;  %v48_v51 = vperm.slane %v45_v49, 1 }
  0x3f   :  { %v1796_v2 = vld [vmem:[%s3525_s3 + $0x170] sm:$0xf0]  ;;  %v2071_v5 = vor.u32 %v2384_v63, %v2068_v0  ;;  %v2280_v7 = vld [vmem:[%s3525_s3 + $0x44] sm:$0xf]  ;;  %v1866_v58 = vld [vmem:[%s3525_s3 + $0x1e8] sm:$0xf] }
  0x40   :  { %1032 = vmatpush.bf16.msra.mxu0 %v1687_v56  ;;  %v1799_v6 = vor.u32 %v2316_v1, %v1796_v2  ;;  %v1652_v8 = vld [vmem:[%s3525_s3 + $0x50] sm:$0xf0]  ;;  %v2312_v9 = vld [vmem:[%s3525_s3 + $0x144] sm:$0xf]  ;;  %v2303_v56 = vld [vmem:[%s3525_s3 + $0xf4] sm:$0xf0] }
  0x41   :  { %1057 = vmatpush.bf16.msra.mxu2 %v1959_v55  ;;  %1045 = vmatpush.bf16.msra.mxu1 %v1815_v61  ;;  %v1780_v10 = vld [vmem:[%s3525_s3 + $0x150] sm:$0xf0]  ;;  %v1655_v11 = vor.u32 %v2280_v7, %v1652_v8  ;;  %v2348_v13 = vld [vmem:[%s3525_s3 + $0x264] sm:$0xf]  ;;  %v1738_v55 = vld [vmem:[%s3525_s3 + $0xe8] sm:$0xf] }
  0x42   :  { %1070 = vmatpush.bf16.msra.mxu3 %v2087_v57  ;;  %v1783_v12 = vor.u32 %v2312_v9, %v1780_v10  ;;  %v1924_v14 = vld [vmem:[%s3525_s3 + $0x270] sm:$0xf0]  ;;  %v2380_v15 = vld [vmem:[%s3525_s3 + $0x364] sm:$0xf]  ;;  %v2335_v59 = vld [vmem:[%s3525_s3 + $0x1f4] sm:$0xf0]  ;;  %v1739_v63 = vor.u32 %v2303_v56, %v1738_v55 }
  0x43   :  { %v1927_v16 = vor.u32 %v2348_v13, %v1924_v14  ;;  %v2052_v17 = vld [vmem:[%s3525_s3 + $0x370] sm:$0xf0]  ;;  %v2276_v19 = vld [vmem:[%s3525_s3 + $0x24] sm:$0xf]  ;;  %v49_v62 = vperm.slane %v45_v49, 2  ;;  %v50_v1 = vperm.slane %v45_v49, 3  ;;  %v1867_v2 = vor.u32 %v2335_v59, %v1866_v58 }
  0x44   :  { %1033 = vmatpush.bf16.msra.mxu0 %v1671_v4  ;;  %v2055_v18 = vor.u32 %v2380_v15, %v2052_v17  ;;  %v1636_v20 = vld [vmem:[%s3525_s3 + $0x30] sm:$0xf0]  ;;  %v2308_v22 = vld [vmem:[%s3525_s3 + $0x124] sm:$0xf]  ;;  %v2299_v4 = vld [vmem:[%s3525_s3 + $0xd4] sm:$0xf0] }
  0x45   :  { %1058 = vmatpush.bf16.msra.mxu2 %v1943_v3  ;;  %1046 = vmatpush.bf16.msra.mxu1 %v1799_v6  ;;  %v1639_v21 = vor.u32 %v2276_v19, %v1636_v20  ;;  %v1764_v23 = vld [vmem:[%s3525_s3 + $0x130] sm:$0xf0]  ;;  %v2344_v25 = vld [vmem:[%s3525_s3 + $0x244] sm:$0xf]  ;;  %v1722_v3 = vld [vmem:[%s3525_s3 + $0xc8] sm:$0xf] }
  0x46   :  { %1071 = vmatpush.bf16.msra.mxu3 %v2071_v5  ;;  %v1767_v24 = vor.u32 %v2308_v22, %v1764_v23  ;;  %v1908_v26 = vld [vmem:[%s3525_s3 + $0x250] sm:$0xf0]  ;;  %v2376_v27 = vld [vmem:[%s3525_s3 + $0x344] sm:$0xf]  ;;  %v1850_v6 = vld [vmem:[%s3525_s3 + $0x1c8] sm:$0xf] }
  0x47   :  { %v1911_v28 = vor.u32 %v2344_v25, %v1908_v26  ;;  %v2036_v29 = vld [vmem:[%s3525_s3 + $0x350] sm:$0xf0]  ;;  %v2272_v31 = vld [vmem:[%s3525_s3 + $0x4] sm:$0xf]  ;;  %v2331_v7 = vld [vmem:[%s3525_s3 + $0x1d4] sm:$0xf0] }
  0x48   :  { %1034 = vmatpush.bf16.msra.mxu0 %v1655_v11  ;;  %v2039_v30 = vor.u32 %v2376_v27, %v2036_v29  ;;  %v1620_v32 = vld [vmem:[%s3525_s3 + $0x10] sm:$0xf0]  ;;  %v2304_v33 = vld [vmem:[%s3525_s3 + $0x104] sm:$0xf]  ;;  %v1994_v13 = vld [vmem:[%s3525_s3 + $0x2e8] sm:$0xf] }
  0x49   :  { %1047 = vmatpush.bf16.msra.mxu1 %v1783_v12  ;;  %1059 = vmatpush.bf16.msra.mxu2 %v1927_v16  ;;  %v1623_v34 = vor.u32 %v2272_v31, %v1620_v32  ;;  %v1748_v35 = vld [vmem:[%s3525_s3 + $0x110] sm:$0xf0]  ;;  %v2340_v37 = vld [vmem:[%s3525_s3 + $0x224] sm:$0xf]  ;;  %v1723_v12 = vor.u32 %v2299_v4, %v1722_v3  ;;  %v2367_v14 = vld [vmem:[%s3525_s3 + $0x2f4] sm:$0xf0] }
  0x4a   :  { %1072 = vmatpush.bf16.msra.mxu3 %v2055_v18  ;;  %v1751_v36 = vor.u32 %v2304_v33, %v1748_v35  ;;  %v1892_v38 = vld [vmem:[%s3525_s3 + $0x230] sm:$0xf0]  ;;  %v2372_v40 = vld [vmem:[%s3525_s3 + $0x324] sm:$0xf]  ;;  %v2122_v15 = vld [vmem:[%s3525_s3 + $0x3e8] sm:$0xf]  ;;  %v1851_v18 = vor.u32 %v2331_v7, %v1850_v6  ;;  %v1995_v26 = vor.u32 %v2367_v14, %v1994_v13 }
  0x4b   :  { %v1895_v39 = vor.u32 %v2340_v37, %v1892_v38  ;;  %v2020_v41 = vld [vmem:[%s3525_s3 + $0x330] sm:$0xf0]  ;;  %v2336_v43 = vld [vmem:[%s3525_s3 + $0x204] sm:$0xf]  ;;  %v2399_v19 = vld [vmem:[%s3525_s3 + $0x3f4] sm:$0xf0] }
  0x4c   :  { %1035 = vmatpush.bf16.msra.mxu0 %v1639_v21  ;;  %v2023_v42 = vor.u32 %v2372_v40, %v2020_v41  ;;  %v1876_v44 = vld [vmem:[%s3525_s3 + $0x210] sm:$0xf0]  ;;  %v2368_v46 = vld [vmem:[%s3525_s3 + $0x304] sm:$0xf]  ;;  %v1706_v20 = vld [vmem:[%s3525_s3 + $0xa8] sm:$0xf] }
  0x4d   :  { %1048 = vmatpush.bf16.msra.mxu1 %v1767_v24  ;;  %1060 = vmatpush.bf16.msra.mxu2 %v1911_v28  ;;  %v1879_v45 = vor.u32 %v2336_v43, %v1876_v44  ;;  %v2004_v47 = vld [vmem:[%s3525_s3 + $0x310] sm:$0xf0]  ;;  %v2295_v21 = vld [vmem:[%s3525_s3 + $0xb4] sm:$0xf0]  ;;  %v1834_v23 = vld [vmem:[%s3525_s3 + $0x1a8] sm:$0xf]  ;;  %v2123_v28 = vor.u32 %v2399_v19, %v2122_v15 }
  0x4e   :  { %1073 = vmatpush.bf16.msra.mxu3 %v2039_v30  ;;  %v2007_v48 = vor.u32 %v2368_v46, %v2004_v47  ;;  %v2327_v24 = vld [vmem:[%s3525_s3 + $0x1b4] sm:$0xf0]  ;;  %v1707_v29 = vor.u32 %v2295_v21, %v1706_v20  ;;  %v1978_v30 = vld [vmem:[%s3525_s3 + $0x2c8] sm:$0xf]  ;;  %s2468_s2 = smov 127  }
  0x4f   :  { %v2363_v31 = vld [vmem:[%s3525_s3 + $0x2d4] sm:$0xf0]  ;;  %v2106_v32 = vld [vmem:[%s3525_s3 + $0x3c8] sm:$0xf] }
  0x50   :  { %1036 = vmatpush.bf16.msra.mxu0 %v1623_v34  ;;  %v1835_v34 = vor.u32 %v2327_v24, %v1834_v23  ;;  %v2395_v35 = vld [vmem:[%s3525_s3 + $0x3d4] sm:$0xf0]  ;;  %v1818_v38 = vld [vmem:[%s3525_s3 + $0x188] sm:$0xf]  ;;  %v1979_v41 = vor.u32 %v2363_v31, %v1978_v30  ;;  %v1740_v31 = vld [vmem:[%s3525_s3 + $0xf8] sm:$0xf0] }
  0x51   :  { %1049 = vmatpush.bf16.msra.mxu1 %v1751_v36  ;;  %1061 = vmatpush.bf16.msra.mxu2 %v1895_v39  ;;  %v1690_v36 = vld [vmem:[%s3525_s3 + $0x88] sm:$0xf]  ;;  %v2291_v37 = vld [vmem:[%s3525_s3 + $0x94] sm:$0xf0]  ;;  %v2107_v43 = vor.u32 %v2395_v35, %v2106_v32  ;;  %v2333_v32 = vld [vmem:[%s3525_s3 + $0x1ec] sm:$0xf] }
  0x52   :  { %1074 = vmatpush.bf16.msra.mxu3 %v2023_v42  ;;  %v2323_v39 = vld [vmem:[%s3525_s3 + $0x194] sm:$0xf0]  ;;  %v1691_v44 = vor.u32 %v2291_v37, %v1690_v36  ;;  %v1946_v56 = vld [vmem:[%s3525_s3 + $0x288] sm:$0xf] }
  0x53   :  { %v2359_v46 = vld [vmem:[%s3525_s3 + $0x2b4] sm:$0xf0]  ;;  %v1819_v47 = vor.u32 %v2323_v39, %v1818_v38  ;;  %v1930_v6 = vld [vmem:[%s3525_s3 + $0x268] sm:$0xf] }
  0x54   :  { %v2391_v49 = vld [vmem:[%s3525_s3 + $0x3b4] sm:$0xf0]  ;;  %v1770_v14 = vld [vmem:[%s3525_s3 + $0x128] sm:$0xf] }
  0x55   :  { %1062 = vmatpush.bf16.msra.mxu2 %v1879_v45  ;;  %v1962_v45 = vld [vmem:[%s3525_s3 + $0x2a8] sm:$0xf]  ;;  %v2351_v7 = vld [vmem:[%s3525_s3 + $0x274] sm:$0xf0] }
  0x56   :  { %1075 = vmatpush.bf16.msra.mxu3 %v2007_v48  ;;  %v2090_v48 = vld [vmem:[%s3525_s3 + $0x3a8] sm:$0xf]  ;;  %v2279_v13 = vld [vmem:[%s3525_s3 + $0x34] sm:$0xf0] }
  0x57   :  { %v2091_v55 = vor.u32 %v2391_v49, %v2090_v48  ;;  %v2311_v15 = vld [vmem:[%s3525_s3 + $0x134] sm:$0xf0]  ;;  %v2042_v20 = vld [vmem:[%s3525_s3 + $0x348] sm:$0xf]  ;;  %v1852_v48 = vld [vmem:[%s3525_s3 + $0x1d8] sm:$0xf0] }
  0x58   :  { %v2347_v19 = vld [vmem:[%s3525_s3 + $0x254] sm:$0xf0]  ;;  %v1626_v24 = vld [vmem:[%s3525_s3 + $0x8] sm:$0xf] }
  0x59   :  { %v2379_v23 = vld [vmem:[%s3525_s3 + $0x354] sm:$0xf0]  ;;  %v1898_v36 = vld [vmem:[%s3525_s3 + $0x228] sm:$0xf] }
  0x5a   :  { %v2043_v35 = vor.u32 %v2379_v23, %v2042_v20  ;;  %v2343_v37 = vld [vmem:[%s3525_s3 + $0x234] sm:$0xf0]  ;;  %v2092_v23 = vld [vmem:[%s3525_s3 + $0x3b8] sm:$0xf0] }
  0x90   :  { %v148_v52 = vpop.f32.mrf.mxu0 }
  0x91   :  { %v149_v53 = vadd.f32 %v148_v52, %v47_v50  ;;  %v161_v54 = vpop.f32.mrf.mxu1  ;;  %v1674_v50 = vld [vmem:[%s3525_s3 + $0x68] sm:$0xf] }
  0x92   :  { %v162_v57 = vadd.f32 %v161_v54, %v48_v51  ;;  %v2287_v51 = vld [vmem:[%s3525_s3 + $0x74] sm:$0xf0]  ;;  %v1802_v52 = vld [vmem:[%s3525_s3 + $0x168] sm:$0xf]  ;;  %v1963_v54 = vor.u32 %v2359_v46, %v1962_v45  ;;  %v1899_v45 = vor.u32 %v2343_v37, %v1898_v36  ;;  %v1724_v46 = vld [vmem:[%s3525_s3 + $0xd8] sm:$0xf0] }
  0x93   :  { %v191_v60 = vmax.f32 %v149_v53, 0.0  ;;  %v2319_v53 = vld [vmem:[%s3525_s3 + $0x174] sm:$0xf0]  ;;  %v1675_v58 = vor.u32 %v2287_v51, %v1674_v50  ;;  %v1882_v50 = vld [vmem:[%s3525_s3 + $0x208] sm:$0xf] }
  0x94   :  { %v192_v61 = vmax.f32 %v162_v57, 0.0  ;;  %v2355_v57 = vld [vmem:[%s3525_s3 + $0x294] sm:$0xf0]  ;;  %v1803_v59 = vor.u32 %v2319_v53, %v1802_v52  ;;  %v2010_v52 = vld [vmem:[%s3525_s3 + $0x308] sm:$0xf] }
  0x95   :  { %v3013_v0 = vpack.c.bf16 %v191_v60, %v191_v60  ;;  %v2074_v60 = vld [vmem:[%s3525_s3 + $0x388] sm:$0xf]  ;;  %v1947_v3 = vor.u32 %v2355_v57, %v1946_v56  ;;  %v2339_v51 = vld [vmem:[%s3525_s3 + $0x214] sm:$0xf0]  ;;  %v2385_v36 = vld [vmem:[%s3525_s3 + $0x38c] sm:$0xf] }
  0x96   :  { %v3021_v5 = vpack.c.bf16 %v192_v61, %v192_v61  ;;  %v2387_v61 = vld [vmem:[%s3525_s3 + $0x394] sm:$0xf0]  ;;  %v2076_v37 = vld [vmem:[%s3525_s3 + $0x398] sm:$0xf0] }
  0x97   :  { %985 = vmatmul.bf16.vlgmr.msrb.gmra.mxu0 %v3013_v0  ;;  %v2075_v4 = vor.u32 %v2387_v61, %v2074_v60  ;;  %v2371_v53 = vld [vmem:[%s3525_s3 + $0x314] sm:$0xf0]  ;;  %v2293_v60 = vld [vmem:[%s3525_s3 + $0xac] sm:$0xf]  ;;  %v1883_v61 = vor.u32 %v2339_v51, %v1882_v50  ;;  %v1644_v51 = vld [vmem:[%s3525_s3 + $0x38] sm:$0xf0] }
  0x98   :  { %v174_v8 = vpop.f32.mrf.mxu2  ;;  %998 = vmatmul.bf16.vlgmr.msrb.gmra.mxu1 %v3021_v5  ;;  %1081 = vmatpush.bf16.msrb.mxu0 %v1739_v63  ;;  %v150_v11 = vpop.f32.mrf.mxu0  ;;  %v2283_v63 = vld [vmem:[%s3525_s3 + $0x54] sm:$0xf0]  ;;  %v2277_v50 = vld [vmem:[%s3525_s3 + $0x2c] sm:$0xf] }
  0x99   :  { %v175_v9 = vadd.f32 %v174_v8, %v49_v62  ;;  %v187_v10 = vpop.f32.mrf.mxu3  ;;  %1094 = vmatpush.bf16.msrb.mxu1 %v1867_v2  ;;  %v163_v17 = vpop.f32.mrf.mxu1  ;;  %v1658_v62 = vld [vmem:[%s3525_s3 + $0x48] sm:$0xf]  ;;  %v2315_v2 = vld [vmem:[%s3525_s3 + $0x154] sm:$0xf0] }
  0x9a   :  { %v188_v16 = vadd.f32 %v187_v10, %v50_v1  ;;  %v1786_v1 = vld [vmem:[%s3525_s3 + $0x148] sm:$0xf]  ;;  %v1659_v8 = vor.u32 %v2283_v63, %v1658_v62  ;;  %v2383_v11 = vld [vmem:[%s3525_s3 + $0x374] sm:$0xf0]  ;;  %v1708_v62 = vld [vmem:[%s3525_s3 + $0xb8] sm:$0xf0] }
  0x9b   :  { %v193_v22 = vmax.f32 %v175_v9, 0.0  ;;  %v1787_v9 = vor.u32 %v2315_v2, %v1786_v1  ;;  %v2058_v10 = vld [vmem:[%s3525_s3 + $0x368] sm:$0xf]  ;;  %v2325_v63 = vld [vmem:[%s3525_s3 + $0x1ac] sm:$0xf]  ;;  %v2011_v2 = vor.u32 %v2371_v53, %v2010_v52 }
  0x9c   :  { %v194_v25 = vmax.f32 %v188_v16, 0.0  ;;  %1082 = vmatpush.bf16.msrb.mxu0 %v1723_v12  ;;  %v1642_v12 = vld [vmem:[%s3525_s3 + $0x28] sm:$0xf]  ;;  %v1931_v16 = vor.u32 %v2351_v7, %v1930_v6  ;;  %v2059_v17 = vor.u32 %v2383_v11, %v2058_v10  ;;  %v1836_v1 = vld [vmem:[%s3525_s3 + $0x1b8] sm:$0xf0] }
  0x9d   :  { %v3055_v27 = vpack.c.bf16 %v193_v22, %v193_v22  ;;  %1095 = vmatpush.bf16.msrb.mxu1 %v1851_v18  ;;  %v1914_v18 = vld [vmem:[%s3525_s3 + $0x248] sm:$0xf]  ;;  %v1643_v21 = vor.u32 %v2279_v13, %v1642_v12  ;;  %v1771_v22 = vor.u32 %v2311_v15, %v1770_v14  ;;  %v2361_v6 = vld [vmem:[%s3525_s3 + $0x2cc] sm:$0xf]  ;;  %v1980_v7 = vld [vmem:[%s3525_s3 + $0x2d8] sm:$0xf0] }
  0x9e   :  { %v3066_v33 = vpack.c.bf16 %v194_v25, %v194_v25  ;;  %v2275_v25 = vld [vmem:[%s3525_s3 + $0x14] sm:$0xf0]  ;;  %v1915_v30 = vor.u32 %v2347_v19, %v1914_v18  ;;  %v2393_v10 = vld [vmem:[%s3525_s3 + $0x3cc] sm:$0xf]  ;;  %v2108_v11 = vld [vmem:[%s3525_s3 + $0x3d8] sm:$0xf0] }
  0x9f   :  { %1011 = vmatmul.bf16.vlgmr.msrb.gmra.mxu2 %v3055_v27  ;;  %v1627_v38 = vor.u32 %v2275_v25, %v1626_v24  ;;  %v2289_v12 = vld [vmem:[%s3525_s3 + $0x8c] sm:$0xf]  ;;  %v1692_v13 = vld [vmem:[%s3525_s3 + $0x98] sm:$0xf0] }
  0xa0   :  { %1024 = vmatmul.bf16.vlgmr.msrb.gmra.mxu3 %v3066_v33  ;;  %1107 = vmatpush.bf16.msrb.mxu2 %v1995_v26  ;;  %v176_v40 = vpop.f32.mrf.mxu2  ;;  %v1754_v26 = vld [vmem:[%s3525_s3 + $0x108] sm:$0xf]  ;;  %v2321_v14 = vld [vmem:[%s3525_s3 + $0x18c] sm:$0xf]  ;;  %v1820_v15 = vld [vmem:[%s3525_s3 + $0x198] sm:$0xf0]  ;;  %v1695_v20 = vor.u32 %v2289_v12, %v1692_v13 }
  0xa1   :  { %1120 = vmatpush.bf16.msrb.mxu3 %v2123_v28  ;;  %v189_v42 = vpop.f32.mrf.mxu3  ;;  %1083 = vmatpush.bf16.msrb.mxu0 %v1707_v29  ;;  %v2307_v28 = vld [vmem:[%s3525_s3 + $0x114] sm:$0xf0]  ;;  %v2301_v29 = vld [vmem:[%s3525_s3 + $0xec] sm:$0xf]  ;;  %v2026_v40 = vld [vmem:[%s3525_s3 + $0x328] sm:$0xf] }
  0xa2   :  { %1096 = vmatpush.bf16.msrb.mxu1 %v1835_v34  ;;  %v1868_v34 = vld [vmem:[%s3525_s3 + $0x1f8] sm:$0xf0]  ;;  %v1755_v39 = vor.u32 %v2307_v28, %v1754_v26  ;;  %v1743_v42 = vor.u32 %v2301_v29, %v1740_v31  ;;  %v2357_v18 = vld [vmem:[%s3525_s3 + $0x2ac] sm:$0xf] }
  0xa3   :  { %v1964_v19 = vld [vmem:[%s3525_s3 + $0x2b8] sm:$0xf0]  ;;  %v2285_v24 = vld [vmem:[%s3525_s3 + $0x6c] sm:$0xf] }
  0xa4   :  { %1108 = vmatpush.bf16.msrb.mxu2 %v1979_v41  ;;  %v2375_v41 = vld [vmem:[%s3525_s3 + $0x334] sm:$0xf0]  ;;  %v1676_v25 = vld [vmem:[%s3525_s3 + $0x78] sm:$0xf0]  ;;  %v2317_v26 = vld [vmem:[%s3525_s3 + $0x16c] sm:$0xf]  ;;  %v1967_v29 = vor.u32 %v2357_v18, %v1964_v19 }
  0xa5   :  { %1121 = vmatpush.bf16.msrb.mxu3 %v2107_v43  ;;  %1084 = vmatpush.bf16.msrb.mxu0 %v1691_v44  ;;  %v1871_v43 = vor.u32 %v2333_v32, %v1868_v34  ;;  %v2297_v44 = vld [vmem:[%s3525_s3 + $0xcc] sm:$0xf]  ;;  %v2027_v49 = vor.u32 %v2375_v41, %v2026_v40  ;;  %v1804_v28 = vld [vmem:[%s3525_s3 + $0x178] sm:$0xf0]  ;;  %v1679_v34 = vor.u32 %v2285_v24, %v1676_v25  ;;  %v2406_v19 = vld [vmem:[%s3527_s5 + $0x30] sm:$0xff] }
  0xa6   :  { %1097 = vmatpush.bf16.msrb.mxu1 %v1819_v47  ;;  %v2329_v47 = vld [vmem:[%s3525_s3 + $0x1cc] sm:$0xf]  ;;  %v1727_v56 = vor.u32 %v2297_v44, %v1724_v46  ;;  %v1948_v32 = vld [vmem:[%s3525_s3 + $0x298] sm:$0xf0] }
  0xa7   :  { %1037 = vmatmul.bf16.vlgmr.msra.gmra.mxu0 %v3013_v0  ;;  %v1855_v57 = vor.u32 %v2329_v47, %v1852_v48  ;;  %v2353_v31 = vld [vmem:[%s3525_s3 + $0x28c] sm:$0xf]  ;;  %v1788_v41 = vld [vmem:[%s3525_s3 + $0x158] sm:$0xf0] }
  0xa8   :  { %1109 = vmatpush.bf16.msrb.mxu2 %v1963_v54  ;;  %1050 = vmatmul.bf16.vlgmr.msra.gmra.mxu1 %v3021_v5  ;;  %v2365_v54 = vld [vmem:[%s3525_s3 + $0x2ec] sm:$0xf]  ;;  %v1772_v53 = vld [vmem:[%s3525_s3 + $0x138] sm:$0xf0] }
  0xa9   :  { %1122 = vmatpush.bf16.msrb.mxu3 %v2091_v55  ;;  %1085 = vmatpush.bf16.msrb.mxu0 %v1675_v58  ;;  %v1996_v55 = vld [vmem:[%s3525_s3 + $0x2f8] sm:$0xf0]  ;;  %v2397_v58 = vld [vmem:[%s3525_s3 + $0x3ec] sm:$0xf] }
  0xaa   :  { %1098 = vmatpush.bf16.msrb.mxu1 %v1803_v59  ;;  %v2124_v59 = vld [vmem:[%s3525_s3 + $0x3f8] sm:$0xf0]  ;;  %v2313_v40 = vld [vmem:[%s3525_s3 + $0x14c] sm:$0xf] }
  0xab   :  { %v2349_v44 = vld [vmem:[%s3525_s3 + $0x26c] sm:$0xf]  ;;  %v1791_v47 = vor.u32 %v2313_v40, %v1788_v41  ;;  %v2407_v12 = vld [vmem:[%s3527_s5 + $0x38] sm:$0xff]  ;;  %v2408_v40 = vld [vmem:[%s3527_s5 + $0x40] sm:$0xff] }
  0xac   :  { %1110 = vmatpush.bf16.msrb.mxu2 %v1947_v3  ;;  %v1999_v3 = vor.u32 %v2365_v54, %v1996_v55  ;;  %v2381_v48 = vld [vmem:[%s3525_s3 + $0x36c] sm:$0xf]  ;;  %v2012_v18 = vld [vmem:[%s3525_s3 + $0x318] sm:$0xf0]  ;;  %v2420_v41 = vld [vmem:[%s3527_s5 + $0xa0] sm:$0xff] }
  0xad   :  { %1123 = vmatpush.bf16.msrb.mxu3 %v2075_v4  ;;  %1086 = vmatpush.bf16.msrb.mxu0 %v1659_v8  ;;  %v2127_v4 = vor.u32 %v2397_v58, %v2124_v59  ;;  %v1711_v8 = vor.u32 %v2293_v60, %v1708_v62  ;;  %v2309_v52 = vld [vmem:[%s3525_s3 + $0x12c] sm:$0xf]  ;;  %v1647_v58 = vor.u32 %v2277_v50, %v1644_v51 }
  0xae   :  { %1099 = vmatpush.bf16.msrb.mxu1 %v1787_v9  ;;  %v1839_v9 = vor.u32 %v2325_v63, %v1836_v1  ;;  %v1775_v59 = vor.u32 %v2309_v52, %v1772_v53  ;;  %v2377_v60 = vld [vmem:[%s3525_s3 + $0x34c] sm:$0xf]  ;;  %v1628_v63 = vld [vmem:[%s3525_s3 + $0x18] sm:$0xf0] }
  0xaf   :  { %1063 = vmatmul.bf16.vlgmr.msra.gmra.mxu2 %v3055_v27  ;;  %v2273_v62 = vld [vmem:[%s3525_s3 + $0xc] sm:$0xf] }
  0xb0   :  { %1076 = vmatmul.bf16.vlgmr.msra.gmra.mxu3 %v3066_v33  ;;  %1111 = vmatpush.bf16.msrb.mxu2 %v1931_v16  ;;  %v1983_v16 = vor.u32 %v2361_v6, %v1980_v7  ;;  %v2305_v1 = vld [vmem:[%s3525_s3 + $0x10c] sm:$0xf]  ;;  %v1900_v7 = vld [vmem:[%s3525_s3 + $0x238] sm:$0xf0] }
  0xb1   :  { %1124 = vmatpush.bf16.msrb.mxu3 %v2059_v17  ;;  %1087 = vmatpush.bf16.msrb.mxu0 %v1643_v21  ;;  %v2111_v17 = vor.u32 %v2393_v10, %v2108_v11  ;;  %v1823_v21 = vor.u32 %v2321_v14, %v1820_v15  ;;  %v2341_v6 = vld [vmem:[%s3525_s3 + $0x22c] sm:$0xf]  ;;  %v2028_v11 = vld [vmem:[%s3525_s3 + $0x338] sm:$0xf0] }
  0xb2   :  { %1100 = vmatpush.bf16.msrb.mxu1 %v1771_v22  ;;  %v2389_v22 = vld [vmem:[%s3525_s3 + $0x3ac] sm:$0xf]  ;;  %v1903_v13 = vor.u32 %v2341_v6, %v1900_v7 }
  0xb3   :  { %v2373_v10 = vld [vmem:[%s3525_s3 + $0x32c] sm:$0xf] }
  0xb4   :  { %1112 = vmatpush.bf16.msrb.mxu2 %v1915_v30  ;;  %v2095_v30 = vor.u32 %v2389_v22, %v2092_v23  ;;  %v2031_v14 = vor.u32 %v2373_v10, %v2028_v11  ;;  %v2337_v15 = vld [vmem:[%s3525_s3 + $0x20c] sm:$0xf]  ;;  %v2404_v23 = vld [vmem:[%s3527_s5 + $0x20] sm:$0xff] }
  0xb5   :  { %1125 = vmatpush.bf16.msrb.mxu3 %v2043_v35  ;;  %1088 = vmatpush.bf16.msrb.mxu0 %v1627_v38  ;;  %v1807_v35 = vor.u32 %v2317_v26, %v1804_v28  ;;  %v2281_v38 = vld [vmem:[%s3525_s3 + $0x4c] sm:$0xf]  ;;  %v2400_v26 = vld [vmem:[%s3527_s5] sm:$0xff] }
  0xb6   :  { %1101 = vmatpush.bf16.msrb.mxu1 %v1755_v39  ;;  %v1660_v39 = vld [vmem:[%s3525_s3 + $0x58] sm:$0xf0]  ;;  %v2405_v22 = vld [vmem:[%s3527_s5 + $0x28] sm:$0xff]  ;;  %v2412_v28 = vld [vmem:[%s3527_s5 + $0x60] sm:$0xff] }
  0xb7   :  { %v1663_v46 = vor.u32 %v2281_v38, %v1660_v39  ;;  %v2401_v24 = vld [vmem:[%s3527_s5 + $0x8] sm:$0xff] }
  0xb8   :  { %1113 = vmatpush.bf16.msrb.mxu2 %v1899_v45  ;;  %1089 = vmatmul.bf16.vlgmr.msrb.gmra.mxu0 %v3013_v0  ;;  %v1932_v45 = vld [vmem:[%s3525_s3 + $0x278] sm:$0xf0]  ;;  %v2413_v25 = vld [vmem:[%s3527_s5 + $0x68] sm:$0xff] }
  0xb9   :  { %1133 = vmatpush.bf16.msra.mxu0 %v1743_v42  ;;  %1126 = vmatpush.bf16.msrb.mxu3 %v2027_v49  ;;  %v1951_v42 = vor.u32 %v2353_v31, %v1948_v32  ;;  %v2060_v49 = vld [vmem:[%s3525_s3 + $0x378] sm:$0xf0]  ;;  %v1935_v54 = vor.u32 %v2349_v44, %v1932_v45  ;;  %v2410_v31 = vld [vmem:[%s3527_s5 + $0x50] sm:$0xff]  ;;  %v2417_v51 = vld [vmem:[%s3527_s5 + $0x88] sm:$0xff] }
  0xba   :  { %1146 = vmatpush.bf16.msra.mxu1 %v1871_v43  ;;  %v2079_v43 = vor.u32 %v2385_v36, %v2076_v37  ;;  %v2063_v55 = vor.u32 %v2381_v48, %v2060_v49  ;;  %v2422_v32 = vld [vmem:[%s3527_s5 + $0xb0] sm:$0xff]  ;;  %v2421_v36 = vld [vmem:[%s3527_s5 + $0xa8] sm:$0xff] }
  0xbb   :  { %1102 = vmatmul.bf16.vlgmr.msrb.gmra.mxu1 %v3021_v5 }
  0xbc   :  { %1114 = vmatpush.bf16.msrb.mxu2 %v1883_v61  ;;  %v2044_v61 = vld [vmem:[%s3525_s3 + $0x358] sm:$0xf0] }
  0xbd   :  { %1134 = vmatpush.bf16.msra.mxu0 %v1727_v56  ;;  %1127 = vmatpush.bf16.msrb.mxu3 %v2011_v2  ;;  %v2345_v56 = vld [vmem:[%s3525_s3 + $0x24c] sm:$0xf]  ;;  %v1756_v2 = vld [vmem:[%s3525_s3 + $0x118] sm:$0xf0] }
  0xbe   :  { %1147 = vmatpush.bf16.msra.mxu1 %v1855_v57  ;;  %v1916_v57 = vld [vmem:[%s3525_s3 + $0x258] sm:$0xf0] }
  0xbf   :  { %1115 = vmatmul.bf16.vlgmr.msrb.gmra.mxu2 %v3055_v27 }
  0xc0   :  { %1159 = vmatpush.bf16.msra.mxu2 %v1999_v3  ;;  %1128 = vmatmul.bf16.vlgmr.msrb.gmra.mxu3 %v3066_v33  ;;  %v1919_v3 = vor.u32 %v2345_v56, %v1916_v57  ;;  %v2416_v56 = vld [vmem:[%s3527_s5 + $0x80] sm:$0xff]  ;;  %v2431_v57 = vld [vmem:[%s3527_s5 + $0xf8] sm:$0xff] }
  0xc1   :  { %1172 = vmatpush.bf16.msra.mxu3 %v2127_v4  ;;  %1135 = vmatpush.bf16.msra.mxu0 %v1711_v8  ;;  %v2047_v4 = vor.u32 %v2377_v60, %v2044_v61  ;;  %v1631_v8 = vor.u32 %v2273_v62, %v1628_v63  ;;  %v2430_v62 = vld [vmem:[%s3527_s5 + $0xf0] sm:$0xff] }
  0xc2   :  { %1148 = vmatpush.bf16.msra.mxu1 %v1839_v9  ;;  %v1759_v9 = vor.u32 %v2305_v1, %v1756_v2 }
  0xc4   :  { %1160 = vmatpush.bf16.msra.mxu2 %v1983_v16  ;;  %v1884_v16 = vld [vmem:[%s3525_s3 + $0x218] sm:$0xf0] }
  0xc5   :  { %1173 = vmatpush.bf16.msra.mxu3 %v2111_v17  ;;  %1136 = vmatpush.bf16.msra.mxu0 %v1695_v20  ;;  %v2369_v17 = vld [vmem:[%s3525_s3 + $0x30c] sm:$0xf]  ;;  %v1887_v20 = vor.u32 %v2337_v15, %v1884_v16 }
  0xc6   :  { %1149 = vmatpush.bf16.msra.mxu1 %v1823_v21  ;;  %v2015_v21 = vor.u32 %v2369_v17, %v2012_v18 }
  0xc8   :  { %1161 = vmatpush.bf16.msra.mxu2 %v1967_v29  ;;  %v2411_v29 = vld [vmem:[%s3527_s5 + $0x58] sm:$0xff] }
  0xc9   :  { %1174 = vmatpush.bf16.msra.mxu3 %v2095_v30  ;;  %1137 = vmatpush.bf16.msra.mxu0 %v1679_v34  ;;  %v2423_v30 = vld [vmem:[%s3527_s5 + $0xb8] sm:$0xff]  ;;  %v3460_v34 = vld [vmem:[%s3526_s4] sm:$0xf] }
  0xca   :  { %1150 = vmatpush.bf16.msra.mxu1 %v1807_v35  ;;  %v2409_v35 = vld [vmem:[%s3527_s5 + $0x48] sm:$0xff]  ;;  %v329_v39 = vperm.slane %v3460_v34, 0  ;;  %v331_v16 = vperm.slane %v3460_v34, 2 }
  0xcc   :  { %1162 = vmatpush.bf16.msra.mxu2 %v1951_v42 }
  0xcd   :  { %1175 = vmatpush.bf16.msra.mxu3 %v2079_v43  ;;  %1138 = vmatpush.bf16.msra.mxu0 %v1663_v46  ;;  %v2419_v43 = vld [vmem:[%s3527_s5 + $0x98] sm:$0xff] }
  0xce   :  { %1151 = vmatpush.bf16.msra.mxu1 %v1791_v47  ;;  %v2418_v47 = vld [vmem:[%s3527_s5 + $0x90] sm:$0xff] }
  0xd0   :  { %1163 = vmatpush.bf16.msra.mxu2 %v1935_v54 }
  0xd1   :  { %1176 = vmatpush.bf16.msra.mxu3 %v2063_v55  ;;  %1139 = vmatpush.bf16.msra.mxu0 %v1647_v58 }
  0xd2   :  { %1152 = vmatpush.bf16.msra.mxu1 %v1775_v59  ;;  %v330_v59 = vperm.slane %v3460_v34, 1 }
  0xd4   :  { %1164 = vmatpush.bf16.msra.mxu2 %v1919_v3  ;;  %v2429_v3 = vld [vmem:[%s3527_s5 + $0xe8] sm:$0xff] }
  0xd5   :  { %1177 = vmatpush.bf16.msra.mxu3 %v2047_v4  ;;  %1140 = vmatpush.bf16.msra.mxu0 %v1631_v8 }
  0xd6   :  { %1153 = vmatpush.bf16.msra.mxu1 %v1759_v9  ;;  %v2428_v9 = vld [vmem:[%s3527_s5 + $0xe0] sm:$0xff] }
  0xd8   :  { %1165 = vmatpush.bf16.msra.mxu2 %v1903_v13  ;;  %1141 = vmatmul.bf16.vlgmr.msra.gmra.mxu0 %v3013_v0  ;;  %v2415_v0 = vld [vmem:[%s3527_s5 + $0x78] sm:$0xff] }
  0xd9   :  { %1453 = vmatpush.bf16.msrb.mxu0 %v2407_v12  ;;  %1178 = vmatpush.bf16.msra.mxu3 %v2031_v14  ;;  %v2427_v12 = vld [vmem:[%s3527_s5 + $0xd8] sm:$0xff] }
  0xda   :  { %1154 = vmatmul.bf16.vlgmr.msra.gmra.mxu1 %v3021_v5  ;;  %v2403_v5 = vld [vmem:[%s3527_s5 + $0x18] sm:$0xff] }
  0xdb   :  { %1466 = vmatpush.bf16.msrb.mxu1 %v2415_v0 }
  0xdc   :  { %1166 = vmatpush.bf16.msra.mxu2 %v1887_v20 }
  0xdd   :  { %1454 = vmatpush.bf16.msrb.mxu0 %v2406_v19  ;;  %1179 = vmatpush.bf16.msra.mxu3 %v2015_v21  ;;  %v2426_v19 = vld [vmem:[%s3527_s5 + $0xd0] sm:$0xff] }
  0xdf   :  { %1167 = vmatmul.bf16.vlgmr.msra.gmra.mxu2 %v3055_v27  ;;  %v2402_v27 = vld [vmem:[%s3527_s5 + $0x10] sm:$0xff] }
  0xe0   :  { %1180 = vmatmul.bf16.vlgmr.msra.gmra.mxu3 %v3066_v33  ;;  %v2414_v33 = vld [vmem:[%s3527_s5 + $0x70] sm:$0xff]  ;;  %1479 = vmatpush.bf16.msrb.mxu2 %v2423_v30 }
  0xe1   :  { %1455 = vmatpush.bf16.msrb.mxu0 %v2405_v22  ;;  %1467 = vmatpush.bf16.msrb.mxu1 %v2414_v33 }
  0xe2   :  { %1492 = vmatpush.bf16.msrb.mxu3 %v2431_v57 }
  0xe4   :  { %1480 = vmatpush.bf16.msrb.mxu2 %v2422_v32 }
  0xe5   :  { %1456 = vmatpush.bf16.msrb.mxu0 %v2404_v23  ;;  %1468 = vmatpush.bf16.msrb.mxu1 %v2413_v25  ;;  %v2425_v23 = vld [vmem:[%s3527_s5 + $0xc8] sm:$0xff] }
  0xe6   :  { %1493 = vmatpush.bf16.msrb.mxu3 %v2430_v62 }
  0xe8   :  { %1481 = vmatpush.bf16.msrb.mxu2 %v2421_v36 }
  0xe9   :  { %1457 = vmatpush.bf16.msrb.mxu0 %v2403_v5  ;;  %1469 = vmatpush.bf16.msrb.mxu1 %v2412_v28 }
  0xea   :  { %1494 = vmatpush.bf16.msrb.mxu3 %v2429_v3 }
  0xec   :  { %1482 = vmatpush.bf16.msrb.mxu2 %v2420_v41 }
  0xed   :  { %1458 = vmatpush.bf16.msrb.mxu0 %v2402_v27  ;;  %1470 = vmatpush.bf16.msrb.mxu1 %v2411_v29 }
  0xee   :  { %1495 = vmatpush.bf16.msrb.mxu3 %v2428_v9 }
  0xf0   :  { %1483 = vmatpush.bf16.msrb.mxu2 %v2419_v43 }
  0xf1   :  { %1459 = vmatpush.bf16.msrb.mxu0 %v2401_v24  ;;  %1471 = vmatpush.bf16.msrb.mxu1 %v2410_v31  ;;  %v2424_v24 = vld [vmem:[%s3527_s5 + $0xc0] sm:$0xff] }
  0xf2   :  { %1496 = vmatpush.bf16.msrb.mxu3 %v2427_v12 }
  0xf4   :  { %1484 = vmatpush.bf16.msrb.mxu2 %v2418_v47 }
  0xf5   :  { %1460 = vmatpush.bf16.msrb.mxu0 %v2400_v26  ;;  %1472 = vmatpush.bf16.msrb.mxu1 %v2409_v35  ;;  %v332_v35 = vperm.slane %v3460_v34, 3 }
  0xf6   :  { %1497 = vmatpush.bf16.msrb.mxu3 %v2426_v19 }
  0xf8   :  { %1485 = vmatpush.bf16.msrb.mxu2 %v2417_v51 }
  0xf9   :  { %1473 = vmatpush.bf16.msrb.mxu1 %v2408_v40 }
  0xfa   :  { %1498 = vmatpush.bf16.msrb.mxu3 %v2425_v23 }
  0xfc   :  { %1486 = vmatpush.bf16.msrb.mxu2 %v2416_v56 }
  0xfe   :  { %1499 = vmatpush.bf16.msrb.mxu3 %v2424_v24 }
 0x114   :  { %v986_v37 = vpop.f32.mrf.mxu0 }
 0x115   :  { %v999_v38 = vpop.f32.mrf.mxu1  ;;  %v987_v42 = vadd.f32 %v986_v37, %v329_v39 }
 0x117   :  { %v1000_v46 = vadd.f32 %v999_v38, %v987_v42 }
 0x11c   :  { %v988_v44 = vpop.f32.mrf.mxu0 }
 0x11d   :  { %v1001_v45 = vpop.f32.mrf.mxu1 }
 0x122   :  { %v1012_v48 = vpop.f32.mrf.mxu2 }
 0x123   :  { %v1013_v49 = vadd.f32 %v1012_v48, %v1000_v46  ;;  %v1025_v50 = vpop.f32.mrf.mxu3 }
 0x124   :  { %v1038_v53 = vpop.f32.mrf.mxu0 }
 0x125   :  { %v1026_v52 = vadd.f32 %v1025_v50, %v1013_v49  ;;  %v1051_v54 = vpop.f32.mrf.mxu1  ;;  %v1039_v63 = vadd.f32 %v1038_v53, %v330_v59 }
 0x127   :  { %v1185_v55 = vmax.f32 %v1026_v52, 0.0  ;;  %v1052_v4 = vadd.f32 %v1051_v54, %v1039_v63  ;;  %v2467_v52 = vmov 0   ;;  %v2438_v54 = vld [vmem:[%s3528_s6] ss:$0 sm:$0xff]  ;;  %v2469_v63 = vmov 6.0   ;;  %s2470_s6 = smov [#allocation2]  }
 0x128   :  { %2436 = vset.pattern.permute.xlu1 %v2467_v52  ;;  %2437 = vset.pattern.permute.xlu0 %v2467_v52  ;;  %2439 = vrcp.f32 %v2469_v63  ;;  %s1537_s4 = sshll.u32 %s2470_s6, 4  ;;  %s1538_s4 = int_to_ptr.vmem [resolvable:$true] %s1537_s4 }
 0x129   :  { %v1189_v58 = vpack.c.bf16 %v1185_v55, %v1185_v55 }
 0x12a   :  { %v1014_v60 = vpop.f32.mrf.mxu2 }
 0x12b   :  { %v1027_v61 = vpop.f32.mrf.mxu3  ;;  %1461 = vmatmul.bf16.vlgmr.msrb.gmra.mxu0 %v1189_v58 }
 0x12c   :  { %v1040_v1 = vpop.f32.mrf.mxu0 }
 0x12d   :  { %v1053_v2 = vpop.f32.mrf.mxu1 }
 0x12e   :  { %v2440_v1 = vpop.eup %2439 }
 0x12f   :  { %v1514_v2 = vmul.f32 6.0, %v2440_v1  ;;  %vm1518_vm2 = vweird.f32 %v2440_v1 }
 0x131   :  { %v1515_v3 = vsub.f32 1.0, %v1514_v2 }
 0x132   :  { %v1064_v6 = vpop.f32.mrf.mxu2 }
 0x133   :  { %v1065_v7 = vadd.f32 %v1064_v6, %v1052_v4  ;;  %v1077_v8 = vpop.f32.mrf.mxu3  ;;  %v1516_v4 = vmul.f32 %v2440_v1, %v1515_v3 }
 0x135   :  { %v1078_v10 = vadd.f32 %v1077_v8, %v1065_v7  ;;  %v1090_v11 = vpop.f32.mrf.mxu0  ;;  %v1517_v6 = vadd.f32 %v2440_v1, %v1516_v4 }
 0x136   :  { %v1091_v20 = vadd.f32 %v1090_v11, %v331_v16 }
 0x137   :  { %v1186_v13 = vmax.f32 %v1078_v10, 0.0  ;;  %v1519_v8 = vsel %vm1518_vm2, %v2440_v1, %v1517_v6 }
 0x138   :  { %v1103_v14 = vpop.f32.mrf.mxu1 }
 0x139   :  { %v1190_v15 = vpack.c.bf16 %v1186_v13, %v1186_v13  ;;  %v1104_v0 = vadd.f32 %v1103_v14, %v1091_v20 }
 0x13a   :  { %v1066_v17 = vpop.f32.mrf.mxu2 }
 0x13b   :  { %v1079_v18 = vpop.f32.mrf.mxu3  ;;  %1474 = vmatmul.bf16.vlgmr.msrb.gmra.mxu1 %v1190_v15 }
 0x13d   :  { %v1092_v21 = vpop.f32.mrf.mxu0 }
 0x140   :  { %v1105_v22 = vpop.f32.mrf.mxu1 }
 0x142   :  { %v1116_v5 = vpop.f32.mrf.mxu2 }
 0x143   :  { %v1129_v27 = vpop.f32.mrf.mxu3  ;;  %v1117_v33 = vadd.f32 %v1116_v5, %v1104_v0 }
 0x145   :  { %v1130_v25 = vadd.f32 %v1129_v27, %v1117_v33 }
 0x147   :  { %v1187_v26 = vmax.f32 %v1130_v25, 0.0 }
 0x149   :  { %v1191_v28 = vpack.c.bf16 %v1187_v26, %v1187_v26 }
 0x14a   :  { %v1118_v29 = vpop.f32.mrf.mxu2 }
 0x14b   :  { %v1131_v30 = vpop.f32.mrf.mxu3  ;;  %1487 = vmatmul.bf16.vlgmr.msrb.gmra.mxu2 %v1191_v28 }
 0x155   :  { %v1142_v31 = vpop.f32.mrf.mxu0 }
 0x156   :  { %v1143_v36 = vadd.f32 %v1142_v31, %v332_v35 }
 0x157   :  { %v1155_v32 = vpop.f32.mrf.mxu1 }
 0x158   :  { %v1156_v39 = vadd.f32 %v1155_v32, %v1143_v36 }
 0x15d   :  { %v1144_v37 = vpop.f32.mrf.mxu0 }
 0x15f   :  { %v1157_v38 = vpop.f32.mrf.mxu1 }
 0x162   :  { %v1168_v40 = vpop.f32.mrf.mxu2 }
 0x163   :  { %v1169_v41 = vadd.f32 %v1168_v40, %v1156_v39  ;;  %v1181_v42 = vpop.f32.mrf.mxu3 }
 0x165   :  { %v1182_v43 = vadd.f32 %v1181_v42, %v1169_v41 }
 0x167   :  { %v1188_v44 = vmax.f32 %v1182_v43, 0.0 }
 0x169   :  { %v1192_v45 = vpack.c.bf16 %v1188_v44, %v1188_v44 }
 0x16a   :  { %v1170_v46 = vpop.f32.mrf.mxu2 }
 0x16b   :  { %v1183_v47 = vpop.f32.mrf.mxu3  ;;  %1500 = vmatmul.bf16.vlgmr.msrb.gmra.mxu3 %v1192_v45 }
 0x1a8   :  { %v1462_v48 = vpop.f32.mrf.mxu0 }
 0x1a9   :  { %v1463_v55 = vadd.f32 %v2438_v54, %v1462_v48 }
 0x1b0   :  { %v1464_v49 = vpop.f32.mrf.mxu0 }
 0x1b8   :  { %v1475_v50 = vpop.f32.mrf.mxu1 }
 0x1b9   :  { %v1476_v56 = vadd.f32 %v1475_v50, %v1463_v55 }
 0x1c0   :  { %v1477_v51 = vpop.f32.mrf.mxu1 }
 0x1ce   :  { %v1488_v34 = vpop.f32.mrf.mxu2 }
 0x1cf   :  { %v1489_v57 = vadd.f32 %v1488_v34, %v1476_v56 }
 0x1d6   :  { %v1490_v53 = vpop.f32.mrf.mxu2 }
 0x1ee   :  { %v1501_v58 = vpop.f32.mrf.mxu3 }
 0x1ef   :  { %v1502_v59 = vadd.f32 %v1501_v58, %v1489_v57 }
 0x1f1   :  { %1522 = vperm.xlu1 %2436, %v1502_v59   ;;  %1506 = vrot.lane.b32.xlu0 %v1502_v59, %s2468_s2 }
 0x1f6   :  { %v1503_v60 = vpop.f32.mrf.mxu3 }
 0x263   :  { %v1507_v61 = vpop.permute.xlu0 %1506  ;;  %v1523_v7 = vpop.permute.xlu1 %1522 }
 0x264   :  { %v1510_v62 = vsel %vm1509_vm1, %v1507_v61, 0.0  ;;  %v1525_v10 = vadd.f32 %v1523_v7, %v1502_v59 }
 0x265   :  { %1511 = vadd.xlane.f32.xlu0 %v1510_v62 }
 0x2d8   :  { %v1512_v9 = vpop.xlane.xlu0 %1511 }
 0x2d9   :  { %v1520_v11 = vmul.f32 %v1519_v8, %v1512_v9 }
 0x2db   :  { %v1526_v12 = vsub.f32 %v1525_v10, %v1520_v11 }
 0x2dd   :  { %1528 = vrot.lane.b32.xlu1 %v1526_v12, %s2468_s2 }
 0x34f   :  { %v1529_v13 = vpop.permute.xlu1 %1528 }
 0x350   :  { %1531 = vst.msk [vmem:[#allocation2] sm:$0x3] %vm1509_vm1, %v1529_v13 }
 0x351   :  { %1542 = dma.vmem_to_hbm [thread:$0]  %s1538_s4, 32, %s1540_s13, [#allocation3]  }
 0x352   :  { %2465 = dma.done.wait [#allocation3], 32  }
 0x353   :  { %2466 = vsyncadd [#allocation3], 4294967264 }
 0x354   :  { %1547 = vsyncpa [#allocation3], 1 }

</bundles_post_ra>
